<compile_context>
chip_gen: v6e
topology: v6e:2x2x1
jax: 0.10.0
libtpu: 0.0.40
codegen_flags: <defaults>
</compile_context>

<pallas_src>
import functools

import numpy as np
import jax
import jax.numpy as jnp
from jax.experimental import pallas as pl
from jax.experimental.pallas import tpu as pltpu


def _make_kernel(B, D, TN, CH, temp, N, rho, alpha, compute_dtype):
    inv_temp = 1.0 / temp
    inv_t2 = 1.0 / (temp * temp)
    n_sq = float(N) * float(N)
    denom = 2.0 * B - 2.0
    n_chunks = (2 * B) // CH

    def kernel(feats_hbm, sinv_ref, loss_ref, new_sinv_ref,
               f_sc, raw_sc, acc_a_sc, colsum_sc, copy_sem):
        j = pl.program_id(0)

        # ---- first tile: chunked DMA of the raw features, L2-normalize with
        #      rsqrt, fold the 1/temp scale, cast for the MXU, zero accumulator.
        @pl.when(j == 0)
        def _():
            acc_a_sc[...] = jnp.zeros_like(acc_a_sc)
            for c in range(n_chunks):                      # static unroll
                r0 = c * CH
                cp = pltpu.make_async_copy(
                    feats_hbm.at[pl.ds(r0, CH)], raw_sc, copy_sem.at[0])
                cp.start()
                cp.wait()
                f = raw_sc[...].astype(jnp.float32)
                ss = jnp.sum(f * f, axis=1, keepdims=True)
                scale = jax.lax.rsqrt(jnp.maximum(ss, 1e-24)) * inv_temp
                f_sc[pl.ds(r0, CH), :] = (f * scale).astype(compute_dtype)

        # ---- every tile: one stacked Gram matmul + one aa matmul -------------
        col = pl.multiple_of(j * TN, TN)
        f_all = f_sc[...]                        # (2B, D)  [fa ; fb], scaled 1/temp
        fa = f_all[:B]                           # (B, D)
        ka = f_sc[pl.ds(col, TN), :]             # (TN, D)  view-a key tile
        kb = f_sc[pl.ds(B + col, TN), :]         # (TN, D)  view-b key tile

        dn = (((1,), (1,)), ((), ()))            # contract on D; no RHS transpose op
        g_stack = jax.lax.dot_general(           # (2B, TN) = [fa@kb^T ; fb@kb^T]
            f_all, kb, dn, preferred_element_type=jnp.float32)
        g_aa = jax.lax.dot_general(              # (B, TN)  = fa@ka^T
            fa, ka, dn, preferred_element_type=jnp.float32)

        # unit rows scaled by 1/temp  =>  -||x-y||^2/(2 t^2) == g - 1/t^2  (<= 0)
        e_stack = jnp.exp(jnp.minimum(g_stack - inv_t2, 0.0))    # [e_ab ; e_bb]
        e_aa = jnp.exp(jnp.minimum(g_aa - inv_t2, 0.0))

        # wide VPU-only accumulation; lane reduction deferred to the epilogue
        acc_a_sc[...] += e_stack[:B] + e_aa
        # colsum(e_ab) + colsum(e_bb) == rowsum(e_ba) + rowsum(e_bb) (symmetry),
        # i.e. the un-masked view-b repulsive sums, written lane-dense.  Every
        # lane is written exactly once (requires b % tile_n == 0).
        colsum_sc[:, pl.ds(col, TN)] = jnp.sum(e_stack, axis=0, keepdims=True)

        # ---- last tile: diagonal corrections, loss, s_inv update -------------
        @pl.when(j == pl.num_programs(0) - 1)
        def _():
            fa32 = f_all[:B].astype(jnp.float32)
            fb32 = f_all[B:].astype(jnp.float32)
            # Gram diagonals from the same (scaled, compute_dtype) operands.
            d_ab = jnp.sum(fa32 * fb32, axis=1, keepdims=True)   # (B, 1)
            d_aa = jnp.sum(fa32 * fa32, axis=1, keepdims=True)
            d_bb = jnp.sum(fb32 * fb32, axis=1, keepdims=True)
            pos = jnp.minimum(d_ab - inv_t2, 0.0)                # logits_pos (<=0)
            q_attr = jnp.exp(pos)
            e_daa = jnp.exp(jnp.minimum(d_aa - inv_t2, 0.0))
            e_dbb = jnp.exp(jnp.minimum(d_bb - inv_t2, 0.0))

            # masked sums == un-masked sums minus the diagonal contributions
            rowsum_a = jnp.sum(acc_a_sc[...], axis=1, keepdims=True)     # (B, 1)
            sum_rep_a = jnp.maximum(rowsum_a - q_attr - e_daa, 0.0)      # (B, 1)
            q_attr_row = q_attr.T                                        # (1, B)
            sum_rep_b = jnp.maximum(
                colsum_sc[...] - q_attr_row - e_dbb.T, 0.0)              # (1, B)
            sum_total = sum_rep_a.T + sum_rep_b                          # (1, B)

            sinv_row = sinv_ref[...].astype(jnp.float32)                 # (1, B)
            z_hat = sinv_row * (denom / n_sq)
            # attr_a == attr_b == -pos, so the a/b average collapses.
            loss = -jnp.sum(pos) / B + jnp.sum(sum_total / z_hat) / (2.0 * B)
            loss_ref[0, 0] = loss

            # update_s (single_s=False): xi = alpha*q_attr + (1-alpha)*E_rep
            xi = alpha * q_attr_row + (1.0 - alpha) * sum_total / (2.0 * denom)
            new_sinv_ref[...] = rho * sinv_row + (1.0 - rho) * n_sq * xi

    return kernel


def _pick_tile_n(b, d_pad, in_bytes, c_bytes, vmem_cap):
    """Largest lane-aligned column tile whose live f32 temporaries fit VMEM."""
    budget = int(vmem_cap * 0.75)
    fixed = 2 * b * d_pad * c_bytes                     # normalized features
    fixed += min(2 * b * d_pad * in_bytes, 4 << 20)     # raw DMA chunk scratch
    fixed += 64 * 1024                                  # lane-dense vectors etc.
    per_tn = 12 * b * 4                                 # Gram/exp temps + accumulator
    cands = [b] + [t for t in range(b - (b % 128), 127, -128) if b % t == 0]
    seen = set()
    cands = [t for t in cands if not (t in seen or seen.add(t))]
    for t in cands:
        if fixed + per_tn * t <= budget:
            return t
    return cands[-1]


@functools.partial(
    jax.jit,
    static_argnames=("N", "rho", "alpha", "temp", "tile_n", "compute_dtype"))
def saclr_all_forward(feats, feats_idx, s_inv, *, N, rho, alpha, temp,
                      tile_n=None, compute_dtype=jnp.bfloat16):
    """SACLRAll / ExponentialLoss forward (single_s=False).  Returns (loss, s_inv')."""
    two_b, d = feats.shape
    b = two_b // 2
    assert 2 * b == two_b and b >= 2
    assert b % 8 == 0, "per-view batch must be a multiple of 8 (sublane aligned)"

    d_pad = ((d + 127) // 128) * 128                    # lane / MXU-depth alignment
    if d_pad != d:
        feats = jnp.pad(feats, ((0, 0), (0, d_pad - d)))

    in_bytes = np.dtype(feats.dtype).itemsize
    c_bytes = np.dtype(compute_dtype).itemsize

    try:
        vmem_cap = int(pltpu.get_tpu_info().vmem_capacity_bytes)
    except Exception:
        vmem_cap = 64 * 1024 * 1024                     # conservative (v7x) default

    if tile_n is None:
        tile_n = _pick_tile_n(b, d_pad, in_bytes, c_bytes, vmem_cap)
    assert b % tile_n == 0, "batch must be divisible by the column tile"
    assert tile_n == b or tile_n % 128 == 0, "tile must be lane aligned"
    num_tiles = b // tile_n

    # Prologue DMA chunk: rows of the raw (2B, D) input normalized per pass.
    ch = two_b
    while ch > 8 and ch % 2 == 0 and ch * d_pad * in_bytes > (4 << 20):
        ch //= 2

    sinv_sel = s_inv[feats_idx].astype(jnp.float32).reshape(1, b)    # lane-dense

    kernel = _make_kernel(b, d_pad, tile_n, ch, temp, N, rho, alpha, compute_dtype)

    est_vmem = (2 * b * d_pad * c_bytes                 # normalized features
                + ch * d_pad * in_bytes                 # raw DMA chunk
                + b * tile_n * 4                        # wide accumulator
                + 10 * b * tile_n * 4                   # Gram / exp f32 temporaries
                + 64 * 1024)
    vmem_limit = int(min(max(2 * est_vmem, 32 * 1024 * 1024),
                         vmem_cap - 2 * 1024 * 1024))

    grid_spec = pltpu.PrefetchScalarGridSpec(
        num_scalar_prefetch=0,
        grid=(num_tiles,),
        in_specs=[
            pl.BlockSpec(memory_space=pl.ANY),           # raw feats stay in HBM
            pl.BlockSpec((1, b), lambda j: (0, 0)),      # s_inv[idx], lane-dense
        ],
        out_specs=[
            pl.BlockSpec((1, 1), lambda j: (0, 0),
                         memory_space=pltpu.MemorySpace.SMEM),
            pl.BlockSpec((1, b), lambda j: (0, 0)),
        ],
        scratch_shapes=[
            pltpu.VMEM((2 * b, d_pad), compute_dtype),   # normalized [fa ; fb]
            pltpu.VMEM((ch, d_pad), feats.dtype),        # raw DMA chunk
            pltpu.VMEM((b, tile_n), jnp.float32),        # wide row-sum accumulator
            pltpu.VMEM((1, b), jnp.float32),             # colsums of [e_ab ; e_bb]
            pltpu.SemaphoreType.DMA((1,)),
        ],
    )

    loss, new_sinv = pl.pallas_call(
        kernel,
        out_shape=(
            jax.ShapeDtypeStruct((1, 1), jnp.float32),
            jax.ShapeDtypeStruct((1, b), jnp.float32),
        ),
        grid_spec=grid_spec,
        compiler_params=pltpu.CompilerParams(
            dimension_semantics=("arbitrary",),
            vmem_limit_bytes=vmem_limit,
        ),
        cost_estimate=pl.CostEstimate(
            flops=int(6 * b * b * d_pad),
            transcendentals=int(3 * b * b + 3 * b),
            bytes_accessed=int(two_b * d_pad * in_bytes + 3 * b * 4),
        ),
    )(feats, sinv_sel)

    s_inv_new = s_inv.at[feats_idx].set(new_sinv[0])
    return loss[0, 0], s_inv_new


def _reference(feats, feats_idx, s_inv, *, N, rho, alpha, temp):
    """Pure-JAX f32 reference mirroring the PyTorch forward."""
    LARGE_NUM = 1.0e9
    hi = jax.lax.Precision.HIGHEST
    b = feats.shape[0] // 2
    feats = feats / jnp.maximum(
        jnp.linalg.norm(feats, axis=1, keepdims=True), 1e-12)
    fa, fb = feats[:b], feats[b:]

    def sq(x, y):
        g = jnp.dot(x, y.T, precision=hi)
        return jnp.maximum(
            jnp.sum(x * x, 1)[:, None] + jnp.sum(y * y, 1)[None, :] - 2 * g, 0.0)

    sc = 1.0 / (2.0 * temp ** 2)
    l_aa, l_bb = -sq(fa, fa) * sc, -sq(fb, fb) * sc
    l_ab, l_ba = -sq(fa, fb) * sc, -sq(fb, fa) * sc
    m = jnp.eye(b) * LARGE_NUM
    pos_a, pos_b = jnp.diag(l_ab), jnp.diag(l_ba)
    la = jnp.concatenate([l_ab - m, l_aa - m], 1)
    lb = jnp.concatenate([l_ba - m, l_bb - m], 1)
    q_rep_a, q_rep_b = jnp.exp(la), jnp.exp(lb)
    z_hat = s_inv[feats_idx] / N ** 2 * (2 * b - 2)
    rep_a = jnp.sum(q_rep_a / z_hat[:, None], 1)
    rep_b = jnp.sum(q_rep_b / z_hat[:, None], 1)
    loss = ((-pos_a).mean() + rep_a.mean() + (-pos_b).mean() + rep_b.mean()) / 2
    e_rep_a = jnp.sum(q_rep_a, 1) / (2 * b - 2)
    e_rep_b = jnp.sum(q_rep_b, 1) / (2 * b - 2)
    xi_a = alpha * jnp.exp(pos_a) + (1 - alpha) * e_rep_a
    xi_b = alpha * jnp.exp(pos_b) + (1 - alpha) * e_rep_b
    s_a = rho * s_inv[feats_idx] + (1 - rho) * N ** 2 * xi_a
    s_b = rho * s_inv[feats_idx] + (1 - rho) * N ** 2 * xi_b
    return loss, s_inv.at[feats_idx].set((s_a + s_b) / 2)


if __name__ == "__main__":
    # Hyperparameters of SACLRAll(metric, N, rho, alpha, s_init, single_s, temp)
    N_total = 1024          # dataset size (s_inv buffer length, single_s=False)
    rho = 0.99
    alpha = 0.5
    s_init = 1.0
    temp = 0.5

    B = 256                 # per-view batch -> feats has 2B rows
    D = 64                  # feature dim (padded to 128 inside the wrapper)
    TN = 128                # 2 column tiles -> exercises the accumulator grid

    key = jax.random.PRNGKey(0)
    feats = jax.random.normal(key, (2 * B, D), dtype=jnp.float32)
    feats_idx = jnp.arange(B, dtype=jnp.int32)
    s_inv = jnp.zeros((N_total,), dtype=jnp.float32) + 1.0 / s_init

    loss, s_inv_new = saclr_all_forward(
        feats, feats_idx, s_inv, N=N_total, rho=rho, alpha=alpha, temp=temp,
        tile_n=TN)
    jax.block_until_ready((loss, s_inv_new))

    # Sanity check vs. a pure-f32 reference of the PyTorch forward.  The kernel
    # feeds bf16 MXU operands (f32 accumulation); the only deviation is bf16
    # rounding of the normalized features, well inside the tolerance below.
    ref_loss, ref_sinv = _reference(
        feats, feats_idx, s_inv, N=N_total, rho=rho, alpha=alpha, temp=temp)
    assert jnp.allclose(loss, ref_loss, rtol=4e-2, atol=1e-2), (loss, ref_loss)
    assert jnp.allclose(s_inv_new, ref_sinv, rtol=4e-2, atol=1e-2)

    print("KERNEL_OK")
</pallas_src>

<mosaic_0001>
module attributes {stable_mosaic.version = 11 : i64} {
  func.func @kernel(%arg0: i32, %arg1: memref<512x128xf32, #tpu.memory_space<any>>, %arg2: memref<1x256xf32, #tpu.memory_space<vmem>>, %arg3: memref<1x1xf32, #tpu.memory_space<smem>>, %arg4: memref<1x256xf32, #tpu.memory_space<vmem>>, %arg5: memref<512x128xbf16, #tpu.memory_space<vmem>>, %arg6: memref<512x128xf32, #tpu.memory_space<vmem>>, %arg7: memref<256x128xf32, #tpu.memory_space<vmem>>, %arg8: memref<1x256xf32, #tpu.memory_space<vmem>>, %arg9: memref<1x!tpu.dma_semaphore, #tpu.memory_space<semaphore_mem>>) attributes {dimension_semantics = [#tpu.dimension_semantics<arbitrary>], iteration_bounds = array<i64: 2>, scalar_prefetch = 0 : i64, scratch_operands = 5 : i64, tpu.core_type = #tpu.core_type<tc>, window_params = [{}, {pipeline_mode = #tpu.pipeline_mode<synchronous>, transform_indices = @transform_1, window_bounds = array<i64: 1, 256>}, {transform_indices = @transform_2, window_bounds = array<i64: 1, 1>}, {pipeline_mode = #tpu.pipeline_mode<synchronous>, transform_indices = @transform_3, window_bounds = array<i64: 1, 256>}]} {
    %c0_i32 = arith.constant 0 : i32
    %0 = arith.cmpi eq, %arg0, %c0_i32 : i32
    %1 = arith.extui %0 : i1 to i32
    %c0_i32_0 = arith.constant 0 : i32
    %2 = arith.cmpi ne, %1, %c0_i32_0 : i32
    scf.if %2 {
      %cst_16 = arith.constant 0.000000e+00 : f32
      %36 = vector.broadcast %cst_16 : f32 to vector<256x128xf32>
      %c0_17 = arith.constant 0 : index
      %c0_18 = arith.constant 0 : index
      %37 = vector.load %arg7[%c0_17, %c0_18] : memref<256x128xf32, #tpu.memory_space<vmem>>, vector<256x128xf32>
      tpu.vector_store %arg7[%c0_17, %c0_18], %36 {strides = array<i32>} : memref<256x128xf32, #tpu.memory_space<vmem>>, vector<256x128xf32>,
      %c0_i32_19 = arith.constant 0 : i32
      %c0_i32_20 = arith.constant 0 : i32
      %c0_i32_21 = arith.constant 0 : i32
      %38 = tpu.memref_slice %arg1[%c0_i32_20, %c0_i32_21] : memref<512x128xf32, #tpu.memory_space<any>> -> memref<512x128xf32, #tpu.memory_space<any>>
      %39 = tpu.memref_slice %arg9[%c0_i32_19] : memref<1x!tpu.dma_semaphore, #tpu.memory_space<semaphore_mem>> -> memref<1x!tpu.dma_semaphore, #tpu.memory_space<semaphore_mem>>
      %40 = tpu.memref_squeeze %39 : memref<1x!tpu.dma_semaphore, #tpu.memory_space<semaphore_mem>> -> memref<!tpu.dma_semaphore, #tpu.memory_space<semaphore_mem>>
      tpu.enqueue_dma source(%38 : memref<512x128xf32, #tpu.memory_space<any>>) target(%arg6 : memref<512x128xf32, #tpu.memory_space<vmem>>) target_semaphore(%40 : memref<!tpu.dma_semaphore, #tpu.memory_space<semaphore_mem>>)
      %c0_i32_22 = arith.constant 0 : i32
      %c0_i32_23 = arith.constant 0 : i32
      %c0_i32_24 = arith.constant 0 : i32
      %41 = tpu.memref_slice %arg1[%c0_i32_23, %c0_i32_24] : memref<512x128xf32, #tpu.memory_space<any>> -> memref<512x128xf32, #tpu.memory_space<any>>
      %42 = tpu.memref_slice %arg9[%c0_i32_22] : memref<1x!tpu.dma_semaphore, #tpu.memory_space<semaphore_mem>> -> memref<1x!tpu.dma_semaphore, #tpu.memory_space<semaphore_mem>>
      %43 = tpu.memref_squeeze %42 : memref<1x!tpu.dma_semaphore, #tpu.memory_space<semaphore_mem>> -> memref<!tpu.dma_semaphore, #tpu.memory_space<semaphore_mem>>
      tpu.wait_dma2 semaphore(%43 : memref<!tpu.dma_semaphore, #tpu.memory_space<semaphore_mem>>) src(%41 : memref<512x128xf32, #tpu.memory_space<any>>) dst(%arg6 : memref<512x128xf32, #tpu.memory_space<vmem>>)
      %c0_25 = arith.constant 0 : index
      %c0_26 = arith.constant 0 : index
      %44 = vector.load %arg6[%c0_25, %c0_26] : memref<512x128xf32, #tpu.memory_space<vmem>>, vector<512x128xf32>
      %45 = arith.mulf %44, %44 : vector<512x128xf32>
      %cst_27 = arith.constant dense<0.000000e+00> : vector<512xf32>
      %46 = vector.multi_reduction <add>, %45, %cst_27 [1] : vector<512x128xf32> to vector<512xf32>
      %47 = vector.shape_cast %46 : vector<512xf32> to vector<512x1xf32>
      %cst_28 = arith.constant 1.000000e-24 : f32
      %48 = vector.broadcast %cst_28 : f32 to vector<512x1xf32>
      %49 = arith.maximumf %47, %48 : vector<512x1xf32>
      %50 = math.rsqrt %49 : vector<512x1xf32>
      %cst_29 = arith.constant 2.000000e+00 : f32
      %51 = vector.broadcast %cst_29 : f32 to vector<512x1xf32>
      %52 = arith.mulf %50, %51 : vector<512x1xf32>
      %53 = vector.broadcast %52 : vector<512x1xf32> to vector<512x128xf32>
      %54 = arith.mulf %44, %53 : vector<512x128xf32>
      %55 = arith.truncf %54 : vector<512x128xf32> to vector<512x128xbf16>
      %c0_30 = arith.constant 0 : index
      %c0_31 = arith.constant 0 : index
      %56 = vector.load %arg5[%c0_30, %c0_31] : memref<512x128xbf16, #tpu.memory_space<vmem>>, vector<512x128xbf16>
      tpu.vector_store %arg5[%c0_30, %c0_31], %55 {strides = array<i32>} : memref<512x128xbf16, #tpu.memory_space<vmem>>, vector<512x128xbf16>,
    } else {
    }
    %c128_i32 = arith.constant 128 : i32
    %3 = arith.muli %arg0, %c128_i32 : i32
    %4 = tpu.assume_multiple %3, 128 : i32
    %c0 = arith.constant 0 : index
    %c0_1 = arith.constant 0 : index
    %5 = vector.load %arg5[%c0, %c0_1] : memref<512x128xbf16, #tpu.memory_space<vmem>>, vector<512x128xbf16>
    %6 = vector.extract_strided_slice %5 {offsets = [0, 0], sizes = [256, 128], strides = [1, 1]} : vector<512x128xbf16> to vector<256x128xbf16>
    %7 = arith.index_cast %4 : i32 to index
    %c0_2 = arith.constant 0 : index
    %8 = vector.load %arg5[%7, %c0_2] : memref<512x128xbf16, #tpu.memory_space<vmem>>, vector<128x128xbf16>
    %c256_i32 = arith.constant 256 : i32
    %9 = arith.addi %c256_i32, %4 : i32
    %10 = arith.index_cast %9 : i32 to index
    %c0_3 = arith.constant 0 : index
    %11 = vector.load %arg5[%10, %c0_3] : memref<512x128xbf16, #tpu.memory_space<vmem>>, vector<128x128xbf16>
    %cst = arith.constant dense<0.000000e+00> : vector<512x128xf32>
    %12 = tpu.matmul %5, %11, %cst {dimension_numbers = #tpu.dot_dimension_numbers<[1], [1], [0], [0], [0, 0, 1, 0], [], []>} : vector<512x128xbf16>, vector<128x128xbf16>, vector<512x128xf32> -> vector<512x128xf32>
    %cst_4 = arith.constant dense<0.000000e+00> : vector<256x128xf32>
    %13 = tpu.matmul %6, %8, %cst_4 {dimension_numbers = #tpu.dot_dimension_numbers<[1], [1], [0], [0], [0, 0, 1, 0], [], []>} : vector<256x128xbf16>, vector<128x128xbf16>, vector<256x128xf32> -> vector<256x128xf32>
    %cst_5 = arith.constant 4.000000e+00 : f32
    %14 = vector.broadcast %cst_5 : f32 to vector<512x128xf32>
    %15 = arith.subf %12, %14 : vector<512x128xf32>
    %cst_6 = arith.constant 0.000000e+00 : f32
    %16 = vector.broadcast %cst_6 : f32 to vector<512x128xf32>
    %17 = arith.minimumf %15, %16 : vector<512x128xf32>
    %18 = math.exp %17 : vector<512x128xf32>
    %cst_7 = arith.constant 4.000000e+00 : f32
    %19 = vector.broadcast %cst_7 : f32 to vector<256x128xf32>
    %20 = arith.subf %13, %19 : vector<256x128xf32>
    %cst_8 = arith.constant 0.000000e+00 : f32
    %21 = vector.broadcast %cst_8 : f32 to vector<256x128xf32>
    %22 = arith.minimumf %20, %21 : vector<256x128xf32>
    %23 = math.exp %22 : vector<256x128xf32>
    %c0_9 = arith.constant 0 : index
    %c0_10 = arith.constant 0 : index
    %24 = vector.load %arg7[%c0_9, %c0_10] : memref<256x128xf32, #tpu.memory_space<vmem>>, vector<256x128xf32>
    %25 = vector.extract_strided_slice %18 {offsets = [0, 0], sizes = [256, 128], strides = [1, 1]} : vector<512x128xf32> to vector<256x128xf32>
    %26 = arith.addf %25, %23 : vector<256x128xf32>
    %27 = arith.addf %24, %26 : vector<256x128xf32>
    %c0_11 = arith.constant 0 : index
    %c0_12 = arith.constant 0 : index
    %28 = vector.load %arg7[%c0_11, %c0_12] : memref<256x128xf32, #tpu.memory_space<vmem>>, vector<256x128xf32>
    tpu.vector_store %arg7[%c0_11, %c0_12], %27 {strides = array<i32>} : memref<256x128xf32, #tpu.memory_space<vmem>>, vector<256x128xf32>,
    %cst_13 = arith.constant dense<0.000000e+00> : vector<128xf32>
    %29 = vector.multi_reduction <add>, %18, %cst_13 [0] : vector<512x128xf32> to vector<128xf32>
    %30 = vector.shape_cast %29 : vector<128xf32> to vector<1x128xf32>
    %c0_14 = arith.constant 0 : index
    %31 = arith.index_cast %4 : i32 to index
    %32 = vector.load %arg8[%c0_14, %31] : memref<1x256xf32, #tpu.memory_space<vmem>>, vector<1x128xf32>
    tpu.vector_store %arg8[%c0_14, %31], %30 {strides = array<i32>} : memref<1x256xf32, #tpu.memory_space<vmem>>, vector<1x128xf32>,
    %c1_i32 = arith.constant 1 : i32
    %33 = arith.cmpi eq, %arg0, %c1_i32 : i32
    %34 = arith.extui %33 : i1 to i32
    %c0_i32_15 = arith.constant 0 : i32
    %35 = arith.cmpi ne, %34, %c0_i32_15 : i32
    scf.if %35 {
      %36 = vector.extract_strided_slice %5 {offsets = [0, 0], sizes = [256, 128], strides = [1, 1]} : vector<512x128xbf16> to vector<256x128xbf16>
      %37 = arith.extf %36 : vector<256x128xbf16> to vector<256x128xf32>
      %38 = vector.extract_strided_slice %5 {offsets = [256, 0], sizes = [256, 128], strides = [1, 1]} : vector<512x128xbf16> to vector<256x128xbf16>
      %39 = arith.extf %38 : vector<256x128xbf16> to vector<256x128xf32>
      %40 = arith.mulf %37, %39 : vector<256x128xf32>
      %cst_16 = arith.constant dense<0.000000e+00> : vector<256xf32>
      %41 = vector.multi_reduction <add>, %40, %cst_16 [1] : vector<256x128xf32> to vector<256xf32>
      %42 = vector.shape_cast %41 : vector<256xf32> to vector<256x1xf32>
      %43 = arith.mulf %37, %37 : vector<256x128xf32>
      %cst_17 = arith.constant dense<0.000000e+00> : vector<256xf32>
      %44 = vector.multi_reduction <add>, %43, %cst_17 [1] : vector<256x128xf32> to vector<256xf32>
      %45 = vector.shape_cast %44 : vector<256xf32> to vector<256x1xf32>
      %46 = arith.mulf %39, %39 : vector<256x128xf32>
      %cst_18 = arith.constant dense<0.000000e+00> : vector<256xf32>
      %47 = vector.multi_reduction <add>, %46, %cst_18 [1] : vector<256x128xf32> to vector<256xf32>
      %48 = vector.shape_cast %47 : vector<256xf32> to vector<256x1xf32>
      %cst_19 = arith.constant 4.000000e+00 : f32
      %49 = vector.broadcast %cst_19 : f32 to vector<256x1xf32>
      %50 = arith.subf %42, %49 : vector<256x1xf32>
      %cst_20 = arith.constant 0.000000e+00 : f32
      %51 = vector.broadcast %cst_20 : f32 to vector<256x1xf32>
      %52 = arith.minimumf %50, %51 : vector<256x1xf32>
      %53 = math.exp %52 : vector<256x1xf32>
      %cst_21 = arith.constant 4.000000e+00 : f32
      %54 = vector.broadcast %cst_21 : f32 to vector<256x1xf32>
      %55 = arith.subf %45, %54 : vector<256x1xf32>
      %cst_22 = arith.constant 0.000000e+00 : f32
      %56 = vector.broadcast %cst_22 : f32 to vector<256x1xf32>
      %57 = arith.minimumf %55, %56 : vector<256x1xf32>
      %58 = math.exp %57 : vector<256x1xf32>
      %cst_23 = arith.constant 4.000000e+00 : f32
      %59 = vector.broadcast %cst_23 : f32 to vector<256x1xf32>
      %60 = arith.subf %48, %59 : vector<256x1xf32>
      %cst_24 = arith.constant 0.000000e+00 : f32
      %61 = vector.broadcast %cst_24 : f32 to vector<256x1xf32>
      %62 = arith.minimumf %60, %61 : vector<256x1xf32>
      %63 = math.exp %62 : vector<256x1xf32>
      %c0_25 = arith.constant 0 : index
      %c0_26 = arith.constant 0 : index
      %64 = vector.load %arg7[%c0_25, %c0_26] : memref<256x128xf32, #tpu.memory_space<vmem>>, vector<256x128xf32>
      %cst_27 = arith.constant dense<0.000000e+00> : vector<256xf32>
      %65 = vector.multi_reduction <add>, %64, %cst_27 [1] : vector<256x128xf32> to vector<256xf32>
      %66 = vector.shape_cast %65 : vector<256xf32> to vector<256x1xf32>
      %67 = arith.subf %66, %53 : vector<256x1xf32>
      %68 = arith.subf %67, %58 : vector<256x1xf32>
      %cst_28 = arith.constant 0.000000e+00 : f32
      %69 = vector.broadcast %cst_28 : f32 to vector<256x1xf32>
      %70 = arith.maximumf %68, %69 : vector<256x1xf32>
      %71 = tpu.transpose %53, [1, 0] : vector<256x1xf32> -> vector<1x256xf32>
      %c0_29 = arith.constant 0 : index
      %c0_30 = arith.constant 0 : index
      %72 = vector.load %arg8[%c0_29, %c0_30] : memref<1x256xf32, #tpu.memory_space<vmem>>, vector<1x256xf32>
      %73 = arith.subf %72, %71 : vector<1x256xf32>
      %74 = tpu.transpose %63, [1, 0] : vector<256x1xf32> -> vector<1x256xf32>
      %75 = arith.subf %73, %74 : vector<1x256xf32>
      %cst_31 = arith.constant 0.000000e+00 : f32
      %76 = vector.broadcast %cst_31 : f32 to vector<1x256xf32>
      %77 = arith.maximumf %75, %76 : vector<1x256xf32>
      %78 = tpu.transpose %70, [1, 0] : vector<256x1xf32> -> vector<1x256xf32>
      %79 = arith.addf %78, %77 : vector<1x256xf32>
      %c0_32 = arith.constant 0 : index
      %c0_33 = arith.constant 0 : index
      %80 = vector.load %arg2[%c0_32, %c0_33] : memref<1x256xf32, #tpu.memory_space<vmem>>, vector<1x256xf32>
      %cst_34 = arith.constant 4.86373901E-4 : f32
      %81 = vector.broadcast %cst_34 : f32 to vector<1x256xf32>
      %82 = arith.mulf %80, %81 : vector<1x256xf32>
      %83 = vector.shape_cast %52 : vector<256x1xf32> to vector<1x256x1xf32>
      %cst_35 = arith.constant dense<0.000000e+00> : vector<1xf32>
      %84 = vector.multi_reduction <add>, %83, %cst_35 [1, 2] : vector<1x256x1xf32> to vector<1xf32>
      %85 = vector.shape_cast %84 : vector<1xf32> to vector<1x1x1xf32>
      %86 = vector.extract %85[0, 0, 0] : f32 from vector<1x1x1xf32>
      %cst_36 = arith.constant 0.000000e+00 : f32
      %87 = arith.subf %cst_36, %86 : f32
      %cst_37 = arith.constant 2.560000e+02 : f32
      %88 = arith.divf %87, %cst_37 : f32
      %89 = arith.divf %79, %82 : vector<1x256xf32>
      %90 = vector.shape_cast %89 : vector<1x256xf32> to vector<1x1x256xf32>
      %cst_38 = arith.constant dense<0.000000e+00> : vector<1xf32>
      %91 = vector.multi_reduction <add>, %90, %cst_38 [1, 2] : vector<1x1x256xf32> to vector<1xf32>
      %92 = vector.shape_cast %91 : vector<1xf32> to vector<1x1x1xf32>
      %93 = vector.extract %92[0, 0, 0] : f32 from vector<1x1x1xf32>
      %cst_39 = arith.constant 5.120000e+02 : f32
      %94 = arith.divf %93, %cst_39 : f32
      %95 = arith.addf %88, %94 : f32
      %c0_40 = arith.constant 0 : index
      %c0_41 = arith.constant 0 : index
      %96 = memref.load %arg3[%c0_40, %c0_41] : memref<1x1xf32, #tpu.memory_space<smem>>
      memref.store %95, %arg3[%c0_40, %c0_41] : memref<1x1xf32, #tpu.memory_space<smem>>
      %cst_42 = arith.constant 5.000000e-01 : f32
      %97 = vector.broadcast %cst_42 : f32 to vector<1x256xf32>
      %98 = arith.mulf %97, %71 : vector<1x256xf32>
      %cst_43 = arith.constant 5.000000e-01 : f32
      %99 = vector.broadcast %cst_43 : f32 to vector<1x256xf32>
      %100 = arith.mulf %99, %79 : vector<1x256xf32>
      %cst_44 = arith.constant 1.020000e+03 : f32
      %101 = vector.broadcast %cst_44 : f32 to vector<1x256xf32>
      %102 = arith.divf %100, %101 : vector<1x256xf32>
      %103 = arith.addf %98, %102 : vector<1x256xf32>
      %cst_45 = arith.constant 9.900000e-01 : f32
      %104 = vector.broadcast %cst_45 : f32 to vector<1x256xf32>
      %105 = arith.mulf %104, %80 : vector<1x256xf32>
      %cst_46 = arith.constant 10485.7598 : f32
      %106 = vector.broadcast %cst_46 : f32 to vector<1x256xf32>
      %107 = arith.mulf %106, %103 : vector<1x256xf32>
      %108 = arith.addf %105, %107 : vector<1x256xf32>
      %c0_47 = arith.constant 0 : index
      %c0_48 = arith.constant 0 : index
      %109 = vector.load %arg4[%c0_47, %c0_48] : memref<1x256xf32, #tpu.memory_space<vmem>>, vector<1x256xf32>
      tpu.vector_store %arg4[%c0_47, %c0_48], %108 {strides = array<i32>} : memref<1x256xf32, #tpu.memory_space<vmem>>, vector<1x256xf32>,
    } else {
    }
    return
  }
  func.func @transform_1(%arg0: i32) -> (i32, i32) {
    %c0_i32 = arith.constant 0 : i32
    %c0_i32_0 = arith.constant 0 : i32
    %c0_i32_1 = arith.constant 0 : i32
    return %c0_i32, %c0_i32_0 : i32, i32
  }
  func.func @transform_2(%arg0: i32) -> (i32, i32) {
    %c0_i32 = arith.constant 0 : i32
    %c0_i32_0 = arith.constant 0 : i32
    %c0_i32_1 = arith.constant 0 : i32
    return %c0_i32, %c0_i32_0 : i32, i32
  }
  func.func @transform_3(%arg0: i32) -> (i32, i32) {
    %c0_i32 = arith.constant 0 : i32
    %c0_i32_0 = arith.constant 0 : i32
    %c0_i32_1 = arith.constant 0 : i32
    return %c0_i32, %c0_i32_0 : i32, i32
  }
}

</mosaic_0001>

<bundles_post_ra>
// kernel: saclr_all_forward.1
= control target key start
LH: loop header
LB: loop body
LE: loop exit
PB: predicated region body
PF: predicated region fallthrough
CT: control target
= control target key end

     0   :  { %9 = vsyncpa [#allocation8], 0  ;;  %s5393_s12 = smov 0   ;;  %s7287_s0 = inlined_call_operand.vmem [shape: f32[512,128], index: 0, kind: input, shape index: {}]   ;;  %s7288_s1 = inlined_call_operand.vmem [shape: f32[1,256], index: 1, kind: input, shape index: {}]   ;;  %s7289_s2 = inlined_call_operand.hbm [shape: f32[1,1], index: 2, kind: output, shape index: {0}]   ;;  %s7290_s3 = inlined_call_operand.vmem [shape: f32[1,256], index: 3, kind: output, shape index: {1}]  }
   0x1 LB: > { %s5399_s13 = sadd.s32 4294967295, %s5368_s12   ;;  %p3967_p0 = scmp.ge.s32.totalorder %s5368_s12, 1  ;;  %s5368_s12 = sphi %s5393_s12, %s15_s12  }
   0x2   : > { %p97_p1 = scmp.lt.s32.totalorder %s5368_s12, 3 }
   0x4   : > { %p98_p2 = pnand %p3967_p0, %p97_p1 }
   0x6   : > { %101 = sbr.rel (%p98_p2) target bundleno = 1563 (0x61b), region = 24 }
   0xb   : > { %p3968_p3 = scmp.ne.s32.totalorder %s5399_s13, 0 }
   0xd   : > { %113 = sbr.rel (%p3968_p3) target bundleno = 337 (0x151), region = 28 }
  0x12   : > { %v5407_v0 = vld [vmem:[%s7287_s0] sm:$0xff]  ;;  %v5412_v1 = vld [vmem:[%s7287_s0 + $0x8] sm:$0xff]  ;;  %v5417_v2 = vld [vmem:[%s7287_s0 + $0x10] sm:$0xff]  ;;  %v5370_v3 = vmov 0.0  }
  0x13   : > { %7371 = vst [vmem:[#allocation12_spill] sm:$0xff] %v5417_v2  ;;  %114 = vst [vmem:[#allocation4 + $0xb0] sm:$0xff] %v5370_v3  ;;  %v5422_v4 = vld [vmem:[%s7287_s0 + $0x18] sm:$0xff]  ;;  %v5427_v5 = vld [vmem:[%s7287_s0 + $0x20] sm:$0xff] }
  0x14   : > { %115 = vst [vmem:[#allocation4] sm:$0xff] %v5370_v3  ;;  %116 = vst [vmem:[#allocation4 + $0xd8] sm:$0xff] %v5370_v3  ;;  %v5432_v6 = vld [vmem:[%s7287_s0 + $0x28] sm:$0xff]  ;;  %v5437_v7 = vld [vmem:[%s7287_s0 + $0x30] sm:$0xff] }
  0x15   : > { %117 = vst [vmem:[#allocation4 + $0x18] sm:$0xff] %v5370_v3  ;;  %118 = vst [vmem:[#allocation4 + $0x50] sm:$0xff] %v5370_v3  ;;  %v5442_v8 = vld [vmem:[%s7287_s0 + $0x38] sm:$0xff]  ;;  %v5447_v9 = vld [vmem:[%s7287_s0 + $0x40] sm:$0xff] }
  0x16   : > { %119 = vst [vmem:[#allocation4 + $0x68] sm:$0xff] %v5370_v3  ;;  %120 = vst [vmem:[#allocation4 + $0x30] sm:$0xff] %v5370_v3  ;;  %v5452_v10 = vld [vmem:[%s7287_s0 + $0x48] sm:$0xff]  ;;  %v5457_v11 = vld [vmem:[%s7287_s0 + $0x50] sm:$0xff] }
  0x17   : > { %121 = vst [vmem:[#allocation4 + $0x48] sm:$0xff] %v5370_v3  ;;  %122 = vst [vmem:[#allocation4 + $0x80] sm:$0xff] %v5370_v3  ;;  %v5462_v12 = vld [vmem:[%s7287_s0 + $0x58] sm:$0xff]  ;;  %v5467_v13 = vld [vmem:[%s7287_s0 + $0x60] sm:$0xff] }
  0x18   : > { %123 = vst [vmem:[#allocation4 + $0x88] sm:$0xff] %v5370_v3  ;;  %124 = vst [vmem:[#allocation4 + $0xe8] sm:$0xff] %v5370_v3  ;;  %v5472_v14 = vld [vmem:[%s7287_s0 + $0x68] sm:$0xff]  ;;  %v5477_v15 = vld [vmem:[%s7287_s0 + $0x70] sm:$0xff] }
  0x19   : > { %125 = vst [vmem:[#allocation4 + $0xb8] sm:$0xff] %v5370_v3  ;;  %126 = vst [vmem:[#allocation4 + $0x60] sm:$0xff] %v5370_v3  ;;  %v5482_v16 = vld [vmem:[%s7287_s0 + $0x78] sm:$0xff]  ;;  %v5487_v17 = vld [vmem:[%s7287_s0 + $0x80] sm:$0xff] }
  0x1a   : > { %127 = vst [vmem:[#allocation4 + $0xf0] sm:$0xff] %v5370_v3  ;;  %128 = vst [vmem:[#allocation4 + $0x8] sm:$0xff] %v5370_v3  ;;  %v5492_v18 = vld [vmem:[%s7287_s0 + $0x88] sm:$0xff]  ;;  %v5497_v19 = vld [vmem:[%s7287_s0 + $0x90] sm:$0xff] }
  0x1b   : > { %129 = vst [vmem:[#allocation4 + $0x78] sm:$0xff] %v5370_v3  ;;  %130 = vst [vmem:[#allocation4 + $0x38] sm:$0xff] %v5370_v3  ;;  %v5502_v20 = vld [vmem:[%s7287_s0 + $0x98] sm:$0xff]  ;;  %v5507_v21 = vld [vmem:[%s7287_s0 + $0xa0] sm:$0xff] }
  0x1c   : > { %131 = vst [vmem:[#allocation4 + $0x58] sm:$0xff] %v5370_v3  ;;  %132 = vst [vmem:[#allocation4 + $0x40] sm:$0xff] %v5370_v3  ;;  %v5512_v22 = vld [vmem:[%s7287_s0 + $0xa8] sm:$0xff]  ;;  %v5517_v23 = vld [vmem:[%s7287_s0 + $0xb0] sm:$0xff] }
  0x1d   : > { %133 = vst [vmem:[#allocation4 + $0xc8] sm:$0xff] %v5370_v3  ;;  %134 = vst [vmem:[#allocation4 + $0xe0] sm:$0xff] %v5370_v3  ;;  %v5522_v24 = vld [vmem:[%s7287_s0 + $0xb8] sm:$0xff]  ;;  %v5527_v25 = vld [vmem:[%s7287_s0 + $0xc0] sm:$0xff] }
  0x1e   : > { %135 = vst [vmem:[#allocation4 + $0x90] sm:$0xff] %v5370_v3  ;;  %136 = vst [vmem:[#allocation4 + $0x70] sm:$0xff] %v5370_v3  ;;  %v5532_v26 = vld [vmem:[%s7287_s0 + $0xc8] sm:$0xff]  ;;  %v5537_v27 = vld [vmem:[%s7287_s0 + $0xd0] sm:$0xff] }
  0x1f   : > { %137 = vst [vmem:[#allocation4 + $0xc0] sm:$0xff] %v5370_v3  ;;  %138 = vst [vmem:[#allocation4 + $0xa8] sm:$0xff] %v5370_v3  ;;  %v5542_v28 = vld [vmem:[%s7287_s0 + $0xd8] sm:$0xff]  ;;  %v5547_v29 = vld [vmem:[%s7287_s0 + $0xe0] sm:$0xff] }
  0x20   : > { %139 = vst [vmem:[#allocation4 + $0xd0] sm:$0xff] %v5370_v3  ;;  %140 = vst [vmem:[#allocation4 + $0x10] sm:$0xff] %v5370_v3  ;;  %v5552_v30 = vld [vmem:[%s7287_s0 + $0xe8] sm:$0xff]  ;;  %v5557_v31 = vld [vmem:[%s7287_s0 + $0xf0] sm:$0xff] }
  0x21   : > { %141 = vst [vmem:[#allocation4 + $0x28] sm:$0xff] %v5370_v3  ;;  %142 = vst [vmem:[#allocation4 + $0xa0] sm:$0xff] %v5370_v3  ;;  %v5562_v32 = vld [vmem:[%s7287_s0 + $0xf8] sm:$0xff]  ;;  %v5567_v33 = vld [vmem:[%s7287_s0 + $0x100] sm:$0xff] }
  0x22   : > { %143 = vst [vmem:[#allocation4 + $0xf8] sm:$0xff] %v5370_v3  ;;  %144 = vst [vmem:[#allocation4 + $0x20] sm:$0xff] %v5370_v3  ;;  %v5572_v34 = vld [vmem:[%s7287_s0 + $0x108] sm:$0xff]  ;;  %v5577_v35 = vld [vmem:[%s7287_s0 + $0x110] sm:$0xff] }
  0x23   : > { %145 = vst [vmem:[#allocation4 + $0x98] sm:$0xff] %v5370_v3  ;;  %v5582_v36 = vld [vmem:[%s7287_s0 + $0x118] sm:$0xff]  ;;  %v5587_v37 = vld [vmem:[%s7287_s0 + $0x120] sm:$0xff]  ;;  %v5592_v38 = vld [vmem:[%s7287_s0 + $0x128] sm:$0xff] }
  0x24   : > { %v5597_v39 = vld [vmem:[%s7287_s0 + $0x130] sm:$0xff]  ;;  %v5602_v40 = vld [vmem:[%s7287_s0 + $0x138] sm:$0xff]  ;;  %v5607_v41 = vld [vmem:[%s7287_s0 + $0x140] sm:$0xff] }
  0x25   : > { %v5612_v42 = vld [vmem:[%s7287_s0 + $0x148] sm:$0xff]  ;;  %v5617_v43 = vld [vmem:[%s7287_s0 + $0x150] sm:$0xff]  ;;  %v5622_v44 = vld [vmem:[%s7287_s0 + $0x158] sm:$0xff] }
  0x26   : > { %v5627_v45 = vld [vmem:[%s7287_s0 + $0x160] sm:$0xff]  ;;  %v5632_v46 = vld [vmem:[%s7287_s0 + $0x168] sm:$0xff]  ;;  %v5637_v47 = vld [vmem:[%s7287_s0 + $0x170] sm:$0xff] }
  0x27   : > { %7372 = vst [vmem:[#allocation13_spill] sm:$0xff] %v5627_v45  ;;  %7373 = vst [vmem:[#allocation14_spill] sm:$0xff] %v5632_v46  ;;  %v5642_v48 = vld [vmem:[%s7287_s0 + $0x178] sm:$0xff]  ;;  %v5647_v49 = vld [vmem:[%s7287_s0 + $0x180] sm:$0xff] }
  0x28   : > { %7374 = vst [vmem:[#allocation15_spill] sm:$0xff] %v5637_v47  ;;  %7375 = vst [vmem:[#allocation16_spill] sm:$0xff] %v5642_v48  ;;  %v5652_v50 = vld [vmem:[%s7287_s0 + $0x188] sm:$0xff]  ;;  %v5657_v51 = vld [vmem:[%s7287_s0 + $0x190] sm:$0xff] }
  0x29   : > { %7376 = vst [vmem:[#allocation17_spill] sm:$0xff] %v5647_v49  ;;  %7377 = vst [vmem:[#allocation18_spill] sm:$0xff] %v5652_v50  ;;  %v5662_v52 = vld [vmem:[%s7287_s0 + $0x198] sm:$0xff]  ;;  %v5667_v53 = vld [vmem:[%s7287_s0 + $0x1a0] sm:$0xff] }
  0x2a   : > { %7378 = vst [vmem:[#allocation19_spill] sm:$0xff] %v5657_v51  ;;  %7379 = vst [vmem:[#allocation20_spill] sm:$0xff] %v5662_v52  ;;  %v5672_v54 = vld [vmem:[%s7287_s0 + $0x1a8] sm:$0xff]  ;;  %v5677_v55 = vld [vmem:[%s7287_s0 + $0x1b0] sm:$0xff] }
  0x2b   : > { %7380 = vst [vmem:[#allocation21_spill] sm:$0xff] %v5667_v53  ;;  %7381 = vst [vmem:[#allocation22_spill] sm:$0xff] %v5672_v54  ;;  %v5682_v56 = vld [vmem:[%s7287_s0 + $0x1b8] sm:$0xff]  ;;  %v5687_v57 = vld [vmem:[%s7287_s0 + $0x1c0] sm:$0xff] }
  0x2c   : > { %7382 = vst [vmem:[#allocation23_spill] sm:$0xff] %v5677_v55  ;;  %7383 = vst [vmem:[#allocation24_spill] sm:$0xff] %v5682_v56  ;;  %v5692_v58 = vld [vmem:[%s7287_s0 + $0x1c8] sm:$0xff]  ;;  %v5697_v59 = vld [vmem:[%s7287_s0 + $0x1d0] sm:$0xff] }
  0x2d   : > { %7384 = vst [vmem:[#allocation25_spill] sm:$0xff] %v5687_v57  ;;  %7385 = vst [vmem:[#allocation26_spill] sm:$0xff] %v5692_v58  ;;  %v5702_v60 = vld [vmem:[%s7287_s0 + $0x1d8] sm:$0xff]  ;;  %v5707_v61 = vld [vmem:[%s7287_s0 + $0x1e0] sm:$0xff] }
  0x2e   : > { %7386 = vst [vmem:[#allocation27_spill] sm:$0xff] %v5697_v59  ;;  %7387 = vst [vmem:[#allocation28_spill] sm:$0xff] %v5702_v60  ;;  %v5712_v62 = vld [vmem:[%s7287_s0 + $0x1e8] sm:$0xff]  ;;  %v5717_v63 = vld [vmem:[%s7287_s0 + $0x1f0] sm:$0xff] }
  0x2f   : > { %7388 = vst [vmem:[#allocation29_spill] sm:$0xff] %v5707_v61  ;;  %7389 = vst [vmem:[#allocation30_spill] sm:$0xff] %v5712_v62  ;;  %v5722_v3 = vld [vmem:[%s7287_s0 + $0x1f8] sm:$0xff] }
  0x30   : > { %7390 = vst [vmem:[#allocation31_spill] sm:$0xff] %v5717_v63  ;;  %7391 = vst [vmem:[#allocation32_spill] sm:$0xff] %v5722_v3 }
  0x31   : > { %314 = vsyncadd [#allocation6], 8192  ;;  %v384_v59 = vmul.f32 %v5417_v2, %v5417_v2  ;;  %v382_v61 = vmul.f32 %v5407_v0, %v5407_v0 }
  0x32   : > { %5360 = dma.done.wait [#allocation6], 8192 }
  0x33   : > { %5361 = vsyncadd [#allocation6], 4294959104  ;;  %450 = vadd.xlane.f32.xlu1 %v384_v59  ;;  %446 = vadd.xlane.f32.xlu0 %v382_v61  ;;  %v385_v62 = vmul.f32 %v5422_v4, %v5422_v4  ;;  %v383_v63 = vmul.f32 %v5412_v1, %v5412_v1  ;;  %v387_v3 = vmul.f32 %v5432_v6, %v5432_v6 }
  0x34   : > { %v386_v2 = vmul.f32 %v5427_v5, %v5427_v5  ;;  %v389_v59 = vmul.f32 %v5442_v8, %v5442_v8  ;;  %v388_v61 = vmul.f32 %v5437_v7, %v5437_v7 }
  0x37   : > { %452 = vadd.xlane.f32.xlu1 %v385_v62  ;;  %448 = vadd.xlane.f32.xlu0 %v383_v63  ;;  %v391_v62 = vmul.f32 %v5452_v10, %v5452_v10  ;;  %v390_v63 = vmul.f32 %v5447_v9, %v5447_v9 }
  0x3b   : > { %456 = vadd.xlane.f32.xlu1 %v387_v3  ;;  %454 = vadd.xlane.f32.xlu0 %v386_v2  ;;  %v393_v3 = vmul.f32 %v5462_v12, %v5462_v12  ;;  %v392_v2 = vmul.f32 %v5457_v11, %v5457_v11 }
  0x3f   : > { %460 = vadd.xlane.f32.xlu1 %v389_v59  ;;  %458 = vadd.xlane.f32.xlu0 %v388_v61  ;;  %v395_v59 = vmul.f32 %v5472_v14, %v5472_v14  ;;  %v394_v61 = vmul.f32 %v5467_v13, %v5467_v13 }
  0x43   : > { %464 = vadd.xlane.f32.xlu1 %v391_v62  ;;  %462 = vadd.xlane.f32.xlu0 %v390_v63  ;;  %v397_v62 = vmul.f32 %v5482_v16, %v5482_v16  ;;  %v396_v63 = vmul.f32 %v5477_v15, %v5477_v15 }
  0x47   : > { %468 = vadd.xlane.f32.xlu1 %v393_v3  ;;  %466 = vadd.xlane.f32.xlu0 %v392_v2  ;;  %v399_v3 = vmul.f32 %v5492_v18, %v5492_v18  ;;  %v398_v2 = vmul.f32 %v5487_v17, %v5487_v17 }
  0x4b   : > { %472 = vadd.xlane.f32.xlu1 %v395_v59  ;;  %470 = vadd.xlane.f32.xlu0 %v394_v61  ;;  %v401_v59 = vmul.f32 %v5502_v20, %v5502_v20  ;;  %v400_v61 = vmul.f32 %v5497_v19, %v5497_v19 }
  0x4f   : > { %476 = vadd.xlane.f32.xlu1 %v397_v62  ;;  %474 = vadd.xlane.f32.xlu0 %v396_v63  ;;  %v403_v62 = vmul.f32 %v5512_v22, %v5512_v22  ;;  %v402_v63 = vmul.f32 %v5507_v21, %v5507_v21 }
  0x53   : > { %480 = vadd.xlane.f32.xlu1 %v399_v3  ;;  %478 = vadd.xlane.f32.xlu0 %v398_v2  ;;  %v405_v3 = vmul.f32 %v5522_v24, %v5522_v24  ;;  %v404_v2 = vmul.f32 %v5517_v23, %v5517_v23 }
  0x57   : > { %484 = vadd.xlane.f32.xlu1 %v401_v59  ;;  %482 = vadd.xlane.f32.xlu0 %v400_v61  ;;  %v407_v59 = vmul.f32 %v5532_v26, %v5532_v26  ;;  %v406_v61 = vmul.f32 %v5527_v25, %v5527_v25 }
  0x5b   : > { %488 = vadd.xlane.f32.xlu1 %v403_v62  ;;  %486 = vadd.xlane.f32.xlu0 %v402_v63  ;;  %v409_v62 = vmul.f32 %v5542_v28, %v5542_v28  ;;  %v408_v63 = vmul.f32 %v5537_v27, %v5537_v27 }
  0x5f   : > { %492 = vadd.xlane.f32.xlu1 %v405_v3  ;;  %490 = vadd.xlane.f32.xlu0 %v404_v2  ;;  %v411_v3 = vmul.f32 %v5552_v30, %v5552_v30  ;;  %v410_v2 = vmul.f32 %v5547_v29, %v5547_v29 }
  0x63   : > { %496 = vadd.xlane.f32.xlu1 %v407_v59  ;;  %494 = vadd.xlane.f32.xlu0 %v406_v61  ;;  %v413_v59 = vmul.f32 %v5562_v32, %v5562_v32  ;;  %v412_v61 = vmul.f32 %v5557_v31, %v5557_v31 }
  0x67   : > { %500 = vadd.xlane.f32.xlu1 %v409_v62  ;;  %498 = vadd.xlane.f32.xlu0 %v408_v63  ;;  %v415_v62 = vmul.f32 %v5572_v34, %v5572_v34  ;;  %v414_v63 = vmul.f32 %v5567_v33, %v5567_v33 }
  0x6b   : > { %504 = vadd.xlane.f32.xlu1 %v411_v3  ;;  %502 = vadd.xlane.f32.xlu0 %v410_v2  ;;  %v417_v3 = vmul.f32 %v5582_v36, %v5582_v36  ;;  %v416_v2 = vmul.f32 %v5577_v35, %v5577_v35 }
  0x6f   : > { %508 = vadd.xlane.f32.xlu1 %v413_v59  ;;  %506 = vadd.xlane.f32.xlu0 %v412_v61  ;;  %v419_v59 = vmul.f32 %v5592_v38, %v5592_v38  ;;  %v418_v61 = vmul.f32 %v5587_v37, %v5587_v37 }
  0x73   : > { %512 = vadd.xlane.f32.xlu1 %v415_v62  ;;  %510 = vadd.xlane.f32.xlu0 %v414_v63  ;;  %v421_v62 = vmul.f32 %v5602_v40, %v5602_v40  ;;  %v420_v63 = vmul.f32 %v5597_v39, %v5597_v39 }
  0x77   : > { %516 = vadd.xlane.f32.xlu1 %v417_v3  ;;  %514 = vadd.xlane.f32.xlu0 %v416_v2  ;;  %v423_v3 = vmul.f32 %v5612_v42, %v5612_v42  ;;  %v422_v2 = vmul.f32 %v5607_v41, %v5607_v41 }
  0x7b   : > { %520 = vadd.xlane.f32.xlu1 %v419_v59  ;;  %518 = vadd.xlane.f32.xlu0 %v418_v61  ;;  %v425_v59 = vmul.f32 %v5622_v44, %v5622_v44  ;;  %v424_v61 = vmul.f32 %v5617_v43, %v5617_v43 }
  0x7f   : > { %524 = vadd.xlane.f32.xlu1 %v421_v62  ;;  %522 = vadd.xlane.f32.xlu0 %v420_v63  ;;  %v427_v62 = vmul.f32 %v5632_v46, %v5632_v46  ;;  %v426_v63 = vmul.f32 %v5627_v45, %v5627_v45 }
  0x83   : > { %528 = vadd.xlane.f32.xlu1 %v423_v3  ;;  %526 = vadd.xlane.f32.xlu0 %v422_v2  ;;  %v429_v3 = vmul.f32 %v5642_v48, %v5642_v48  ;;  %v428_v2 = vmul.f32 %v5637_v47, %v5637_v47 }
  0x87   : > { %532 = vadd.xlane.f32.xlu1 %v425_v59  ;;  %530 = vadd.xlane.f32.xlu0 %v424_v61  ;;  %v431_v59 = vmul.f32 %v5652_v50, %v5652_v50  ;;  %v430_v61 = vmul.f32 %v5647_v49, %v5647_v49 }
  0x8b   : > { %536 = vadd.xlane.f32.xlu1 %v427_v62  ;;  %534 = vadd.xlane.f32.xlu0 %v426_v63  ;;  %v433_v62 = vmul.f32 %v5662_v52, %v5662_v52  ;;  %v432_v63 = vmul.f32 %v5657_v51, %v5657_v51 }
  0x8f   : > { %540 = vadd.xlane.f32.xlu1 %v429_v3  ;;  %538 = vadd.xlane.f32.xlu0 %v428_v2  ;;  %v435_v3 = vmul.f32 %v5672_v54, %v5672_v54  ;;  %v434_v2 = vmul.f32 %v5667_v53, %v5667_v53 }
  0x93   : > { %544 = vadd.xlane.f32.xlu1 %v431_v59  ;;  %542 = vadd.xlane.f32.xlu0 %v430_v61  ;;  %v437_v59 = vmul.f32 %v5682_v56, %v5682_v56  ;;  %v436_v61 = vmul.f32 %v5677_v55, %v5677_v55  ;;  %v7393_v56 = vld [vmem:[#allocation30_spill] sm:$0xff] }
  0x97   : > { %548 = vadd.xlane.f32.xlu1 %v433_v62  ;;  %546 = vadd.xlane.f32.xlu0 %v432_v63  ;;  %v439_v62 = vmul.f32 %v5692_v58, %v5692_v58  ;;  %v438_v63 = vmul.f32 %v5687_v57, %v5687_v57  ;;  %v7395_v58 = vld [vmem:[#allocation32_spill] sm:$0xff] }
  0x9b   : > { %552 = vadd.xlane.f32.xlu1 %v435_v3  ;;  %550 = vadd.xlane.f32.xlu0 %v434_v2  ;;  %v441_v3 = vmul.f32 %v5702_v60, %v5702_v60  ;;  %v7392_v2 = vld [vmem:[#allocation27_spill] sm:$0xff] }
  0x9c   : > { %v440_v53 = vmul.f32 %v7392_v2, %v7392_v2 }
  0x9f   : > { %556 = vadd.xlane.f32.xlu1 %v437_v59  ;;  %554 = vadd.xlane.f32.xlu0 %v436_v61  ;;  %v443_v59 = vmul.f32 %v7393_v56, %v7393_v56  ;;  %v7394_v61 = vld [vmem:[#allocation29_spill] sm:$0xff] }
  0xa0   : > { %v442_v55 = vmul.f32 %v7394_v61, %v7394_v61 }
  0xa3   : > { %560 = vadd.xlane.f32.xlu1 %v439_v62  ;;  %558 = vadd.xlane.f32.xlu0 %v438_v63  ;;  %v445_v62 = vmul.f32 %v7395_v58, %v7395_v58  ;;  %v7396_v63 = vld [vmem:[#allocation31_spill] sm:$0xff] }
  0xa4   : > { %v444_v57 = vmul.f32 %v7396_v63, %v7396_v63 }
  0xa7   : > { %564 = vadd.xlane.f32.xlu1 %v441_v3  ;;  %562 = vadd.xlane.f32.xlu0 %v440_v53 }
  0xab   : > { %568 = vadd.xlane.f32.xlu1 %v443_v59  ;;  %566 = vadd.xlane.f32.xlu0 %v442_v55 }
  0xaf   : > { %572 = vadd.xlane.f32.xlu1 %v445_v62  ;;  %570 = vadd.xlane.f32.xlu0 %v444_v57 }
  0xbc   : > { %v451_v60 = vpop.xlane.xlu1 %450  ;;  %v447_v2 = vpop.xlane.xlu0 %446 }
  0xbd   : > { %v576_v3 = vmax.f32 %v451_v60, 1e-24  ;;  %v574_v53 = vmax.f32 %v447_v2, 1e-24 }
  0xbf   : > { %4750 = vrsqrt.f32 %v576_v3 }
  0xc0   : > { %4752 = vrsqrt.f32 %v574_v53  ;;  %v453_v56 = vpop.xlane.xlu1 %452  ;;  %v449_v54 = vpop.xlane.xlu0 %448 }
  0xc1   : > { %v577_v51 = vmax.f32 %v453_v56, 1e-24  ;;  %v575_v61 = vmax.f32 %v449_v54, 1e-24 }
  0xc3   : > { %4754 = vrsqrt.f32 %v577_v51 }
  0xc4   : > { %4756 = vrsqrt.f32 %v575_v61  ;;  %v457_v55 = vpop.xlane.xlu1 %456  ;;  %v455_v59 = vpop.xlane.xlu0 %454 }
  0xc5   : > { %v579_v58 = vmax.f32 %v457_v55, 1e-24  ;;  %v578_v52 = vmax.f32 %v455_v59, 1e-24 }
  0xc7   : > { %4758 = vrsqrt.f32 %v579_v58 }
  0xc8   : > { %4760 = vrsqrt.f32 %v578_v52  ;;  %v461_v62 = vpop.xlane.xlu1 %460  ;;  %v459_v57 = vpop.xlane.xlu0 %458 }
  0xc9   : > { %v581_v63 = vmax.f32 %v461_v62, 1e-24  ;;  %v580_v49 = vmax.f32 %v459_v57, 1e-24 }
  0xcb   : > { %4762 = vrsqrt.f32 %v581_v63  ;;  %v7397_v63 = vld [vmem:[#allocation12_spill] sm:$0xff] }
  0xcc   : > { %v4751_v60 = vpop.eup %4750  ;;  %4764 = vrsqrt.f32 %v580_v49  ;;  %v465_v2 = vpop.xlane.xlu1 %464 }
  0xcd   : > { %v463_v3 = vpop.xlane.xlu0 %462  ;;  %v4753_v53 = vpop.eup %4752  ;;  %v583_v56 = vmax.f32 %v465_v2, 1e-24  ;;  %v704_v51 = vmul.f32 2.0, %v4751_v60 }
  0xce   : > { %v582_v54 = vmax.f32 %v463_v3, 1e-24  ;;  %v702_v50 = vmul.f32 2.0, %v4753_v53 }
  0xcf   : > { %4766 = vrsqrt.f32 %v583_v56  ;;  %v768_v48 = vmul.f32 %v704_v51, %v7397_v63 }
  0xd0   : > { %v4755_v61 = vpop.eup %4754  ;;  %4768 = vrsqrt.f32 %v582_v54  ;;  %v469_v55 = vpop.xlane.xlu1 %468  ;;  %v766_v2 = vmul.f32 %v702_v50, %v5407_v0 }
  0xd1   : > { %v467_v58 = vpop.xlane.xlu0 %466  ;;  %v4757_v52 = vpop.eup %4756  ;;  %v705_v59 = vmul.f32 2.0, %v4755_v61  ;;  %v585_v47 = vmax.f32 %v469_v55, 1e-24 }
  0xd2   : > { %v584_v62 = vmax.f32 %v467_v58, 1e-24  ;;  %v703_v57 = vmul.f32 2.0, %v4757_v52 }
  0xd3   : > { %v769_v49 = vmul.f32 %v705_v59, %v5422_v4  ;;  %4770 = vrsqrt.f32 %v585_v47 }
  0xd4   : > { %v4759_v45 = vpop.eup %4758  ;;  %v767_v60 = vmul.f32 %v703_v57, %v5412_v1  ;;  %4772 = vrsqrt.f32 %v584_v62  ;;  %v473_v3 = vpop.xlane.xlu1 %472 }
  0xd5   : > { %v471_v53 = vpop.xlane.xlu0 %470  ;;  %v4761_v56 = vpop.eup %4760  ;;  %v4354_v54 = vpack.c.bf16 %v769_v49, %v768_v48  ;;  %v707_v46 = vmul.f32 2.0, %v4759_v45  ;;  %v587_v61 = vmax.f32 %v473_v3, 1e-24 }
  0xd6   : > { %v586_v55 = vmax.f32 %v471_v53, 1e-24  ;;  %v4349_v58 = vpack.c.bf16 %v767_v60, %v766_v2  ;;  %v706_v52 = vmul.f32 2.0, %v4761_v56 }
  0xd7   : > { %v771_v51 = vmul.f32 %v707_v46, %v5432_v6  ;;  %4774 = vrsqrt.f32 %v587_v61  ;;  %4506 = vst [vmem:[#allocation2 + $0x8] sm:$0xff] %v4354_v54  }
  0xd8   : > { %v4763_v4 = vpop.eup %4762  ;;  %v770_v47 = vmul.f32 %v706_v52, %v5427_v5  ;;  %4776 = vrsqrt.f32 %v586_v55  ;;  %4350 = vst [vmem:[#allocation2] sm:$0xff] %v4349_v58   ;;  %v477_v0 = vpop.xlane.xlu1 %476 }
  0xd9   : > { %v475_v1 = vpop.xlane.xlu0 %474  ;;  %v4765_v50 = vpop.eup %4764  ;;  %v709_v59 = vmul.f32 2.0, %v4763_v4  ;;  %v589_v62 = vmax.f32 %v477_v0, 1e-24 }
  0xda   : > { %v588_v48 = vmax.f32 %v475_v1, 1e-24  ;;  %v4359_v45 = vpack.c.bf16 %v771_v51, %v770_v47  ;;  %v708_v57 = vmul.f32 2.0, %v4765_v50 }
  0xdb   : > { %v773_v63 = vmul.f32 %v709_v59, %v5442_v8  ;;  %4778 = vrsqrt.f32 %v589_v62 }
  0xdc   : > { %v4767_v49 = vpop.eup %4766  ;;  %v772_v6 = vmul.f32 %v708_v57, %v5437_v7  ;;  %4507 = vst [vmem:[#allocation2 + $0x10] sm:$0xff] %v4359_v45   ;;  %4780 = vrsqrt.f32 %v588_v48  ;;  %v481_v46 = vpop.xlane.xlu1 %480 }
  0xdd   : > { %v479_v5 = vpop.xlane.xlu0 %478  ;;  %v4769_v2 = vpop.eup %4768  ;;  %v711_v60 = vmul.f32 2.0, %v4767_v49  ;;  %v591_v3 = vmax.f32 %v481_v46, 1e-24 }
  0xde   : > { %v590_v53 = vmax.f32 %v479_v5, 1e-24  ;;  %v4364_v56 = vpack.c.bf16 %v773_v63, %v772_v6  ;;  %v710_v54 = vmul.f32 2.0, %v4769_v2 }
  0xdf   : > { %v775_v61 = vmul.f32 %v711_v60, %v5452_v10  ;;  %4782 = vrsqrt.f32 %v591_v3 }
  0xe0   : > { %v4771_v55 = vpop.eup %4770  ;;  %v774_v8 = vmul.f32 %v710_v54, %v5447_v9  ;;  %4508 = vst [vmem:[#allocation2 + $0x18] sm:$0xff] %v4364_v56   ;;  %4784 = vrsqrt.f32 %v590_v53  ;;  %v485_v58 = vpop.xlane.xlu1 %484 }
  0xe1   : > { %v483_v7 = vpop.xlane.xlu0 %482  ;;  %v4773_v52 = vpop.eup %4772  ;;  %v713_v51 = vmul.f32 2.0, %v4771_v55  ;;  %v593_v4 = vmax.f32 %v485_v58, 1e-24 }
  0xe2   : > { %v592_v47 = vmax.f32 %v483_v7, 1e-24  ;;  %v4369_v0 = vpack.c.bf16 %v775_v61, %v774_v8  ;;  %v712_v1 = vmul.f32 2.0, %v4773_v52 }
  0xe3   : > { %v777_v50 = vmul.f32 %v713_v51, %v5462_v12  ;;  %4786 = vrsqrt.f32 %v593_v4 }
  0xe4   : > { %v4775_v59 = vpop.eup %4774  ;;  %v776_v10 = vmul.f32 %v712_v1, %v5457_v11  ;;  %4509 = vst [vmem:[#allocation2 + $0x20] sm:$0xff] %v4369_v0   ;;  %4788 = vrsqrt.f32 %v592_v47  ;;  %v489_v62 = vpop.xlane.xlu1 %488 }
  0xe5   : > { %v487_v9 = vpop.xlane.xlu0 %486  ;;  %v4777_v48 = vpop.eup %4776  ;;  %v715_v45 = vmul.f32 2.0, %v4775_v59  ;;  %v595_v57 = vmax.f32 %v489_v62, 1e-24 }
  0xe6   : > { %v594_v63 = vmax.f32 %v487_v9, 1e-24  ;;  %v4374_v49 = vpack.c.bf16 %v777_v50, %v776_v10  ;;  %v714_v6 = vmul.f32 2.0, %v4777_v48 }
  0xe7   : > { %v779_v46 = vmul.f32 %v715_v45, %v5472_v14  ;;  %4790 = vrsqrt.f32 %v595_v57 }
  0xe8   : > { %v4779_v5 = vpop.eup %4778  ;;  %v778_v12 = vmul.f32 %v714_v6, %v5467_v13  ;;  %4510 = vst [vmem:[#allocation2 + $0x28] sm:$0xff] %v4374_v49   ;;  %4792 = vrsqrt.f32 %v594_v63  ;;  %v493_v2 = vpop.xlane.xlu1 %492 }
  0xe9   : > { %v491_v11 = vpop.xlane.xlu0 %490  ;;  %v4781_v60 = vpop.eup %4780  ;;  %v717_v3 = vmul.f32 2.0, %v4779_v5  ;;  %v597_v53 = vmax.f32 %v493_v2, 1e-24 }
  0xea   : > { %v596_v56 = vmax.f32 %v491_v11, 1e-24  ;;  %v4379_v54 = vpack.c.bf16 %v779_v46, %v778_v12  ;;  %v716_v61 = vmul.f32 2.0, %v4781_v60 }
  0xeb   : > { %v781_v55 = vmul.f32 %v717_v3, %v5482_v16  ;;  %4794 = vrsqrt.f32 %v597_v53 }
  0xec   : > { %v4783_v8 = vpop.eup %4782  ;;  %4511 = vst [vmem:[#allocation2 + $0x30] sm:$0xff] %v4379_v54   ;;  %v780_v14 = vmul.f32 %v716_v61, %v5477_v15  ;;  %4796 = vrsqrt.f32 %v596_v56  ;;  %v497_v58 = vpop.xlane.xlu1 %496 }
  0xed   : > { %v495_v13 = vpop.xlane.xlu0 %494  ;;  %v4785_v7 = vpop.eup %4784  ;;  %v719_v52 = vmul.f32 2.0, %v4783_v8  ;;  %v599_v51 = vmax.f32 %v497_v58, 1e-24 }
  0xee   : > { %v598_v4 = vmax.f32 %v495_v13, 1e-24  ;;  %v4384_v47 = vpack.c.bf16 %v781_v55, %v780_v14  ;;  %v718_v0 = vmul.f32 2.0, %v4785_v7 }
  0xef   : > { %v783_v1 = vmul.f32 %v719_v52, %v5492_v18  ;;  %4798 = vrsqrt.f32 %v599_v51 }
  0xf0   : > { %v4787_v50 = vpop.eup %4786  ;;  %4512 = vst [vmem:[#allocation2 + $0x38] sm:$0xff] %v4384_v47   ;;  %v782_v16 = vmul.f32 %v718_v0, %v5487_v17  ;;  %4800 = vrsqrt.f32 %v598_v4  ;;  %v501_v59 = vpop.xlane.xlu1 %500 }
  0xf1   : > { %v499_v10 = vpop.xlane.xlu0 %498  ;;  %v4789_v15 = vpop.eup %4788  ;;  %v721_v62 = vmul.f32 2.0, %v4787_v50  ;;  %v601_v9 = vmax.f32 %v501_v59, 1e-24 }
  0xf2   : > { %v600_v48 = vmax.f32 %v499_v10, 1e-24  ;;  %v4389_v45 = vpack.c.bf16 %v783_v1, %v782_v16  ;;  %v720_v57 = vmul.f32 2.0, %v4789_v15 }
  0xf3   : > { %v785_v63 = vmul.f32 %v721_v62, %v5502_v20  ;;  %4802 = vrsqrt.f32 %v601_v9 }
  0xf4   : > { %v4791_v49 = vpop.eup %4790  ;;  %4513 = vst [vmem:[#allocation2 + $0x40] sm:$0xff] %v4389_v45   ;;  %v784_v18 = vmul.f32 %v720_v57, %v5497_v19  ;;  %4804 = vrsqrt.f32 %v600_v48  ;;  %v505_v6 = vpop.xlane.xlu1 %504 }
  0xf5   : > { %v503_v46 = vpop.xlane.xlu0 %502  ;;  %v4793_v17 = vpop.eup %4792  ;;  %v723_v5 = vmul.f32 2.0, %v4791_v49  ;;  %v603_v12 = vmax.f32 %v505_v6, 1e-24 }
  0xf6   : > { %v602_v2 = vmax.f32 %v503_v46, 1e-24  ;;  %v4394_v11 = vpack.c.bf16 %v785_v63, %v784_v18  ;;  %v722_v60 = vmul.f32 2.0, %v4793_v17 }
  0xf7   : > { %v787_v3 = vmul.f32 %v723_v5, %v5512_v22  ;;  %4806 = vrsqrt.f32 %v603_v12 }
  0xf8   : > { %v4795_v53 = vpop.eup %4794  ;;  %4514 = vst [vmem:[#allocation2 + $0x48] sm:$0xff] %v4394_v11   ;;  %v786_v20 = vmul.f32 %v722_v60, %v5507_v21  ;;  %4808 = vrsqrt.f32 %v602_v2  ;;  %v509_v56 = vpop.xlane.xlu1 %508 }
  0xf9   : > { %v507_v54 = vpop.xlane.xlu0 %506  ;;  %v4797_v19 = vpop.eup %4796  ;;  %v725_v61 = vmul.f32 2.0, %v4795_v53  ;;  %v605_v55 = vmax.f32 %v509_v56, 1e-24 }
  0xfa   : > { %v604_v8 = vmax.f32 %v507_v54, 1e-24  ;;  %v4399_v14 = vpack.c.bf16 %v787_v3, %v786_v20  ;;  %v724_v58 = vmul.f32 2.0, %v4797_v19 }
  0xfb   : > { %v789_v13 = vmul.f32 %v725_v61, %v5522_v24  ;;  %4810 = vrsqrt.f32 %v605_v55 }
  0xfc   : > { %v4799_v7 = vpop.eup %4798  ;;  %4515 = vst [vmem:[#allocation2 + $0x50] sm:$0xff] %v4399_v14   ;;  %v788_v22 = vmul.f32 %v724_v58, %v5517_v23  ;;  %4812 = vrsqrt.f32 %v604_v8  ;;  %v513_v52 = vpop.xlane.xlu1 %512 }
  0xfd   : > { %v511_v51 = vpop.xlane.xlu0 %510  ;;  %v4801_v21 = vpop.eup %4800  ;;  %v727_v4 = vmul.f32 2.0, %v4799_v7  ;;  %v607_v47 = vmax.f32 %v513_v52, 1e-24 }
  0xfe   : > { %v606_v0 = vmax.f32 %v511_v51, 1e-24  ;;  %v4404_v1 = vpack.c.bf16 %v789_v13, %v788_v22  ;;  %v726_v50 = vmul.f32 2.0, %v4801_v21 }
  0xff   : > { %v791_v16 = vmul.f32 %v727_v4, %v5532_v26  ;;  %4814 = vrsqrt.f32 %v607_v47 }
 0x100   : > { %v4803_v59 = vpop.eup %4802  ;;  %4516 = vst [vmem:[#allocation2 + $0x58] sm:$0xff] %v4404_v1   ;;  %v790_v24 = vmul.f32 %v726_v50, %v5527_v25  ;;  %4816 = vrsqrt.f32 %v606_v0  ;;  %v517_v10 = vpop.xlane.xlu1 %516 }
 0x101   : > { %v515_v15 = vpop.xlane.xlu0 %514  ;;  %v4805_v23 = vpop.eup %4804  ;;  %v729_v62 = vmul.f32 2.0, %v4803_v59  ;;  %v609_v9 = vmax.f32 %v517_v10, 1e-24 }
 0x102   : > { %v608_v48 = vmax.f32 %v515_v15, 1e-24  ;;  %v4409_v45 = vpack.c.bf16 %v791_v16, %v790_v24  ;;  %v728_v57 = vmul.f32 2.0, %v4805_v23 }
 0x103   : > { %v793_v63 = vmul.f32 %v729_v62, %v5542_v28  ;;  %4818 = vrsqrt.f32 %v609_v9 }
 0x104   : > { %v4807_v49 = vpop.eup %4806  ;;  %4517 = vst [vmem:[#allocation2 + $0x60] sm:$0xff] %v4409_v45   ;;  %v792_v26 = vmul.f32 %v728_v57, %v5537_v27  ;;  %4820 = vrsqrt.f32 %v608_v48  ;;  %v521_v18 = vpop.xlane.xlu1 %520 }
 0x105   : > { %v519_v6 = vpop.xlane.xlu0 %518  ;;  %v4809_v25 = vpop.eup %4808  ;;  %v731_v46 = vmul.f32 2.0, %v4807_v49  ;;  %v611_v17 = vmax.f32 %v521_v18, 1e-24 }
 0x106   : > { %v610_v5 = vmax.f32 %v519_v6, 1e-24  ;;  %v4414_v12 = vpack.c.bf16 %v793_v63, %v792_v26  ;;  %v730_v2 = vmul.f32 2.0, %v4809_v25 }
 0x107   : > { %v795_v11 = vmul.f32 %v731_v46, %v5552_v30  ;;  %4822 = vrsqrt.f32 %v611_v17 }
 0x108   : > { %v4811_v60 = vpop.eup %4810  ;;  %4518 = vst [vmem:[#allocation2 + $0x68] sm:$0xff] %v4414_v12   ;;  %v794_v28 = vmul.f32 %v730_v2, %v5547_v29  ;;  %4824 = vrsqrt.f32 %v610_v5  ;;  %v525_v3 = vpop.xlane.xlu1 %524 }
 0x109   : > { %v523_v53 = vpop.xlane.xlu0 %522  ;;  %v4813_v27 = vpop.eup %4812  ;;  %v733_v20 = vmul.f32 2.0, %v4811_v60  ;;  %v613_v56 = vmax.f32 %v525_v3, 1e-24 }
 0x10a   : > { %v612_v54 = vmax.f32 %v523_v53, 1e-24  ;;  %v4419_v19 = vpack.c.bf16 %v795_v11, %v794_v28  ;;  %v732_v61 = vmul.f32 2.0, %v4813_v27 }
 0x10b   : > { %v797_v55 = vmul.f32 %v733_v20, %v5562_v32  ;;  %4826 = vrsqrt.f32 %v613_v56 }
 0x10c   : > { %v4815_v8 = vpop.eup %4814  ;;  %4519 = vst [vmem:[#allocation2 + $0x70] sm:$0xff] %v4419_v19   ;;  %v796_v30 = vmul.f32 %v732_v61, %v5557_v31  ;;  %4828 = vrsqrt.f32 %v612_v54  ;;  %v529_v14 = vpop.xlane.xlu1 %528 }
 0x10d   : > { %v527_v58 = vpop.xlane.xlu0 %526  ;;  %v4817_v29 = vpop.eup %4816  ;;  %v735_v13 = vmul.f32 2.0, %v4815_v8  ;;  %v615_v7 = vmax.f32 %v529_v14, 1e-24 }
 0x10e   : > { %v614_v22 = vmax.f32 %v527_v58, 1e-24  ;;  %v4424_v52 = vpack.c.bf16 %v797_v55, %v796_v30  ;;  %v734_v51 = vmul.f32 2.0, %v4817_v29 }
 0x10f   : > { %v799_v21 = vmul.f32 %v735_v13, %v5572_v34  ;;  %4830 = vrsqrt.f32 %v615_v7 }
 0x110   : > { %v4819_v4 = vpop.eup %4818  ;;  %4520 = vst [vmem:[#allocation2 + $0x78] sm:$0xff] %v4424_v52   ;;  %v798_v32 = vmul.f32 %v734_v51, %v5567_v33  ;;  %4832 = vrsqrt.f32 %v614_v22  ;;  %v533_v47 = vpop.xlane.xlu1 %532 }
 0x111   : > { %v531_v0 = vpop.xlane.xlu0 %530  ;;  %v4821_v31 = vpop.eup %4820  ;;  %v737_v1 = vmul.f32 2.0, %v4819_v4  ;;  %v617_v50 = vmax.f32 %v533_v47, 1e-24 }
 0x112   : > { %v616_v16 = vmax.f32 %v531_v0, 1e-24  ;;  %v4429_v59 = vpack.c.bf16 %v799_v21, %v798_v32  ;;  %v736_v24 = vmul.f32 2.0, %v4821_v31  ;;  %v7398_v0 = vld [vmem:[#allocation14_spill] sm:$0xff] }
 0x113   : > { %v801_v10 = vmul.f32 %v737_v1, %v5582_v36  ;;  %4834 = vrsqrt.f32 %v617_v50 }
 0x114   : > { %v4823_v15 = vpop.eup %4822  ;;  %4521 = vst [vmem:[#allocation2 + $0x80] sm:$0xff] %v4429_v59   ;;  %v800_v34 = vmul.f32 %v736_v24, %v5577_v35  ;;  %4836 = vrsqrt.f32 %v616_v16  ;;  %v537_v23 = vpop.xlane.xlu1 %536 }
 0x115   : > { %v535_v62 = vpop.xlane.xlu0 %534  ;;  %v4825_v33 = vpop.eup %4824  ;;  %v739_v9 = vmul.f32 2.0, %v4823_v15  ;;  %v619_v48 = vmax.f32 %v537_v23, 1e-24 }
 0x116   : > { %v618_v45 = vmax.f32 %v535_v62, 1e-24  ;;  %v4434_v57 = vpack.c.bf16 %v801_v10, %v800_v34  ;;  %v738_v63 = vmul.f32 2.0, %v4825_v33  ;;  %v7400_v62 = vld [vmem:[#allocation16_spill] sm:$0xff] }
 0x117   : > { %v803_v49 = vmul.f32 %v739_v9, %v5592_v38  ;;  %4838 = vrsqrt.f32 %v619_v48  ;;  %v7401_v48 = vld [vmem:[#allocation15_spill] sm:$0xff] }
 0x118   : > { %v4827_v26 = vpop.eup %4826  ;;  %4522 = vst [vmem:[#allocation2 + $0x88] sm:$0xff] %v4434_v57   ;;  %v802_v36 = vmul.f32 %v738_v63, %v5587_v37  ;;  %4840 = vrsqrt.f32 %v618_v45  ;;  %v541_v18 = vpop.xlane.xlu1 %540 }
 0x119   : > { %v539_v6 = vpop.xlane.xlu0 %538  ;;  %v4829_v35 = vpop.eup %4828  ;;  %v741_v25 = vmul.f32 2.0, %v4827_v26  ;;  %v621_v46 = vmax.f32 %v541_v18, 1e-24 }
 0x11a   : > { %v620_v17 = vmax.f32 %v539_v6, 1e-24  ;;  %v4439_v5 = vpack.c.bf16 %v803_v49, %v802_v36  ;;  %v740_v12 = vmul.f32 2.0, %v4829_v35 }
 0x11b   : > { %v805_v2 = vmul.f32 %v741_v25, %v5602_v40  ;;  %4842 = vrsqrt.f32 %v621_v46  ;;  %v7402_v25 = vld [vmem:[#allocation18_spill] sm:$0xff] }
 0x11c   : > { %v4831_v11 = vpop.eup %4830  ;;  %4523 = vst [vmem:[#allocation2 + $0x90] sm:$0xff] %v4439_v5   ;;  %v804_v38 = vmul.f32 %v740_v12, %v5597_v39  ;;  %4844 = vrsqrt.f32 %v620_v17  ;;  %v545_v60 = vpop.xlane.xlu1 %544  ;;  %v7403_v5 = vld [vmem:[#allocation17_spill] sm:$0xff] }
 0x11d   : > { %v543_v28 = vpop.xlane.xlu0 %542  ;;  %v4833_v37 = vpop.eup %4832  ;;  %v743_v3 = vmul.f32 2.0, %v4831_v11  ;;  %v623_v53 = vmax.f32 %v545_v60, 1e-24 }
 0x11e   : > { %v622_v27 = vmax.f32 %v543_v28, 1e-24  ;;  %v4444_v20 = vpack.c.bf16 %v805_v2, %v804_v38  ;;  %v742_v56 = vmul.f32 2.0, %v4833_v37 }
 0x11f   : > { %v807_v54 = vmul.f32 %v743_v3, %v5612_v42  ;;  %4846 = vrsqrt.f32 %v623_v53 }
 0x120   : > { %v4835_v19 = vpop.eup %4834  ;;  %4524 = vst [vmem:[#allocation2 + $0x98] sm:$0xff] %v4444_v20   ;;  %v806_v40 = vmul.f32 %v742_v56, %v5607_v41  ;;  %4848 = vrsqrt.f32 %v622_v27  ;;  %v549_v61 = vpop.xlane.xlu1 %548  ;;  %v7404_v27 = vld [vmem:[#allocation20_spill] sm:$0xff] }
 0x121   : > { %v547_v55 = vpop.xlane.xlu0 %546  ;;  %v4837_v39 = vpop.eup %4836  ;;  %v745_v8 = vmul.f32 2.0, %v4835_v19  ;;  %v625_v30 = vmax.f32 %v549_v61, 1e-24 }
 0x122   : > { %v624_v14 = vmax.f32 %v547_v55, 1e-24  ;;  %v4449_v58 = vpack.c.bf16 %v807_v54, %v806_v40  ;;  %v744_v29 = vmul.f32 2.0, %v4837_v39  ;;  %v7405_v54 = vld [vmem:[#allocation19_spill] sm:$0xff] }
 0x123   : > { %v809_v13 = vmul.f32 %v745_v8, %v5622_v44  ;;  %4850 = vrsqrt.f32 %v625_v30  ;;  %v7399_v44 = vld [vmem:[#allocation13_spill] sm:$0xff] }
 0x124   : > { %v4839_v7 = vpop.eup %4838  ;;  %4525 = vst [vmem:[#allocation2 + $0xa0] sm:$0xff] %v4449_v58   ;;  %v808_v42 = vmul.f32 %v744_v29, %v5617_v43  ;;  %4852 = vrsqrt.f32 %v624_v14  ;;  %v553_v22 = vpop.xlane.xlu1 %552  ;;  %v7406_v29 = vld [vmem:[#allocation22_spill] sm:$0xff] }
 0x125   : > { %v551_v52 = vpop.xlane.xlu0 %550  ;;  %v4841_v41 = vpop.eup %4840  ;;  %v747_v51 = vmul.f32 2.0, %v4839_v7  ;;  %v627_v21 = vmax.f32 %v553_v22, 1e-24 }
 0x126   : > { %v626_v4 = vmax.f32 %v551_v52, 1e-24  ;;  %v4454_v32 = vpack.c.bf16 %v809_v13, %v808_v42  ;;  %v746_v47 = vmul.f32 2.0, %v4841_v41  ;;  %v7407_v42 = vld [vmem:[#allocation21_spill] sm:$0xff] }
 0x127   : > { %v811_v31 = vmul.f32 %v747_v51, %v7398_v0  ;;  %4854 = vrsqrt.f32 %v627_v21 }
 0x128   : > { %v4843_v1 = vpop.eup %4842  ;;  %4526 = vst [vmem:[#allocation2 + $0xa8] sm:$0xff] %v4454_v32   ;;  %v810_v50 = vmul.f32 %v746_v47, %v7399_v44  ;;  %4856 = vrsqrt.f32 %v626_v4  ;;  %v557_v16 = vpop.xlane.xlu1 %556 }
 0x129   : > { %v555_v59 = vpop.xlane.xlu0 %554  ;;  %v4845_v43 = vpop.eup %4844  ;;  %v749_v24 = vmul.f32 2.0, %v4843_v1  ;;  %v629_v10 = vmax.f32 %v557_v16, 1e-24 }
 0x12a   : > { %v628_v15 = vmax.f32 %v555_v59, 1e-24  ;;  %v4459_v34 = vpack.c.bf16 %v811_v31, %v810_v50  ;;  %v748_v23 = vmul.f32 2.0, %v4845_v43  ;;  %v7408_v31 = vld [vmem:[#allocation24_spill] sm:$0xff]  ;;  %v7409_v50 = vld [vmem:[#allocation23_spill] sm:$0xff] }
 0x12b   : > { %v813_v33 = vmul.f32 %v749_v24, %v7400_v62  ;;  %4858 = vrsqrt.f32 %v629_v10  ;;  %v7411_v62 = vld [vmem:[#allocation25_spill] sm:$0xff] }
 0x12c   : > { %v4847_v9 = vpop.eup %4846  ;;  %4527 = vst [vmem:[#allocation2 + $0xb0] sm:$0xff] %v4459_v34   ;;  %v812_v45 = vmul.f32 %v748_v23, %v7401_v48  ;;  %4860 = vrsqrt.f32 %v628_v15  ;;  %v561_v57 = vpop.xlane.xlu1 %560  ;;  %v7410_v15 = vld [vmem:[#allocation26_spill] sm:$0xff] }
 0x12d   : > { %v559_v63 = vpop.xlane.xlu0 %558  ;;  %v4849_v49 = vpop.eup %4848  ;;  %v751_v26 = vmul.f32 2.0, %v4847_v9  ;;  %v631_v36 = vmax.f32 %v561_v57, 1e-24 }
 0x12e   : > { %v630_v18 = vmax.f32 %v559_v63, 1e-24  ;;  %v4464_v6 = vpack.c.bf16 %v813_v33, %v812_v45  ;;  %v750_v35 = vmul.f32 2.0, %v4849_v49  ;;  %v7412_v63 = vld [vmem:[#allocation28_spill] sm:$0xff] }
 0x12f   : > { %v815_v46 = vmul.f32 %v751_v26, %v7402_v25  ;;  %4862 = vrsqrt.f32 %v631_v36  ;;  %v7413_v36 = vld [vmem:[#allocation27_spill] sm:$0xff] }
 0x130   : > { %v4851_v17 = vpop.eup %4850  ;;  %4528 = vst [vmem:[#allocation2 + $0xb8] sm:$0xff] %v4464_v6   ;;  %v814_v12 = vmul.f32 %v750_v35, %v7403_v5  ;;  %4864 = vrsqrt.f32 %v630_v18  ;;  %v565_v2 = vpop.xlane.xlu1 %564 }
 0x131   : > { %v563_v11 = vpop.xlane.xlu0 %562  ;;  %v4853_v38 = vpop.eup %4852  ;;  %v753_v60 = vmul.f32 2.0, %v4851_v17  ;;  %v633_v28 = vmax.f32 %v565_v2, 1e-24  ;;  %v7414_v17 = vld [vmem:[#allocation30_spill] sm:$0xff]  ;;  %v7415_v2 = vld [vmem:[#allocation29_spill] sm:$0xff] }
 0x132   : > { %v632_v37 = vmax.f32 %v563_v11, 1e-24  ;;  %v4469_v3 = vpack.c.bf16 %v815_v46, %v814_v12  ;;  %v752_v53 = vmul.f32 2.0, %v4853_v38 }
 0x133   : > { %v817_v20 = vmul.f32 %v753_v60, %v7404_v27  ;;  %4866 = vrsqrt.f32 %v633_v28  ;;  %v7417_v27 = vld [vmem:[#allocation31_spill] sm:$0xff] }
 0x134   : > { %v4855_v56 = vpop.eup %4854  ;;  %4529 = vst [vmem:[#allocation2 + $0xc0] sm:$0xff] %v4469_v3   ;;  %v816_v19 = vmul.f32 %v752_v53, %v7405_v54  ;;  %4868 = vrsqrt.f32 %v632_v37  ;;  %v569_v40 = vpop.xlane.xlu1 %568  ;;  %v7416_v3 = vld [vmem:[#allocation32_spill] sm:$0xff] }
 0x135   : > { %v567_v61 = vpop.xlane.xlu0 %566  ;;  %v4857_v55 = vpop.eup %4856  ;;  %v755_v39 = vmul.f32 2.0, %v4855_v56  ;;  %v635_v8 = vmax.f32 %v569_v40, 1e-24 }
 0x136   : > { %v634_v30 = vmax.f32 %v567_v61, 1e-24  ;;  %v4474_v14 = vpack.c.bf16 %v817_v20, %v816_v19  ;;  %v754_v58 = vmul.f32 2.0, %v4857_v55 }
 0x137   : > { %v819_v13 = vmul.f32 %v755_v39, %v7406_v29  ;;  %4870 = vrsqrt.f32 %v635_v8 }
 0x138   : > { %v4859_v7 = vpop.eup %4858  ;;  %4530 = vst [vmem:[#allocation2 + $0xc8] sm:$0xff] %v4474_v14   ;;  %v818_v22 = vmul.f32 %v754_v58, %v7407_v42  ;;  %4872 = vrsqrt.f32 %v634_v30  ;;  %v573_v52 = vpop.xlane.xlu1 %572 }
 0x139   : > { %v571_v41 = vpop.xlane.xlu0 %570  ;;  %v4861_v51 = vpop.eup %4860  ;;  %v757_v21 = vmul.f32 2.0, %v4859_v7  ;;  %v637_v4 = vmax.f32 %v573_v52, 1e-24 }
 0x13a   : > { %v636_v32 = vmax.f32 %v571_v41, 1e-24  ;;  %v4479_v47 = vpack.c.bf16 %v819_v13, %v818_v22  ;;  %v756_v0 = vmul.f32 2.0, %v4861_v51 }
 0x13b   : > { %v821_v1 = vmul.f32 %v757_v21, %v7408_v31  ;;  %4874 = vrsqrt.f32 %v637_v4 }
 0x13c   : > { %v4863_v44 = vpop.eup %4862  ;;  %4531 = vst [vmem:[#allocation2 + $0xd0] sm:$0xff] %v4479_v47   ;;  %v820_v16 = vmul.f32 %v756_v0, %v7409_v50  ;;  %4876 = vrsqrt.f32 %v636_v32 }
 0x13d   : > { %v4865_v59 = vpop.eup %4864  ;;  %v759_v43 = vmul.f32 2.0, %v4863_v44 }
 0x13e   : > { %v4484_v24 = vpack.c.bf16 %v821_v1, %v820_v16  ;;  %v758_v10 = vmul.f32 2.0, %v4865_v59 }
 0x13f   : > { %v823_v34 = vmul.f32 %v759_v43, %v7410_v15 }
 0x140   : > { %v4867_v23 = vpop.eup %4866  ;;  %4532 = vst [vmem:[#allocation2 + $0xd8] sm:$0xff] %v4484_v24   ;;  %v822_v33 = vmul.f32 %v758_v10, %v7411_v62 }
 0x141   : > { %v4869_v9 = vpop.eup %4868  ;;  %v761_v48 = vmul.f32 2.0, %v4867_v23 }
 0x142   : > { %v4489_v45 = vpack.c.bf16 %v823_v34, %v822_v33  ;;  %v760_v57 = vmul.f32 2.0, %v4869_v9 }
 0x143   : > { %v825_v49 = vmul.f32 %v761_v48, %v7412_v63 }
 0x144   : > { %v4871_v26 = vpop.eup %4870  ;;  %4533 = vst [vmem:[#allocation2 + $0xe0] sm:$0xff] %v4489_v45   ;;  %v824_v18 = vmul.f32 %v760_v57, %v7413_v36 }
 0x145   : > { %v4873_v6 = vpop.eup %4872  ;;  %v763_v35 = vmul.f32 2.0, %v4871_v26 }
 0x146   : > { %v4494_v25 = vpack.c.bf16 %v825_v49, %v824_v18  ;;  %v762_v46 = vmul.f32 2.0, %v4873_v6 }
 0x147   : > { %v827_v5 = vmul.f32 %v763_v35, %v7414_v17 }
 0x148   : > { %v4875_v12 = vpop.eup %4874  ;;  %4534 = vst [vmem:[#allocation2 + $0xe8] sm:$0xff] %v4494_v25   ;;  %v826_v11 = vmul.f32 %v762_v46, %v7415_v2 }
 0x149   : > { %v4877_v38 = vpop.eup %4876  ;;  %v765_v60 = vmul.f32 2.0, %v4875_v12 }
 0x14a   : > { %v4499_v28 = vpack.c.bf16 %v827_v5, %v826_v11  ;;  %v764_v37 = vmul.f32 2.0, %v4877_v38 }
 0x14b   : > { %v829_v53 = vmul.f32 %v765_v60, %v7416_v3 }
 0x14c   : > { %4535 = vst [vmem:[#allocation2 + $0xf0] sm:$0xff] %v4499_v28   ;;  %v828_v20 = vmul.f32 %v764_v37, %v7417_v27 }
 0x14e   : > { %v4504_v56 = vpack.c.bf16 %v829_v53, %v828_v20 }
 0x150   : > { %4536 = vst [vmem:[#allocation2 + $0xf8] sm:$0xff] %v4504_v56  }
 0x151 PF: > { %s5917_s17 = sshll.u32 %s5399_s13, 7  ;;  %v5919_v54 = vld [vmem:[#allocation2] sm:$0xff]   ;;  %v5945_v51 = vld [vmem:[#allocation2 + $0x8] sm:$0xff]   ;;  %v5947_v21 = vld [vmem:[#allocation2 + $0x10] sm:$0xff]   ;;  %p4180_p4 = scmp.ne.s32.totalorder %s5399_s13, 1 }
 0x152   : > { %s1235_s18 = sadd.s32 256, %s5917_s17  ;;  %s1215_s19 = sshra.s32 %s5917_s17, 3  ;;  %4617 = vmatprep.mubr.bf16.mxu0 %v5919_v54  ;;  %4697 = vmatprep.mubr.bf16.mxu1 %v5919_v54  ;;  %v5952_v4 = vld [vmem:[#allocation2 + $0x18] sm:$0xff]   ;;  %v5955_v32 = vld [vmem:[#allocation2 + $0x20] sm:$0xff]   ;;  %v5960_v47 = vld [vmem:[#allocation2 + $0x28] sm:$0xff]  }
 0x153   : > { %s1236_s20 = sshra.s32 %s1235_s18, 3  ;;  %s4034_s21 = sshll.u32 %s1215_s19, 2  ;;  %v5963_v0 = vld [vmem:[#allocation2 + $0x30] sm:$0xff]   ;;  %v5968_v31 = vld [vmem:[#allocation2 + $0x38] sm:$0xff]   ;;  %v5971_v1 = vld [vmem:[#allocation2 + $0x40] sm:$0xff]  }
 0x154   : > { %s4035_s22 = sshll.u32 %s1236_s20, 2  ;;  %s5925_s23 = scalar_lea.vmem [#allocation2], %s4034_s21  ;;  %v5976_v44 = vld [vmem:[#allocation2 + $0x48] sm:$0xff]   ;;  %v5979_v50 = vld [vmem:[#allocation2 + $0x50] sm:$0xff]   ;;  %v5984_v16 = vld [vmem:[#allocation2 + $0x58] sm:$0xff]  }
 0x155   : > { %s5928_s24 = scalar_lea.vmem [#allocation2], %s4035_s22  ;;  %v5987_v59 = vld [vmem:[#allocation2 + $0x60] sm:$0xff]   ;;  %v5992_v43 = vld [vmem:[#allocation2 + $0x68] sm:$0xff]   ;;  %v5995_v24 = vld [vmem:[#allocation2 + $0x70] sm:$0xff]   ;;  %s2575_s25 = sshra.s32 %s5917_s17, 7 }
 0x156   : > { %7418 = vst [vmem:[#allocation33_spill] sm:$0xff] %v5992_v43  ;;  %7419 = vst [vmem:[#allocation34_spill] sm:$0xff] %v5995_v24  ;;  %v6000_v10 = vld [vmem:[#allocation2 + $0x78] sm:$0xff]   ;;  %v6003_v15 = vld [vmem:[#allocation2 + $0x80] sm:$0xff]   ;;  %s2577_s26 = scalar_lea.vmem [#allocation5], %s2575_s25 }
 0x157   : > { %v4879_v19 = vld [vmem:[%s5925_s23 + $0x38] sm:$0xff]   ;;  %v4880_v61 = vld [vmem:[%s5928_s24 + $0x30] sm:$0xff]   ;;  %v4883_v39 = vld [vmem:[%s5925_s23 + $0x28] sm:$0xff]   ;;  %7420 = vst [vmem:[#allocation35_spill] sm:$0xff] %v6000_v10 }
 0x158   : > { %v4878_v40 = vld [vmem:[%s5928_s24 + $0x38] sm:$0xff]   ;;  %4681 = vmatprep.subr.bf16.mxu1 %v4879_v19  ;;  %v4881_v55 = vld [vmem:[%s5925_s23 + $0x30] sm:$0xff]   ;;  %v4882_v8 = vld [vmem:[%s5928_s24 + $0x28] sm:$0xff]  }
 0x159   : > { %4601 = vmatprep.subr.bf16.mxu0 %v4878_v40  ;;  %4682 = vmatpush3.bf16.xpose.msra.mxu1 %v4879_v19  ;;  %v4885_v30 = vld [vmem:[%s5925_s23 + $0x20] sm:$0xff]   ;;  %v4887_v58 = vld [vmem:[%s5925_s23 + $0x18] sm:$0xff]   ;;  %v4889_v13 = vld [vmem:[%s5925_s23 + $0x10] sm:$0xff]  }
 0x15a   : > { %4602 = vmatpush3.bf16.xpose.msra.mxu0 %v4878_v40  ;;  %4683 = vmatprep.subr.bf16.mxu1 %v4881_v55  ;;  %v4884_v14 = vld [vmem:[%s5928_s24 + $0x20] sm:$0xff]   ;;  %v4886_v29 = vld [vmem:[%s5928_s24 + $0x18] sm:$0xff]   ;;  %v4888_v7 = vld [vmem:[%s5928_s24 + $0x10] sm:$0xff]  }
 0x15b   : > { %4603 = vmatprep.subr.bf16.mxu0 %v4880_v61  ;;  %v4891_v42 = vld [vmem:[%s5925_s23 + $0x8] sm:$0xff]   ;;  %v4893_v52 = vld [vmem:[%s5925_s23] sm:$0xff]   ;;  %v6008_v34 = vld [vmem:[#allocation2 + $0x88] sm:$0xff]  }
 0x15c   : > { %v4890_v22 = vld [vmem:[%s5928_s24 + $0x8] sm:$0xff]   ;;  %v4892_v41 = vld [vmem:[%s5928_s24] sm:$0xff]   ;;  %v6016_v33 = vld [vmem:[#allocation2 + $0xa0] sm:$0xff]  }
 0x15d   : > { %v6010_v23 = vld [vmem:[#allocation2 + $0x90] sm:$0xff]   ;;  %v6014_v62 = vld [vmem:[#allocation2 + $0x98] sm:$0xff]   ;;  %v6020_v9 = vld [vmem:[#allocation2 + $0xa8] sm:$0xff]  }
 0x15e   : > { %v6022_v48 = vld [vmem:[#allocation2 + $0xb0] sm:$0xff]   ;;  %v6026_v45 = vld [vmem:[#allocation2 + $0xb8] sm:$0xff]   ;;  %v6028_v57 = vld [vmem:[#allocation2 + $0xc0] sm:$0xff]  }
 0x15f   : > { %v6032_v63 = vld [vmem:[#allocation2 + $0xc8] sm:$0xff]   ;;  %v6034_v49 = vld [vmem:[#allocation2 + $0xd0] sm:$0xff]   ;;  %v6038_v26 = vld [vmem:[#allocation2 + $0xd8] sm:$0xff]  }
 0x160   : > { %v6040_v36 = vld [vmem:[#allocation2 + $0xe0] sm:$0xff]   ;;  %v6044_v18 = vld [vmem:[#allocation2 + $0xe8] sm:$0xff]   ;;  %v6046_v6 = vld [vmem:[#allocation2 + $0xf0] sm:$0xff]  }
 0x161   : > { %4684 = vmatpush3.bf16.xpose.msra.mxu1 %v4881_v55  ;;  %7421 = vst [vmem:[#allocation36_spill] sm:$0xff] %v6044_v18  ;;  %7422 = vst [vmem:[#allocation37_spill] sm:$0xff] %v6046_v6  ;;  %v6050_v35 = vld [vmem:[#allocation2 + $0xf8] sm:$0xff]  }
 0x162   : > { %4604 = vmatpush3.bf16.xpose.msra.mxu0 %v4880_v61  ;;  %4685 = vmatprep.subr.bf16.mxu1 %v4883_v39  ;;  %7423 = vst [vmem:[#allocation38_spill] sm:$0xff] %v6050_v35 }
 0x163   : > { %4605 = vmatprep.subr.bf16.mxu0 %v4882_v8 }
 0x169   : > { %4686 = vmatpush3.bf16.xpose.msra.mxu1 %v4883_v39 }
 0x16a   : > { %4606 = vmatpush3.bf16.xpose.msra.mxu0 %v4882_v8  ;;  %4687 = vmatprep.subr.bf16.mxu1 %v4885_v30 }
 0x16b   : > { %4607 = vmatprep.subr.bf16.mxu0 %v4884_v14 }
 0x171   : > { %4688 = vmatpush3.bf16.xpose.msra.mxu1 %v4885_v30 }
 0x172   : > { %4608 = vmatpush3.bf16.xpose.msra.mxu0 %v4884_v14  ;;  %4689 = vmatprep.subr.bf16.mxu1 %v4887_v58 }
 0x173   : > { %4609 = vmatprep.subr.bf16.mxu0 %v4886_v29 }
 0x179   : > { %4690 = vmatpush3.bf16.xpose.msra.mxu1 %v4887_v58 }
 0x17a   : > { %4610 = vmatpush3.bf16.xpose.msra.mxu0 %v4886_v29  ;;  %4691 = vmatprep.subr.bf16.mxu1 %v4889_v13 }
 0x17b   : > { %4611 = vmatprep.subr.bf16.mxu0 %v4888_v7 }
 0x181   : > { %4692 = vmatpush3.bf16.xpose.msra.mxu1 %v4889_v13 }
 0x182   : > { %4612 = vmatpush3.bf16.xpose.msra.mxu0 %v4888_v7  ;;  %4693 = vmatprep.subr.bf16.mxu1 %v4891_v42 }
 0x183   : > { %4613 = vmatprep.subr.bf16.mxu0 %v4890_v22 }
 0x189   : > { %4694 = vmatpush3.bf16.xpose.msra.mxu1 %v4891_v42 }
 0x18a   : > { %4614 = vmatpush3.bf16.xpose.msra.mxu0 %v4890_v22  ;;  %4695 = vmatprep.subr.bf16.mxu1 %v4893_v52 }
 0x18b   : > { %4615 = vmatprep.subr.bf16.mxu0 %v4892_v41 }
 0x191   : > { %4696 = vmatpush3.bf16.xpose.msra.mxu1 %v4893_v52 }
 0x192   : > { %4616 = vmatpush3.bf16.xpose.msra.mxu0 %v4892_v41 }
 0x198   : > { %4698 = vmatmul.mubr.bf16.vlgmr.msra.gmra.mxu1 %v5945_v51 }
 0x199   : > { %4618 = vmatmul.mubr.bf16.vlgmr.msra.gmra.mxu0 %v5945_v51  ;;  %4701 = vmatprep.mubr.bf16.mxu1 %v5947_v21 }
 0x19a   : > { %4621 = vmatprep.mubr.bf16.mxu0 %v5947_v21 }
 0x1a0   : > { %4702 = vmatmul.mubr.bf16.gmra.mxu1 %v5952_v4 }
 0x1a1   : > { %4622 = vmatmul.mubr.bf16.gmra.mxu0 %v5952_v4  ;;  %4705 = vmatprep.mubr.bf16.mxu1 %v5955_v32 }
 0x1a2   : > { %4625 = vmatprep.mubr.bf16.mxu0 %v5955_v32 }
 0x1a8   : > { %4706 = vmatmul.mubr.bf16.gmra.mxu1 %v5960_v47 }
 0x1a9   : > { %4626 = vmatmul.mubr.bf16.gmra.mxu0 %v5960_v47  ;;  %4709 = vmatprep.mubr.bf16.mxu1 %v5963_v0 }
 0x1aa   : > { %4629 = vmatprep.mubr.bf16.mxu0 %v5963_v0 }
 0x1b0   : > { %4710 = vmatmul.mubr.bf16.gmra.mxu1 %v5968_v31 }
 0x1b1   : > { %4630 = vmatmul.mubr.bf16.gmra.mxu0 %v5968_v31  ;;  %4713 = vmatprep.mubr.bf16.mxu1 %v5971_v1 }
 0x1b2   : > { %4633 = vmatprep.mubr.bf16.mxu0 %v5971_v1 }
 0x1b8   : > { %4714 = vmatmul.mubr.bf16.gmra.mxu1 %v5976_v44 }
 0x1b9   : > { %4634 = vmatmul.mubr.bf16.gmra.mxu0 %v5976_v44  ;;  %4717 = vmatprep.mubr.bf16.mxu1 %v5979_v50 }
 0x1ba   : > { %4637 = vmatprep.mubr.bf16.mxu0 %v5979_v50 }
 0x1c0   : > { %4718 = vmatmul.mubr.bf16.gmra.mxu1 %v5984_v16 }
 0x1c1   : > { %4638 = vmatmul.mubr.bf16.gmra.mxu0 %v5984_v16  ;;  %4721 = vmatprep.mubr.bf16.mxu1 %v5987_v59 }
 0x1c2   : > { %4641 = vmatprep.mubr.bf16.mxu0 %v5987_v59 }
 0x1c8   : > { %4722 = vmatmul.mubr.bf16.gmra.mxu1 %v5992_v43 }
 0x1c9   : > { %4642 = vmatmul.mubr.bf16.gmra.mxu0 %v5992_v43  ;;  %4725 = vmatprep.mubr.bf16.mxu1 %v5995_v24 }
 0x1ca   : > { %4645 = vmatprep.mubr.bf16.mxu0 %v5995_v24 }
 0x1d0   : > { %4726 = vmatmul.mubr.bf16.gmra.mxu1 %v6000_v10 }
 0x1d1   : > { %4646 = vmatmul.mubr.bf16.gmra.mxu0 %v6000_v10 }
 0x1d2   : > { %4649 = vmatprep.mubr.bf16.mxu0 %v6003_v15 }
 0x1d9   : > { %4650 = vmatmul.mubr.bf16.gmra.mxu0 %v6008_v34 }
 0x1da   : > { %4653 = vmatprep.mubr.bf16.mxu0 %v6010_v23 }
 0x1e1   : > { %4654 = vmatmul.mubr.bf16.gmra.mxu0 %v6014_v62 }
 0x1e2   : > { %4657 = vmatprep.mubr.bf16.mxu0 %v6016_v33 }
 0x1e9   : > { %4658 = vmatmul.mubr.bf16.gmra.mxu0 %v6020_v9 }
 0x1ea   : > { %4661 = vmatprep.mubr.bf16.mxu0 %v6022_v48 }
 0x1f1   : > { %4662 = vmatmul.mubr.bf16.gmra.mxu0 %v6026_v45 }
 0x1f2   : > { %4665 = vmatprep.mubr.bf16.mxu0 %v6028_v57 }
 0x1f9   : > { %4666 = vmatmul.mubr.bf16.gmra.mxu0 %v6032_v63 }
 0x1fa   : > { %4669 = vmatprep.mubr.bf16.mxu0 %v6034_v49 }
 0x201   : > { %4670 = vmatmul.mubr.bf16.gmra.mxu0 %v6038_v26 }
 0x202   : > { %4673 = vmatprep.mubr.bf16.mxu0 %v6040_v36 }
 0x209   : > { %4674 = vmatmul.mubr.bf16.gmra.mxu0 %v6044_v18 }
 0x20a   : > { %4677 = vmatprep.mubr.bf16.mxu0 %v6046_v6 }
 0x211   : > { %4678 = vmatmul.mubr.bf16.gmra.mxu0 %v6050_v35 }
 0x258   : > { %v4699_v25 = vpop.f32.mrf.mxu1 }
 0x259   : > { %v4619_v46 = vpop.f32.mrf.mxu0  ;;  %v4150_v17 = vadd.f32 -4.0, %v4699_v25 }
 0x25a   : > { %v4086_v5 = vadd.f32 -4.0, %v4619_v46  ;;  %v1867_v12 = vpop.f32.mrf.mxu1 }
 0x25b   : > { %v2284_v2 = vmin.f32 %v4150_v17, 0.0  ;;  %v1530_v11 = vpop.f32.mrf.mxu0  ;;  %v4148_v38 = vadd.f32 -4.0, %v1867_v12 }
 0x25c   : > { %v2060_v60 = vmin.f32 %v4086_v5, 0.0  ;;  %v4084_v28 = vadd.f32 -4.0, %v1530_v11  ;;  %v4700_v37 = vpop.f32.mrf.mxu1 }
 0x25d   : > { %v2318_v3 = vmul.f32 1.442695, %v2284_v2  ;;  %v2282_v53 = vmin.f32 %v4148_v38, 0.0  ;;  %v4620_v27 = vpop.f32.mrf.mxu0  ;;  %v4151_v20 = vadd.f32 -4.0, %v4700_v37 }
 0x25e   : > { %v2126_v56 = vmul.f32 1.442695, %v2060_v60  ;;  %v2058_v19 = vmin.f32 %v4084_v28, 0.0  ;;  %v4087_v40 = vadd.f32 -4.0, %v4620_v27  ;;  %v1870_v61 = vpop.f32.mrf.mxu1 }
 0x25f   : > { %4958 = vpow2.f32 %v2318_v3  ;;  %v2314_v55 = vmul.f32 1.442695, %v2282_v53  ;;  %v2285_v39 = vmin.f32 %v4151_v20, 0.0  ;;  %v1533_v8 = vpop.f32.mrf.mxu0  ;;  %v4149_v30 = vadd.f32 -4.0, %v1870_v61 }
 0x260   : > { %4960 = vpow2.f32 %v2126_v56  ;;  %v2122_v14 = vmul.f32 1.442695, %v2058_v19  ;;  %v2061_v58 = vmin.f32 %v4087_v40, 0.0  ;;  %v4085_v29 = vadd.f32 -4.0, %v1533_v8  ;;  %v4703_v13 = vpop.f32.mrf.mxu1 }
 0x261   : > { %4962 = vpow2.f32 %v2314_v55  ;;  %v2320_v7 = vmul.f32 1.442695, %v2285_v39  ;;  %v2283_v42 = vmin.f32 %v4149_v30, 0.0  ;;  %v4623_v22 = vpop.f32.mrf.mxu0  ;;  %v4154_v52 = vadd.f32 -4.0, %v4703_v13 }
 0x262   : > { %4964 = vpow2.f32 %v2122_v14  ;;  %v2128_v41 = vmul.f32 1.442695, %v2061_v58  ;;  %v2059_v25 = vmin.f32 %v4085_v29, 0.0  ;;  %v4090_v46 = vadd.f32 -4.0, %v4623_v22  ;;  %v1883_v17 = vpop.f32.mrf.mxu1 }
 0x263   : > { %4966 = vpow2.f32 %v2320_v7  ;;  %v2316_v5 = vmul.f32 1.442695, %v2283_v42  ;;  %v2288_v12 = vmin.f32 %v4154_v52, 0.0  ;;  %v1546_v2 = vpop.f32.mrf.mxu0  ;;  %v4152_v11 = vadd.f32 -4.0, %v1883_v17 }
 0x264   : > { %4968 = vpow2.f32 %v2128_v41  ;;  %v2124_v38 = vmul.f32 1.442695, %v2059_v25  ;;  %v2064_v60 = vmin.f32 %v4090_v46, 0.0  ;;  %v4088_v28 = vadd.f32 -4.0, %v1546_v2  ;;  %v4704_v37 = vpop.f32.mrf.mxu1 }
 0x265   : > { %4970 = vpow2.f32 %v2316_v5  ;;  %v2326_v3 = vmul.f32 1.442695, %v2288_v12  ;;  %v2286_v53 = vmin.f32 %v4152_v11, 0.0  ;;  %v4624_v27 = vpop.f32.mrf.mxu0  ;;  %v4155_v20 = vadd.f32 -4.0, %v4704_v37 }
 0x266   : > { %4972 = vpow2.f32 %v2124_v38  ;;  %v2134_v56 = vmul.f32 1.442695, %v2064_v60  ;;  %v2062_v19 = vmin.f32 %v4088_v28, 0.0  ;;  %v4091_v40 = vadd.f32 -4.0, %v4624_v27  ;;  %v1886_v61 = vpop.f32.mrf.mxu1  ;;  %v2380_v27 = vld [vmem:[#allocation4 + $0xd8] sm:$0xff] }
 0x267   : > { %4974 = vpow2.f32 %v2326_v3  ;;  %v2322_v55 = vmul.f32 1.442695, %v2286_v53  ;;  %v2289_v39 = vmin.f32 %v4155_v20, 0.0  ;;  %v1549_v8 = vpop.f32.mrf.mxu0  ;;  %v4153_v30 = vadd.f32 -4.0, %v1886_v61 }
 0x268   : > { %4976 = vpow2.f32 %v2134_v56  ;;  %v2130_v14 = vmul.f32 1.442695, %v2062_v19  ;;  %v2065_v58 = vmin.f32 %v4091_v40, 0.0  ;;  %v4089_v29 = vadd.f32 -4.0, %v1549_v8  ;;  %v4707_v13 = vpop.f32.mrf.mxu1 }
 0x269   : > { %4978 = vpow2.f32 %v2322_v55  ;;  %v2328_v7 = vmul.f32 1.442695, %v2289_v39  ;;  %v2287_v42 = vmin.f32 %v4153_v30, 0.0  ;;  %v4627_v22 = vpop.f32.mrf.mxu0  ;;  %v4158_v52 = vadd.f32 -4.0, %v4707_v13 }
 0x26a   : > { %4980 = vpow2.f32 %v2130_v14  ;;  %v2136_v41 = vmul.f32 1.442695, %v2065_v58  ;;  %v2063_v25 = vmin.f32 %v4089_v29, 0.0  ;;  %v4094_v46 = vadd.f32 -4.0, %v4627_v22  ;;  %v1899_v17 = vpop.f32.mrf.mxu1  ;;  %v2378_v58 = vld [vmem:[#allocation4 + $0xb0] sm:$0xff] }
 0x26b   : > { %4982 = vpow2.f32 %v2328_v7  ;;  %v2324_v5 = vmul.f32 1.442695, %v2287_v42  ;;  %v2292_v12 = vmin.f32 %v4158_v52, 0.0  ;;  %v1562_v2 = vpop.f32.mrf.mxu0  ;;  %v4156_v11 = vadd.f32 -4.0, %v1899_v17 }
 0x26c   : > { %v4959_v38 = vpop.eup %4958  ;;  %4984 = vpow2.f32 %v2136_v41  ;;  %v2132_v60 = vmul.f32 1.442695, %v2063_v25  ;;  %v2068_v28 = vmin.f32 %v4094_v46, 0.0  ;;  %v4092_v37 = vadd.f32 -4.0, %v1562_v2  ;;  %v4708_v3 = vpop.f32.mrf.mxu1 }
 0x26d   : > { %v6053_v53 = vpop.eup %4960  ;;  %4986 = vpow2.f32 %v2324_v5  ;;  %v2334_v20 = vmul.f32 1.442695, %v2292_v12  ;;  %v2290_v56 = vmin.f32 %v4156_v11, 0.0  ;;  %v4628_v19 = vpop.f32.mrf.mxu0  ;;  %v4159_v40 = vadd.f32 -4.0, %v4708_v3  ;;  %v2381_v5 = vld [vmem:[#allocation4 + $0x18] sm:$0xff] }
 0x26e   : > { %v4963_v61 = vpop.eup %4962  ;;  %v2412_v55 = vadd.f32 %v6053_v53, %v4959_v38  ;;  %4988 = vpow2.f32 %v2132_v60  ;;  %v2142_v39 = vmul.f32 1.442695, %v2068_v28  ;;  %v2066_v8 = vmin.f32 %v4092_v37, 0.0  ;;  %v1902_v30 = vpop.f32.mrf.mxu1 }
 0x26f   : > { %v4965_v14 = vpop.eup %4964  ;;  %4990 = vpow2.f32 %v2334_v20  ;;  %v2330_v29 = vmul.f32 1.442695, %v2290_v56  ;;  %v4095_v13 = vadd.f32 -4.0, %v4628_v19  ;;  %v2293_v7 = vmin.f32 %v4159_v40, 0.0  ;;  %v1565_v42 = vpop.f32.mrf.mxu0 }
 0x270   : > { %v4967_v22 = vpop.eup %4966  ;;  %v2444_v52 = vadd.f32 %v2412_v55, %v2380_v27  ;;  %v2410_v41 = vadd.f32 %v4965_v14, %v4963_v61  ;;  %4992 = vpow2.f32 %v2142_v39  ;;  %v2138_v25 = vmul.f32 1.442695, %v2066_v8  ;;  %v4711_v46 = vpop.f32.mrf.mxu1  ;;  %v2379_v27 = vld [vmem:[#allocation4] sm:$0xff] }
 0x271   : > { %v4969_v17 = vpop.eup %4968  ;;  %4994 = vpow2.f32 %v2330_v29  ;;  %v2069_v12 = vmin.f32 %v4095_v13, 0.0  ;;  %v2336_v2 = vmul.f32 1.442695, %v2293_v7  ;;  %v4093_v11 = vadd.f32 -4.0, %v1565_v42  ;;  %v4631_v38 = vpop.f32.mrf.mxu0 }
 0x272   : > { %v4971_v60 = vpop.eup %4970  ;;  %2476 = vst [vmem:[#allocation4 + $0xd8] sm:$0xff] %v2444_v52  ;;  %v2442_v28 = vadd.f32 %v2410_v41, %v2378_v58  ;;  %v2413_v37 = vadd.f32 %v4969_v17, %v4967_v22  ;;  %4996 = vpow2.f32 %v2138_v25  ;;  %v4157_v3 = vadd.f32 -4.0, %v1902_v30  ;;  %v1915_v20 = vpop.f32.mrf.mxu1  ;;  %v2384_v58 = vld [vmem:[#allocation4 + $0x30] sm:$0xff] }
 0x273   : > { %v4973_v56 = vpop.eup %4972  ;;  %v2144_v19 = vmul.f32 1.442695, %v2069_v12  ;;  %4998 = vpow2.f32 %v2336_v2  ;;  %v2067_v40 = vmin.f32 %v4093_v11, 0.0  ;;  %v4098_v61 = vadd.f32 -4.0, %v4631_v38  ;;  %v1578_v55 = vpop.f32.mrf.mxu0 }
 0x274   : > { %v4975_v39 = vpop.eup %4974  ;;  %2474 = vst [vmem:[#allocation4 + $0xb0] sm:$0xff] %v2442_v28  ;;  %v2445_v8 = vadd.f32 %v2413_v37, %v2381_v5  ;;  %v2506_v29 = vadd.f32 %v4973_v56, %v4965_v14  ;;  %v2411_v13 = vadd.f32 %v4973_v56, %v4971_v60  ;;  %v2291_v7 = vmin.f32 %v4157_v3, 0.0  ;;  %v4712_v42 = vpop.f32.mrf.mxu1  ;;  %v2382_v28 = vld [vmem:[#allocation4 + $0x50] sm:$0xff] }
 0x275   : > { %v6056_v52 = vpop.eup %4976  ;;  %5000 = vpow2.f32 %v2144_v19  ;;  %v2140_v30 = vmul.f32 1.442695, %v2067_v40  ;;  %v2072_v22 = vmin.f32 %v4098_v61, 0.0  ;;  %v4162_v41 = vadd.f32 -4.0, %v4711_v46  ;;  %v4632_v25 = vpop.f32.mrf.mxu0 }
 0x276   : > { %v4979_v12 = vpop.eup %4978  ;;  %2477 = vst [vmem:[#allocation4 + $0x18] sm:$0xff] %v2445_v8  ;;  %v2507_v2 = vadd.f32 %v6053_v53, %v2506_v29  ;;  %v2443_v11 = vadd.f32 %v2411_v13, %v2379_v27  ;;  %v2416_v38 = vadd.f32 %v6056_v52, %v4975_v39  ;;  %v2332_v5 = vmul.f32 1.442695, %v2291_v7  ;;  %v1918_v14 = vpop.f32.mrf.mxu1  ;;  %v2385_v27 = vld [vmem:[#allocation4 + $0x48] sm:$0xff] }
 0x277   : > { %v4981_v60 = vpop.eup %4980  ;;  %5002 = vpow2.f32 %v2140_v30  ;;  %v2150_v37 = vmul.f32 1.442695, %v2072_v22  ;;  %v2296_v3 = vmin.f32 %v4162_v41, 0.0  ;;  %v4096_v56 = vadd.f32 -4.0, %v1578_v55  ;;  %v1581_v19 = vpop.f32.mrf.mxu0 }
 0x278   : > { %v4983_v40 = vpop.eup %4982  ;;  %2475 = vst [vmem:[#allocation4] sm:$0xff] %v2443_v11  ;;  %v2448_v46 = vadd.f32 %v2416_v38, %v2384_v58  ;;  %v2508_v61 = vadd.f32 %v4969_v17, %v2507_v2  ;;  %v2414_v35 = vadd.f32 %v4981_v60, %v4979_v12  ;;  %5004 = vpow2.f32 %v2332_v5  ;;  %v6060_v8 = vpop.f32.mrf.mxu1  ;;  %v2383_v58 = vld [vmem:[#allocation4 + $0x68] sm:$0xff] }
 0x279   : > { %v4985_v53 = vpop.eup %4984  ;;  %5006 = vpow2.f32 %v2150_v37  ;;  %v2342_v39 = vmul.f32 1.442695, %v2296_v3  ;;  %v2070_v29 = vmin.f32 %v4096_v56, 0.0  ;;  %v4160_v13 = vadd.f32 -4.0, %v1915_v20  ;;  %v4635_v7 = vpop.f32.mrf.mxu0 }
 0x27a   : > { %v4987_v30 = vpop.eup %4986  ;;  %2480 = vst [vmem:[#allocation4 + $0x30] sm:$0xff] %v2448_v46  ;;  %v2509_v22 = vadd.f32 %v4981_v60, %v2508_v61  ;;  %v2446_v55 = vadd.f32 %v2414_v35, %v2382_v28  ;;  %v2417_v41 = vadd.f32 %v4985_v53, %v4983_v40  ;;  %v4099_v10 = vadd.f32 -4.0, %v4632_v25  ;;  %v6062_v11 = vpop.f32.mrf.mxu1  ;;  %v2388_v25 = vld [vmem:[#allocation4 + $0xe8] sm:$0xff] }
 0x27b   : > { %v4989_v17 = vpop.eup %4988  ;;  %5008 = vpow2.f32 %v2342_v39  ;;  %v2146_v12 = vmul.f32 1.442695, %v2070_v29  ;;  %v2294_v2 = vmin.f32 %v4160_v13, 0.0  ;;  %v4163_v38 = vadd.f32 -4.0, %v4712_v42  ;;  %v1594_v5 = vpop.f32.mrf.mxu0 }
 0x27c   : > { %v4991_v37 = vpop.eup %4990  ;;  %2478 = vst [vmem:[#allocation4 + $0x50] sm:$0xff] %v2446_v55  ;;  %v2449_v3 = vadd.f32 %v2417_v41, %v2385_v27  ;;  %v2510_v20 = vadd.f32 %v4989_v17, %v2509_v22  ;;  %v2415_v56 = vadd.f32 %v4989_v17, %v4987_v30  ;;  %v2073_v6 = vmin.f32 %v4099_v10, 0.0  ;;  %v6064_v46 = vpop.f32.mrf.mxu1  ;;  %v2386_v22 = vld [vmem:[#allocation4 + $0x80] sm:$0xff] }
 0x27d   : > { %v6066_v35 = vpop.eup %4992  ;;  %5010 = vpow2.f32 %v2146_v12  ;;  %v2338_v60 = vmul.f32 1.442695, %v2294_v2  ;;  %v2297_v28 = vmin.f32 %v4163_v38, 0.0  ;;  %v4097_v40 = vadd.f32 -4.0, %v1581_v19  ;;  %v4636_v61 = vpop.f32.mrf.mxu0 }
 0x27e   : > { %v4995_v39 = vpop.eup %4994  ;;  %2481 = vst [vmem:[#allocation4 + $0x48] sm:$0xff] %v2449_v3  ;;  %v2511_v42 = vadd.f32 %v6056_v52, %v2510_v20  ;;  %v2447_v29 = vadd.f32 %v2415_v56, %v2383_v58  ;;  %v2420_v27 = vadd.f32 %v6066_v35, %v4991_v37  ;;  %v2152_v13 = vmul.f32 1.442695, %v2073_v6  ;;  %v6070_v30 = vpop.f32.mrf.mxu1 }
 0x27f   : > { %v4997_v10 = vpop.eup %4996  ;;  %5012 = vpow2.f32 %v2338_v60  ;;  %v2344_v55 = vmul.f32 1.442695, %v2297_v28  ;;  %v2071_v41 = vmin.f32 %v4097_v40, 0.0  ;;  %v4161_v17 = vadd.f32 -4.0, %v1918_v14  ;;  %v1597_v12 = vpop.f32.mrf.mxu0  ;;  %v2389_v40 = vld [vmem:[#allocation4 + $0xb8] sm:$0xff] }
 0x280   : > { %v4999_v2 = vpop.eup %4998  ;;  %2479 = vst [vmem:[#allocation4 + $0x68] sm:$0xff] %v2447_v29  ;;  %v2452_v19 = vadd.f32 %v2420_v27, %v2388_v25  ;;  %v2512_v38 = vadd.f32 %v4985_v53, %v2511_v42  ;;  %v2418_v3 = vadd.f32 %v4997_v10, %v4995_v39  ;;  %5014 = vpow2.f32 %v2152_v13  ;;  %v6072_v52 = vpop.f32.mrf.mxu1 }
 0x281   : > { %5016 = vpow2.f32 %v2344_v55  ;;  %v2148_v58 = vmul.f32 1.442695, %v2071_v41  ;;  %v2295_v6 = vmin.f32 %v4161_v17, 0.0  ;;  %v4102_v37 = vadd.f32 -4.0, %v4635_v7  ;;  %v4639_v20 = vpop.f32.mrf.mxu0 }
 0x282   : > { %v5001_v56 = vpop.eup %5000  ;;  %2484 = vst [vmem:[#allocation4 + $0xe8] sm:$0xff] %v2452_v19  ;;  %v2513_v60 = vadd.f32 %v4997_v10, %v2512_v38  ;;  %v2450_v28 = vadd.f32 %v2418_v3, %v2386_v22  ;;  %v4166_v14 = vadd.f32 -4.0, %v6060_v8  ;;  %v4100_v24 = vadd.f32 -4.0, %v1594_v5  ;;  %v6075_v29 = vpop.f32.mrf.mxu1  ;;  %v2387_v5 = vld [vmem:[#allocation4 + $0x88] sm:$0xff] }
 0x283   : > { %v2421_v53 = vadd.f32 %v5001_v56, %v4999_v2  ;;  %5018 = vpow2.f32 %v2148_v58  ;;  %v2340_v25 = vmul.f32 1.442695, %v2295_v6  ;;  %v2076_v39 = vmin.f32 %v4102_v37, 0.0  ;;  %v1610_v42 = vpop.f32.mrf.mxu0 }
 0x284   : > { %v5003_v27 = vpop.eup %5002  ;;  %2482 = vst [vmem:[#allocation4 + $0x80] sm:$0xff] %v2450_v28  ;;  %v2300_v13 = vmin.f32 %v4166_v14, 0.0  ;;  %v2074_v7 = vmin.f32 %v4100_v24, 0.0  ;;  %v4164_v55 = vadd.f32 -4.0, %v6062_v11  ;;  %v4103_v41 = vadd.f32 -4.0, %v4636_v61  ;;  %v6078_v10 = vpop.f32.mrf.mxu1 }
 0x285   : > { %v5005_v22 = vpop.eup %5004  ;;  %v2453_v17 = vadd.f32 %v2421_v53, %v2389_v40  ;;  %v2514_v8 = vadd.f32 %v5003_v27, %v2513_v60  ;;  %5020 = vpow2.f32 %v2340_v25  ;;  %v2158_v19 = vmul.f32 1.442695, %v2076_v39  ;;  %v4640_v2 = vpop.f32.mrf.mxu0  ;;  %v2392_v53 = vld [vmem:[#allocation4 + $0x8] sm:$0xff] }
 0x286   : > { %v6080_v38 = vpop.eup %5006  ;;  %v2419_v3 = vadd.f32 %v5005_v22, %v5003_v27  ;;  %v2350_v58 = vmul.f32 1.442695, %v2300_v13  ;;  %v2154_v6 = vmul.f32 1.442695, %v2074_v7  ;;  %v2298_v37 = vmin.f32 %v4164_v55, 0.0  ;;  %v6082_v28 = vpop.f32.mrf.mxu1 }
 0x287   : > { %2485 = vst [vmem:[#allocation4 + $0xb8] sm:$0xff] %v2453_v17  ;;  %v2515_v24 = vadd.f32 %v6066_v35, %v2514_v8  ;;  %5022 = vpow2.f32 %v2158_v19  ;;  %v2077_v11 = vmin.f32 %v4103_v41, 0.0  ;;  %v4167_v61 = vadd.f32 -4.0, %v6064_v46  ;;  %v6086_v60 = vpop.f32.mrf.mxu0  ;;  %v2390_v19 = vld [vmem:[#allocation4 + $0x60] sm:$0xff] }
 0x288   : > { %v5009_v40 = vpop.eup %5008  ;;  %v2451_v14 = vadd.f32 %v2419_v3, %v2387_v5  ;;  %5024 = vpow2.f32 %v2350_v58  ;;  %v2346_v25 = vmul.f32 1.442695, %v2298_v37  ;;  %v4101_v39 = vadd.f32 -4.0, %v1597_v12  ;;  %v6092_v17 = vpop.f32.mrf.mxu1 }
 0x289   : > { %v2424_v27 = vadd.f32 %v5009_v40, %v6080_v38  ;;  %v2516_v13 = vadd.f32 %v5001_v56, %v2515_v24  ;;  %5026 = vpow2.f32 %v2154_v6  ;;  %v2160_v7 = vmul.f32 1.442695, %v2077_v11  ;;  %v6089_v55 = vpop.f32.mrf.mxu0 }
 0x28a   : > { %v5011_v35 = vpop.eup %5010  ;;  %2483 = vst [vmem:[#allocation4 + $0x88] sm:$0xff] %v2451_v14  ;;  %5028 = vpow2.f32 %v2346_v25  ;;  %v2301_v41 = vmin.f32 %v4167_v61, 0.0  ;;  %v2075_v46 = vmin.f32 %v4101_v39, 0.0  ;;  %v4165_v22 = vadd.f32 -4.0, %v6070_v30  ;;  %v2393_v39 = vld [vmem:[#allocation4 + $0x78] sm:$0xff] }
 0x28b   : > { %v2456_v8 = vadd.f32 %v2424_v27, %v2392_v53  ;;  %v2517_v5 = vadd.f32 %v5011_v35, %v2516_v13  ;;  %5030 = vpow2.f32 %v2160_v7  ;;  %v4106_v12 = vadd.f32 -4.0, %v4639_v20  ;;  %v6094_v3 = vpop.f32.mrf.mxu0  ;;  %v6100_v7 = vpop.f32.mrf.mxu1 }
 0x28c   : > { %v5013_v56 = vpop.eup %5012  ;;  %v2352_v58 = vmul.f32 1.442695, %v2301_v41  ;;  %v2156_v6 = vmul.f32 1.442695, %v2075_v46  ;;  %v2299_v37 = vmin.f32 %v4165_v22, 0.0  ;;  %v4170_v24 = vadd.f32 -4.0, %v6072_v52 }
 0x28d   : > { %v5015_v11 = vpop.eup %5014  ;;  %2488 = vst [vmem:[#allocation4 + $0x8] sm:$0xff] %v2456_v8  ;;  %v2422_v61 = vadd.f32 %v5013_v56, %v5011_v35  ;;  %v2080_v40 = vmin.f32 %v4106_v12, 0.0  ;;  %v4104_v30 = vadd.f32 -4.0, %v1610_v42  ;;  %v4168_v14 = vadd.f32 -4.0, %v6075_v29  ;;  %v6098_v53 = vpop.f32.mrf.mxu0 }
 0x28e   : > { %v5017_v25 = vpop.eup %5016  ;;  %5032 = vpow2.f32 %v2352_v58  ;;  %v2348_v20 = vmul.f32 1.442695, %v2299_v37  ;;  %v2304_v27 = vmin.f32 %v4170_v24, 0.0  ;;  %v4107_v13 = vadd.f32 -4.0, %v4640_v2  ;;  %v2391_v24 = vld [vmem:[#allocation4 + $0xf0] sm:$0xff] }
 0x28f   : > { %v2454_v41 = vadd.f32 %v2422_v61, %v2390_v19  ;;  %v2425_v46 = vadd.f32 %v5017_v25, %v5015_v11  ;;  %5034 = vpow2.f32 %v2156_v6  ;;  %v2166_v52 = vmul.f32 1.442695, %v2080_v40  ;;  %v6102_v22 = vpop.f32.mrf.mxu0  ;;  %v4724_v40 = vpop.f32.mrf.mxu1 }
 0x290   : > { %v5019_v35 = vpop.eup %5018  ;;  %5036 = vpow2.f32 %v2348_v20  ;;  %v2358_v42 = vmul.f32 1.442695, %v2304_v27  ;;  %v2078_v29 = vmin.f32 %v4104_v30, 0.0  ;;  %v2302_v8 = vmin.f32 %v4168_v14, 0.0 }
 0x291   : > { %2486 = vst [vmem:[#allocation4 + $0x60] sm:$0xff] %v2454_v41  ;;  %v2457_v12 = vadd.f32 %v2425_v46, %v2393_v39  ;;  %v2518_v56 = vadd.f32 %v5019_v35, %v2517_v5  ;;  %5038 = vpow2.f32 %v2166_v52  ;;  %v2081_v58 = vmin.f32 %v4107_v13, 0.0  ;;  %v6104_v37 = vpop.f32.mrf.mxu0  ;;  %v2396_v52 = vld [vmem:[#allocation4 + $0x40] sm:$0xff] }
 0x292   : > { %v5021_v2 = vpop.eup %5020  ;;  %5040 = vpow2.f32 %v2358_v42  ;;  %v2162_v19 = vmul.f32 1.442695, %v2078_v29  ;;  %v2354_v6 = vmul.f32 1.442695, %v2302_v8  ;;  %v4171_v61 = vadd.f32 -4.0, %v6078_v10 }
 0x293   : > { %2489 = vst [vmem:[#allocation4 + $0x78] sm:$0xff] %v2457_v12  ;;  %v2519_v25 = vadd.f32 %v6080_v38, %v2518_v56  ;;  %v2423_v30 = vadd.f32 %v5021_v2, %v5019_v35  ;;  %v2168_v14 = vmul.f32 1.442695, %v2081_v58  ;;  %v4105_v39 = vadd.f32 -4.0, %v6086_v60  ;;  %v6109_v5 = vpop.f32.mrf.mxu0  ;;  %v1966_v56 = vpop.f32.mrf.mxu1  ;;  %v2394_v2 = vld [vmem:[#allocation4 + $0x38] sm:$0xff] }
 0x294   : > { %v6111_v20 = vpop.eup %5022  ;;  %5042 = vpow2.f32 %v2162_v19  ;;  %v2305_v27 = vmin.f32 %v4171_v61, 0.0  ;;  %v4169_v13 = vadd.f32 -4.0, %v6082_v28  ;;  %v4110_v41 = vadd.f32 -4.0, %v6089_v55 }
 0x295   : > { %v5025_v46 = vpop.eup %5024  ;;  %v2455_v10 = vadd.f32 %v2423_v30, %v2391_v24  ;;  %v2520_v42 = vadd.f32 %v5015_v11, %v2519_v25  ;;  %5044 = vpow2.f32 %v2354_v6  ;;  %v2079_v38 = vmin.f32 %v4105_v39, 0.0  ;;  %v6115_v35 = vpop.f32.mrf.mxu0 }
 0x296   : > { %v5027_v29 = vpop.eup %5026  ;;  %v2428_v60 = vadd.f32 %v5025_v46, %v6111_v20  ;;  %5046 = vpow2.f32 %v2168_v14  ;;  %v2360_v8 = vmul.f32 1.442695, %v2305_v27  ;;  %v2303_v12 = vmin.f32 %v4169_v13, 0.0 }
 0x297   : > { %v5029_v58 = vpop.eup %5028  ;;  %2487 = vst [vmem:[#allocation4 + $0xf0] sm:$0xff] %v2455_v10  ;;  %v2521_v28 = vadd.f32 %v5027_v29, %v2520_v42  ;;  %v2164_v55 = vmul.f32 1.442695, %v2079_v38  ;;  %v2084_v19 = vmin.f32 %v4110_v41, 0.0  ;;  %v4174_v24 = vadd.f32 -4.0, %v6092_v17  ;;  %v6119_v11 = vpop.f32.mrf.mxu0 }
 0x298   : > { %v5031_v6 = vpop.eup %5030  ;;  %v2460_v61 = vadd.f32 %v2428_v60, %v2396_v52  ;;  %v2426_v25 = vadd.f32 %v5029_v58, %v5027_v29  ;;  %5048 = vpow2.f32 %v2360_v8  ;;  %v2356_v30 = vmul.f32 1.442695, %v2303_v12  ;;  %v4727_v10 = vpop.f32.mrf.mxu1  ;;  %v2397_v52 = vld [vmem:[#allocation4 + $0xc8] sm:$0xff] }
 0x299   : > { %5050 = vpow2.f32 %v2164_v55  ;;  %v2174_v14 = vmul.f32 1.442695, %v2084_v19  ;;  %v2308_v39 = vmin.f32 %v4174_v24, 0.0  ;;  %v4108_v27 = vadd.f32 -4.0, %v6094_v3  ;;  %v6122_v13 = vpop.f32.mrf.mxu0  ;;  %v2395_v24 = vld [vmem:[#allocation4 + $0x58] sm:$0xff] }
 0x29a   : > { %2492 = vst [vmem:[#allocation4 + $0x40] sm:$0xff] %v2460_v61  ;;  %v2458_v46 = vadd.f32 %v2426_v25, %v2394_v2  ;;  %5052 = vpow2.f32 %v2356_v30  ;;  %v4172_v41 = vadd.f32 -4.0, %v6100_v7  ;;  %v4111_v17 = vadd.f32 -4.0, %v6098_v53 }
 0x29b   : > { %v5033_v42 = vpop.eup %5032  ;;  %5054 = vpow2.f32 %v2174_v14  ;;  %v2366_v38 = vmul.f32 1.442695, %v2308_v39  ;;  %v2082_v29 = vmin.f32 %v4108_v27, 0.0  ;;  %v4175_v60 = vadd.f32 -4.0, %v4724_v40  ;;  %v6126_v8 = vpop.f32.mrf.mxu0 }
 0x29c   : > { %v5035_v12 = vpop.eup %5034  ;;  %2490 = vst [vmem:[#allocation4 + $0x38] sm:$0xff] %v2458_v46  ;;  %v2429_v3 = vadd.f32 %v5033_v42, %v5031_v6  ;;  %v2306_v58 = vmin.f32 %v4172_v41, 0.0  ;;  %v2085_v55 = vmin.f32 %v4111_v17, 0.0  ;;  %v4109_v2 = vadd.f32 -4.0, %v6102_v22  ;;  %v1979_v46 = vpop.f32.mrf.mxu1  ;;  %v2400_v17 = vld [vmem:[#allocation4 + $0x70] sm:$0xff] }
 0x29d   : > { %v5037_v19 = vpop.eup %5036  ;;  %v2522_v7 = vadd.f32 %v5035_v12, %v2521_v28  ;;  %5056 = vpow2.f32 %v2366_v38  ;;  %v2170_v53 = vmul.f32 1.442695, %v2082_v29  ;;  %v2309_v61 = vmin.f32 %v4175_v60, 0.0  ;;  %v6129_v25 = vpop.f32.mrf.mxu0 }
 0x29e   : > { %v6131_v30 = vpop.eup %5038  ;;  %v2461_v40 = vadd.f32 %v2429_v3, %v2397_v52  ;;  %v2427_v14 = vadd.f32 %v5037_v19, %v5035_v12  ;;  %v2362_v39 = vmul.f32 1.442695, %v2306_v58  ;;  %v2176_v27 = vmul.f32 1.442695, %v2085_v55 }
 0x29f   : > { %v5041_v42 = vpop.eup %5040  ;;  %v2523_v41 = vadd.f32 %v6111_v20, %v2522_v7  ;;  %5058 = vpow2.f32 %v2170_v53  ;;  %v2368_v22 = vmul.f32 1.442695, %v2309_v61  ;;  %v2083_v28 = vmin.f32 %v4109_v2, 0.0  ;;  %v6134_v18 = vpop.f32.mrf.mxu0  ;;  %v2398_v2 = vld [vmem:[#allocation4 + $0xe0] sm:$0xff] }
 0x2a0   : > { %2493 = vst [vmem:[#allocation4 + $0xc8] sm:$0xff] %v2461_v40  ;;  %v2459_v38 = vadd.f32 %v2427_v14, %v2395_v24  ;;  %v2432_v29 = vadd.f32 %v5041_v42, %v6131_v30  ;;  %5060 = vpow2.f32 %v2362_v39  ;;  %v4173_v60 = vadd.f32 -4.0, %v1966_v56  ;;  %v4728_v24 = vpop.f32.mrf.mxu1 }
 0x2a1   : > { %v5043_v52 = vpop.eup %5042  ;;  %v2524_v12 = vadd.f32 %v5031_v6, %v2523_v41  ;;  %5062 = vpow2.f32 %v2176_v27  ;;  %v2172_v3 = vmul.f32 1.442695, %v2083_v28  ;;  %v4114_v58 = vadd.f32 -4.0, %v6104_v37  ;;  %v6138_v55 = vpop.f32.mrf.mxu0  ;;  %v2401_v28 = vld [vmem:[#allocation4 + $0xc0] sm:$0xff] }
 0x2a2   : > { %v5045_v20 = vpop.eup %5044  ;;  %2491 = vst [vmem:[#allocation4 + $0x58] sm:$0xff] %v2459_v38  ;;  %v2464_v19 = vadd.f32 %v2432_v29, %v2400_v17  ;;  %5064 = vpow2.f32 %v2368_v22  ;;  %v2307_v7 = vmin.f32 %v4173_v60, 0.0  ;;  %v4178_v53 = vadd.f32 -4.0, %v4727_v10 }
 0x2a3   : > { %v5047_v61 = vpop.eup %5046  ;;  %v2525_v40 = vadd.f32 %v5043_v52, %v2524_v12  ;;  %v2430_v14 = vadd.f32 %v5045_v20, %v5043_v52  ;;  %5066 = vpow2.f32 %v2172_v3  ;;  %v2088_v56 = vmin.f32 %v4114_v58, 0.0  ;;  %v6140_v6 = vpop.f32.mrf.mxu0 }
 0x2a4   : > { %2496 = vst [vmem:[#allocation4 + $0x70] sm:$0xff] %v2464_v19  ;;  %v2364_v39 = vmul.f32 1.442695, %v2307_v7  ;;  %v2312_v37 = vmin.f32 %v4178_v53, 0.0  ;;  %v4112_v27 = vadd.f32 -4.0, %v6109_v5  ;;  %v4176_v42 = vadd.f32 -4.0, %v1979_v46 }
 0x2a5   : > { %v5049_v41 = vpop.eup %5048  ;;  %v2462_v17 = vadd.f32 %v2430_v14, %v2398_v2  ;;  %v2182_v22 = vmul.f32 1.442695, %v2088_v56  ;;  %v4115_v10 = vadd.f32 -4.0, %v6115_v35  ;;  %v4179_v38 = vadd.f32 -4.0, %v4728_v24  ;;  %v6144_v29 = vpop.f32.mrf.mxu0  ;;  %v2399_v19 = vld [vmem:[#allocation4 + $0x90] sm:$0xff] }
 0x2a6   : > { %v5051_v60 = vpop.eup %5050  ;;  %v2433_v52 = vadd.f32 %v5049_v41, %v5047_v61  ;;  %5068 = vpow2.f32 %v2364_v39  ;;  %v2374_v12 = vmul.f32 1.442695, %v2312_v37  ;;  %v2086_v3 = vmin.f32 %v4112_v27, 0.0  ;;  %v1982_v2 = vpop.f32.mrf.mxu1 }
 0x2a7   : > { %v5053_v58 = vpop.eup %5052  ;;  %2494 = vst [vmem:[#allocation4 + $0xe0] sm:$0xff] %v2462_v17  ;;  %v2526_v20 = vadd.f32 %v5051_v60, %v2525_v40  ;;  %5070 = vpow2.f32 %v2182_v22  ;;  %v2310_v5 = vmin.f32 %v4176_v42, 0.0  ;;  %v2089_v46 = vmin.f32 %v4115_v10, 0.0  ;;  %v6146_v7 = vpop.f32.mrf.mxu0  ;;  %v2404_v42 = vld [vmem:[#allocation4 + $0x10] sm:$0xff] }
 0x2a8   : > { %v5055_v53 = vpop.eup %5054  ;;  %v2465_v35 = vadd.f32 %v2433_v52, %v2401_v28  ;;  %v2431_v24 = vadd.f32 %v5053_v58, %v5051_v60  ;;  %5072 = vpow2.f32 %v2374_v12  ;;  %v2178_v14 = vmul.f32 1.442695, %v2086_v3 }
 0x2a9   : > { %v2527_v56 = vadd.f32 %v6131_v30, %v2526_v20  ;;  %v2370_v39 = vmul.f32 1.442695, %v2310_v5  ;;  %v2184_v37 = vmul.f32 1.442695, %v2089_v46  ;;  %v2313_v27 = vmin.f32 %v4179_v38, 0.0  ;;  %v6149_v41 = vpop.f32.mrf.mxu0  ;;  %v2402_v5 = vld [vmem:[#allocation4 + $0xa8] sm:$0xff] }
 0x2aa   : > { %v5057_v40 = vpop.eup %5056  ;;  %2497 = vst [vmem:[#allocation4 + $0xc0] sm:$0xff] %v2465_v35  ;;  %v2463_v17 = vadd.f32 %v2431_v24, %v2399_v19  ;;  %5074 = vpow2.f32 %v2178_v14  ;;  %v4113_v22 = vadd.f32 -4.0, %v6119_v11  ;;  %v4177_v10 = vadd.f32 -4.0, %v1982_v2 }
 0x2ab   : > { %v2436_v43 = vadd.f32 %v5057_v40, %v5055_v53  ;;  %v2528_v28 = vadd.f32 %v5047_v61, %v2527_v56  ;;  %5076 = vpow2.f32 %v2370_v39  ;;  %v2376_v60 = vmul.f32 1.442695, %v2313_v27  ;;  %v6152_v52 = vpop.f32.mrf.mxu0  ;;  %v2405_v56 = vld [vmem:[#allocation4 + $0x28] sm:$0xff] }
 0x2ac   : > { %v5059_v30 = vpop.eup %5058  ;;  %2495 = vst [vmem:[#allocation4 + $0x90] sm:$0xff] %v2463_v17  ;;  %5078 = vpow2.f32 %v2184_v37  ;;  %v2087_v38 = vmin.f32 %v4113_v22, 0.0  ;;  %v2311_v12 = vmin.f32 %v4177_v10, 0.0  ;;  %v4118_v3 = vadd.f32 -4.0, %v6122_v13 }
 0x2ad   : > { %v5061_v58 = vpop.eup %5060  ;;  %v2468_v20 = vadd.f32 %v2436_v43, %v2404_v42  ;;  %v2529_v19 = vadd.f32 %v5059_v30, %v2528_v28  ;;  %5080 = vpow2.f32 %v2376_v60  ;;  %v4116_v11 = vadd.f32 -4.0, %v6126_v8  ;;  %v6156_v46 = vpop.f32.mrf.mxu0 }
 0x2ae   : > { %v5063_v61 = vpop.eup %5062  ;;  %v2434_v2 = vadd.f32 %v5061_v58, %v5059_v30  ;;  %v2180_v35 = vmul.f32 1.442695, %v2087_v38  ;;  %v2372_v24 = vmul.f32 1.442695, %v2311_v12  ;;  %v4117_v37 = vadd.f32 -4.0, %v6134_v18  ;;  %v2403_v12 = vld [vmem:[#allocation4 + $0xd0] sm:$0xff] }
 0x2af   : > { %v5065_v14 = vpop.eup %5064  ;;  %2500 = vst [vmem:[#allocation4 + $0x10] sm:$0xff] %v2468_v20  ;;  %v2090_v39 = vmin.f32 %v4116_v11, 0.0  ;;  %v1693_v13 = vpop.f32.mrf.mxu0  ;;  %v4119_v17 = vadd.f32 -4.0, %v6129_v25  ;;  %v2092_v42 = vmin.f32 %v4118_v3, 0.0  ;;  %v4120_v18 = vadd.f32 -4.0, %v6140_v6 }
 0x2b0   : > { %v5067_v27 = vpop.eup %5066  ;;  %v2466_v43 = vadd.f32 %v2434_v2, %v2402_v5  ;;  %v2437_v40 = vadd.f32 %v5065_v14, %v5063_v61  ;;  %5082 = vpow2.f32 %v2180_v35  ;;  %v2091_v60 = vmin.f32 %v4117_v37, 0.0  ;;  %v2408_v2 = vld [vmem:[#allocation4 + $0x20] sm:$0xff] }
 0x2b1   : > { %v2530_v8 = vadd.f32 %v5067_v27, %v2529_v19  ;;  %5084 = vpow2.f32 %v2372_v24  ;;  %v2186_v22 = vmul.f32 1.442695, %v2090_v39  ;;  %v6160_v10 = vpop.f32.mrf.mxu0  ;;  %v2093_v25 = vmin.f32 %v4119_v17, 0.0 }
 0x2b2   : > { %2498 = vst [vmem:[#allocation4 + $0xa8] sm:$0xff] %v2466_v43  ;;  %v2469_v28 = vadd.f32 %v2437_v40, %v2405_v56  ;;  %v2188_v19 = vmul.f32 1.442695, %v2091_v60  ;;  %v4122_v3 = vadd.f32 -4.0, %v6138_v55  ;;  %v2190_v35 = vmul.f32 1.442695, %v2092_v42 }
 0x2b3   : > { %v5069_v30 = vpop.eup %5068  ;;  %v2531_v38 = vadd.f32 %v5055_v53, %v2530_v8  ;;  %v6163_v58 = vpop.f32.mrf.mxu0  ;;  %5086 = vpow2.f32 %v2186_v22  ;;  %v2094_v24 = vmin.f32 %v4120_v18, 0.0  ;;  %v4121_v14 = vadd.f32 -4.0, %v6146_v7  ;;  %v2406_v55 = vld [vmem:[#allocation4 + $0xa0] sm:$0xff] }
 0x2b4   : > { %v5071_v20 = vpop.eup %5070  ;;  %2501 = vst [vmem:[#allocation4 + $0x28] sm:$0xff] %v2469_v28  ;;  %v2435_v5 = vadd.f32 %v5069_v30, %v5067_v27  ;;  %5088 = vpow2.f32 %v2188_v19  ;;  %v2192_v8 = vmul.f32 1.442695, %v2093_v25  ;;  %v4123_v42 = vadd.f32 -4.0, %v6144_v29 }
 0x2b5   : > { %v5073_v11 = vpop.eup %5072  ;;  %v6167_v53 = vpop.f32.mrf.mxu0  ;;  %v2532_v39 = vadd.f32 %v5063_v61, %v2531_v38  ;;  %v2095_v43 = vmin.f32 %v4121_v14, 0.0  ;;  %5090 = vpow2.f32 %v2190_v35  ;;  %v2194_v7 = vmul.f32 1.442695, %v2094_v24 }
 0x2b6   : > { %v2467_v56 = vadd.f32 %v2435_v5, %v2403_v12  ;;  %v2440_v6 = vadd.f32 %v5073_v11, %v5071_v20  ;;  %v4124_v60 = vadd.f32 -4.0, %v6152_v52  ;;  %v2409_v12 = vld [vmem:[#allocation4 + $0x98] sm:$0xff]  ;;  %v2096_v18 = vmin.f32 %v4122_v3, 0.0 }
 0x2b7   : > { %v5075_v37 = vpop.eup %5074  ;;  %v1709_v27 = vpop.f32.mrf.mxu0  ;;  %v2196_v5 = vmul.f32 1.442695, %v2095_v43  ;;  %v4125_v19 = vadd.f32 -4.0, %v1693_v13  ;;  %5092 = vpow2.f32 %v2192_v8  ;;  %v2097_v29 = vmin.f32 %v4123_v42, 0.0 }
 0x2b8   : > { %v5077_v40 = vpop.eup %5076  ;;  %2499 = vst [vmem:[#allocation4 + $0xd0] sm:$0xff] %v2467_v56  ;;  %v2472_v17 = vadd.f32 %v2440_v6, %v2408_v2  ;;  %v2533_v38 = vadd.f32 %v5075_v37, %v2532_v39  ;;  %5094 = vpow2.f32 %v2194_v7  ;;  %v4126_v52 = vadd.f32 -4.0, %v6149_v41 }
 0x2b9   : > { %v5079_v22 = vpop.eup %5078  ;;  %v2438_v28 = vadd.f32 %v5077_v40, %v5075_v37  ;;  %v6171_v30 = vpop.f32.mrf.mxu0  ;;  %v2098_v24 = vmin.f32 %v4124_v60, 0.0  ;;  %v2407_v37 = vld [vmem:[#allocation4 + $0xf8] sm:$0xff]  ;;  %v2198_v3 = vmul.f32 1.442695, %v2096_v18  ;;  %5096 = vpow2.f32 %v2196_v5 }
 0x2ba   : > { %v5081_v61 = vpop.eup %5080  ;;  %2504 = vst [vmem:[#allocation4 + $0x20] sm:$0xff] %v2472_v17  ;;  %v2099_v13 = vmin.f32 %v4125_v19, 0.0  ;;  %v4127_v8 = vadd.f32 -4.0, %v6156_v46  ;;  %v4128_v41 = vadd.f32 -4.0, %v6163_v58  ;;  %v4129_v18 = vadd.f32 -4.0, %v1709_v27 }
 0x2bb   : > { %v2470_v11 = vadd.f32 %v2438_v28, %v2406_v55  ;;  %v2441_v2 = vadd.f32 %v5081_v61, %v5079_v22  ;;  %v1722_v25 = vpop.f32.mrf.mxu0  ;;  %v2200_v55 = vmul.f32 1.442695, %v2097_v29  ;;  %v2100_v28 = vmin.f32 %v4126_v52, 0.0 }
 0x2bc   : > { %v2202_v7 = vmul.f32 1.442695, %v2098_v24  ;;  %5098 = vpow2.f32 %v2198_v3  ;;  %v2102_v46 = vmin.f32 %v4128_v41, 0.0  ;;  %v4130_v58 = vadd.f32 -4.0, %v6160_v10 }
 0x2bd   : > { %v5083_v14 = vpop.eup %5082  ;;  %2502 = vst [vmem:[#allocation4 + $0xa0] sm:$0xff] %v2470_v11  ;;  %v2473_v35 = vadd.f32 %v2441_v2, %v2409_v12  ;;  %v6174_v56 = vpop.f32.mrf.mxu0  ;;  %v2204_v12 = vmul.f32 1.442695, %v2099_v13  ;;  %5100 = vpow2.f32 %v2200_v55  ;;  %v2206_v2 = vmul.f32 1.442695, %v2100_v28 }
 0x2be   : > { %v5085_v6 = vpop.eup %5084  ;;  %v2534_v39 = vadd.f32 %v5083_v14, %v2533_v38  ;;  %5102 = vpow2.f32 %v2202_v7  ;;  %v2103_v52 = vmin.f32 %v4129_v18, 0.0  ;;  %v4131_v27 = vadd.f32 -4.0, %v6167_v53 }
 0x2bf   : > { %2505 = vst [vmem:[#allocation4 + $0x98] sm:$0xff] %v2473_v35  ;;  %v2439_v43 = vadd.f32 %v5085_v6, %v5083_v14  ;;  %v1725_v40 = vpop.f32.mrf.mxu0  ;;  %5104 = vpow2.f32 %v2204_v12  ;;  %v4132_v3 = vadd.f32 -4.0, %v1722_v25  ;;  %v2104_v55 = vmin.f32 %v4130_v58, 0.0 }
 0x2c0   : > { %v2535_v17 = vadd.f32 %v5071_v20, %v2534_v39  ;;  %v5087_v61 = vpop.eup %5086  ;;  %v2101_v20 = vmin.f32 %v4127_v8, 0.0  ;;  %5106 = vpow2.f32 %v2206_v2  ;;  %v2212_v8 = vmul.f32 1.442695, %v2103_v52 }
 0x2c1   : > { %v2471_v42 = vadd.f32 %v2439_v43, %v2407_v37  ;;  %v6178_v60 = vpop.f32.mrf.mxu0  ;;  %v5089_v5 = vpop.eup %5088  ;;  %v2210_v37 = vmul.f32 1.442695, %v2102_v46  ;;  %v2105_v41 = vmin.f32 %v4131_v27, 0.0  ;;  %v2106_v53 = vmin.f32 %v4132_v3, 0.0 }
 0x2c2   : > { %v2536_v38 = vadd.f32 %v5079_v22, %v2535_v17  ;;  %v5091_v14 = vpop.eup %5090  ;;  %v2208_v6 = vmul.f32 1.442695, %v2101_v20  ;;  %v2214_v18 = vmul.f32 1.442695, %v2104_v55 }
 0x2c3   : > { %2503 = vst [vmem:[#allocation4 + $0xf8] sm:$0xff] %v2471_v42  ;;  %v1738_v19 = vpop.f32.mrf.mxu0  ;;  %v4133_v42 = vadd.f32 -4.0, %v1725_v40  ;;  %v2216_v2 = vmul.f32 1.442695, %v2105_v41  ;;  %v4135_v40 = vadd.f32 -4.0, %v6174_v56  ;;  %v4138_v56 = vadd.f32 -4.0, %v6178_v60 }
 0x2c4   : > { %v2537_v11 = vadd.f32 %v5087_v61, %v2536_v38  ;;  %v5093_v39 = vpop.eup %5092  ;;  %5108 = vpow2.f32 %v2208_v6  ;;  %v4134_v61 = vadd.f32 -4.0, %v6171_v30  ;;  %v4136_v58 = vadd.f32 -4.0, %v1738_v19 }
 0x2c5   : > { %v4672_v29 = vpop.f32.mrf.mxu0  ;;  %v5095_v43 = vpop.eup %5094  ;;  %5110 = vpow2.f32 %v2210_v37  ;;  %v2107_v25 = vmin.f32 %v4133_v42, 0.0  ;;  %v2109_v3 = vmin.f32 %v4135_v40, 0.0 }
 0x2c6   : > { %v2538_v35 = vadd.f32 %v5089_v5, %v2537_v11  ;;  %v5097_v28 = vpop.eup %5096  ;;  %5112 = vpow2.f32 %v2212_v8  ;;  %v4139_v41 = vadd.f32 -4.0, %v4672_v29 }
 0x2c7   : > { %v1741_v22 = vpop.f32.mrf.mxu0  ;;  %5114 = vpow2.f32 %v2214_v18  ;;  %v2220_v30 = vmul.f32 1.442695, %v2107_v25  ;;  %v2112_v25 = vmin.f32 %v4138_v56, 0.0 }
 0x2c8   : > { %v2539_v24 = vadd.f32 %v5091_v14, %v2538_v35  ;;  %v2108_v14 = vmin.f32 %v4134_v61, 0.0  ;;  %v2218_v35 = vmul.f32 1.442695, %v2106_v53  ;;  %v4137_v6 = vadd.f32 -4.0, %v1741_v22 }
 0x2c9   : > { %v6182_v13 = vpop.f32.mrf.mxu0  ;;  %v5099_v5 = vpop.eup %5098  ;;  %5116 = vpow2.f32 %v2216_v2  ;;  %v2230_v29 = vmul.f32 1.442695, %v2112_v25 }
 0x2ca   : > { %v2540_v17 = vadd.f32 %v5093_v39, %v2539_v24  ;;  %v5101_v46 = vpop.eup %5100  ;;  %5118 = vpow2.f32 %v2218_v35  ;;  %v2111_v42 = vmin.f32 %v4137_v6, 0.0  ;;  %v4142_v60 = vadd.f32 -4.0, %v6182_v13 }
 0x2cb   : > { %v1754_v7 = vpop.f32.mrf.mxu0  ;;  %v5103_v52 = vpop.eup %5102  ;;  %5120 = vpow2.f32 %v2220_v30 }
 0x2cc   : > { %v2541_v10 = vadd.f32 %v5095_v43, %v2540_v17  ;;  %v5105_v27 = vpop.eup %5104  ;;  %v2222_v43 = vmul.f32 1.442695, %v2108_v14  ;;  %v2110_v17 = vmin.f32 %v4136_v58, 0.0  ;;  %v4140_v53 = vadd.f32 -4.0, %v1754_v7 }
 0x2cd   : > { %v4676_v38 = vpop.f32.mrf.mxu0  ;;  %v5107_v55 = vpop.eup %5106  ;;  %v2113_v14 = vmin.f32 %v4139_v41, 0.0 }
 0x2ce   : > { %v2542_v12 = vadd.f32 %v5097_v28, %v2541_v10  ;;  %v2224_v10 = vmul.f32 1.442695, %v2109_v3  ;;  %5122 = vpow2.f32 %v2222_v43  ;;  %v2226_v22 = vmul.f32 1.442695, %v2110_v17 }
 0x2cf   : > { %v1757_v11 = vpop.f32.mrf.mxu0  ;;  %v2114_v35 = vmin.f32 %v4140_v53, 0.0  ;;  %v2232_v6 = vmul.f32 1.442695, %v2113_v14 }
 0x2d0   : > { %v2543_v20 = vadd.f32 %v5099_v5, %v2542_v12  ;;  %v2228_v5 = vmul.f32 1.442695, %v2111_v42  ;;  %5124 = vpow2.f32 %v2224_v10 }
 0x2d1   : > { %v4679_v39 = vpop.f32.mrf.mxu0  ;;  %v5109_v61 = vpop.eup %5108  ;;  %5126 = vpow2.f32 %v2226_v22  ;;  %v2234_v3 = vmul.f32 1.442695, %v2114_v35 }
 0x2d2   : > { %v2544_v24 = vadd.f32 %v5101_v46, %v2543_v20  ;;  %v5111_v12 = vpop.eup %5110  ;;  %v4141_v20 = vadd.f32 -4.0, %v1757_v11  ;;  %5128 = vpow2.f32 %v2228_v5  ;;  %v2116_v11 = vmin.f32 %v4142_v60, 0.0 }
 0x2d3   : > { %v1770_v19 = vpop.f32.mrf.mxu0  ;;  %v5113_v2 = vpop.eup %5112  ;;  %5130 = vpow2.f32 %v2230_v29 }
 0x2d4   : > { %v2545_v37 = vadd.f32 %v5103_v52, %v2544_v24  ;;  %v2115_v52 = vmin.f32 %v4141_v20, 0.0  ;;  %v5115_v24 = vpop.eup %5114  ;;  %v4144_v43 = vadd.f32 -4.0, %v1770_v19  ;;  %5132 = vpow2.f32 %v2232_v6 }
 0x2d5   : > { %v4680_v40 = vpop.f32.mrf.mxu0  ;;  %v2238_v10 = vmul.f32 1.442695, %v2116_v11  ;;  %5134 = vpow2.f32 %v2234_v3 }
 0x2d6   : > { %v2546_v8 = vadd.f32 %v5105_v27, %v2545_v37  ;;  %v4143_v27 = vadd.f32 -4.0, %v4676_v38  ;;  %v5117_v37 = vpop.eup %5116  ;;  %v2118_v41 = vmin.f32 %v4144_v43, 0.0  ;;  %v4146_v38 = vadd.f32 -4.0, %v4679_v39 }
 0x2d7   : > { %v1773_v7 = vpop.f32.mrf.mxu0  ;;  %v5119_v17 = vpop.eup %5118  ;;  %v4147_v19 = vadd.f32 -4.0, %v4680_v40 }
 0x2d8   : > { %v2547_v28 = vadd.f32 %v5107_v55, %v2546_v8  ;;  %v2236_v8 = vmul.f32 1.442695, %v2115_v52  ;;  %v4145_v56 = vadd.f32 -4.0, %v1773_v7  ;;  %v5121_v13 = vpop.eup %5120  ;;  %v2242_v5 = vmul.f32 1.442695, %v2118_v41 }
 0x2da   : > { %v2548_v18 = vadd.f32 %v5109_v61, %v2547_v28  ;;  %v2117_v28 = vmin.f32 %v4143_v27, 0.0  ;;  %5136 = vpow2.f32 %v2236_v8  ;;  %v2119_v53 = vmin.f32 %v4145_v56, 0.0 }
 0x2db   : > { %v5123_v61 = vpop.eup %5122  ;;  %5138 = vpow2.f32 %v2238_v10 }
 0x2dc   : > { %v2549_v46 = vadd.f32 %v5111_v12, %v2548_v18  ;;  %v2240_v18 = vmul.f32 1.442695, %v2117_v28  ;;  %v2244_v14 = vmul.f32 1.442695, %v2119_v53 }
 0x2dd   : > { %v5125_v25 = vpop.eup %5124 }
 0x2de   : > { %v2550_v58 = vadd.f32 %v5113_v2, %v2549_v46  ;;  %v5127_v20 = vpop.eup %5126  ;;  %v2120_v46 = vmin.f32 %v4146_v38, 0.0  ;;  %5140 = vpow2.f32 %v2240_v18 }
 0x2df   : > { %v5129_v60 = vpop.eup %5128  ;;  %5142 = vpow2.f32 %v2242_v5 }
 0x2e0   : > { %v2551_v30 = vadd.f32 %v5115_v24, %v2550_v58  ;;  %v2121_v58 = vmin.f32 %v4147_v19, 0.0  ;;  %v2246_v52 = vmul.f32 1.442695, %v2120_v46  ;;  %5144 = vpow2.f32 %v2244_v14  ;;  %v5131_v39 = vpop.eup %5130 }
 0x2e2   : > { %v2552_v55 = vadd.f32 %v5117_v37, %v2551_v30  ;;  %v2248_v7 = vmul.f32 1.442695, %v2121_v58  ;;  %v5133_v30 = vpop.eup %5132  ;;  %5146 = vpow2.f32 %v2246_v52 }
 0x2e3   : > { %v5135_v40 = vpop.eup %5134 }
 0x2e4   : > { %v2553_v42 = vadd.f32 %v5119_v17, %v2552_v55  ;;  %5148 = vpow2.f32 %v2248_v7 }
 0x2e6   : > { %v2554_v22 = vadd.f32 %v5121_v13, %v2553_v42 }
 0x2e7   : > { %v5137_v27 = vpop.eup %5136 }
 0x2e8   : > { %v2555_v12 = vadd.f32 %v5123_v61, %v2554_v22  ;;  %v5139_v3 = vpop.eup %5138 }
 0x2ea   : > { %v2556_v2 = vadd.f32 %v5125_v25, %v2555_v12  ;;  %v7324_v12 = vlaneseq }
 0x2eb   : > { %v5141_v17 = vpop.eup %5140 }
 0x2ec   : > { %v2557_v35 = vadd.f32 %v5127_v20, %v2556_v2  ;;  %v5143_v55 = vpop.eup %5142  ;;  %vm2580_vm0 = vcmp.lt.s32.totalorder %v7324_v12, 128 }
 0x2ed   : > { %v5145_v56 = vpop.eup %5144 }
 0x2ee   : > { %v2558_v29 = vadd.f32 %v5129_v60, %v2557_v35 }
 0x2ef   : > { %v5147_v28 = vpop.eup %5146 }
 0x2f0   : > { %v2559_v24 = vadd.f32 %v5131_v39, %v2558_v29 }
 0x2f1   : > { %v5149_v41 = vpop.eup %5148 }
 0x2f2   : > { %v2560_v6 = vadd.f32 %v5133_v30, %v2559_v24 }
 0x2f4   : > { %v2561_v37 = vadd.f32 %v5135_v40, %v2560_v6 }
 0x2f6   : > { %v2562_v11 = vadd.f32 %v5137_v27, %v2561_v37 }
 0x2f8   : > { %v2563_v43 = vadd.f32 %v5139_v3, %v2562_v11 }
 0x2fa   : > { %v2564_v8 = vadd.f32 %v5141_v17, %v2563_v43 }
 0x2fc   : > { %v2565_v13 = vadd.f32 %v5143_v55, %v2564_v8 }
 0x2fe   : > { %v2566_v42 = vadd.f32 %v5145_v56, %v2565_v13 }
 0x300   : > { %v2567_v10 = vadd.f32 %v5147_v28, %v2566_v42 }
 0x302   : > { %v2568_v61 = vadd.f32 %v5149_v41, %v2567_v10 }
 0x304   : > { %v2569_v22 = vrot.slane %v2568_v61, 4 }
 0x306   : > { %v2570_v38 = vadd.f32 %v2569_v22, %v2568_v61 }
 0x308   : > { %v2571_v53 = vrot.slane %v2570_v38, 2 }
 0x30a   : > { %v2572_v18 = vadd.f32 %v2571_v53, %v2570_v38 }
 0x30c   : > { %v2573_v19 = vrot.slane %v2572_v18, 1  ;;  %2586 = sbr.rel (%p4180_p4) target bundleno = 1557 (0x615), region = 66 }
 0x30e   : > { %v2574_v25 = vadd.f32 %v2573_v19, %v2572_v18 }
 0x310   : > { %2582 = vst.msk [vmem:[%s2577_s26] sm:$0x1] %vm2580_vm0, %v2574_v25 }
 0x311   : > { %v6192_v5 = vunpack.c.l.bf16 %v5945_v51  ;;  %v6195_v20 = vunpack.c.l.bf16 %v6008_v34  ;;  %v6198_v2 = vunpack.c.l.bf16 %v5919_v54  ;;  %v6201_v46 = vunpack.c.l.bf16 %v6003_v15 }
 0x312   : > { %v6204_v14 = vunpack.c.h.bf16 %v5945_v51  ;;  %v6207_v60 = vunpack.c.h.bf16 %v6008_v34  ;;  %v6210_v35 = vunpack.c.h.bf16 %v5919_v54  ;;  %v6213_v58 = vunpack.c.h.bf16 %v6003_v15 }
 0x313   : > { %v2653_v29 = vmul.f32 %v6195_v20, %v6192_v5  ;;  %v2651_v52 = vmul.f32 %v6201_v46, %v6198_v2  ;;  %v6220_v39 = vunpack.c.h.bf16 %v5947_v21  ;;  %v6223_v51 = vunpack.c.h.bf16 %v6010_v23 }
 0x314   : > { %v2654_v54 = vmul.f32 %v6207_v60, %v6204_v14  ;;  %v2652_v15 = vmul.f32 %v6213_v58, %v6210_v35  ;;  %v6230_v34 = vunpack.c.l.bf16 %v5947_v21  ;;  %v6233_v24 = vunpack.c.l.bf16 %v6010_v23 }
 0x315   : > { %2687 = vadd.xlane.f32.xlu1 %v2653_v29  ;;  %2683 = vadd.xlane.f32.xlu0 %v2651_v52  ;;  %v2656_v7 = vmul.f32 %v6223_v51, %v6220_v39  ;;  %v6238_v30 = vunpack.c.h.bf16 %v5952_v4  ;;  %v6243_v6 = vunpack.c.h.bf16 %v6014_v62  ;;  %v6246_v21 = vunpack.c.l.bf16 %v5952_v4 }
 0x316   : > { %v2655_v40 = vmul.f32 %v6233_v24, %v6230_v34  ;;  %v6249_v23 = vunpack.c.l.bf16 %v6014_v62  ;;  %v6252_v27 = vunpack.c.h.bf16 %v5955_v32  ;;  %v6255_v37 = vunpack.c.h.bf16 %v6016_v33 }
 0x317   : > { %v2658_v11 = vmul.f32 %v6243_v6, %v6238_v30  ;;  %v6262_v4 = vunpack.c.l.bf16 %v5955_v32  ;;  %v6265_v62 = vunpack.c.l.bf16 %v6016_v33  ;;  %v6270_v17 = vunpack.c.h.bf16 %v5960_v47 }
 0x318   : > { %v2657_v3 = vmul.f32 %v6249_v23, %v6246_v21  ;;  %v2660_v43 = vmul.f32 %v6255_v37, %v6252_v27  ;;  %v6275_v8 = vunpack.c.h.bf16 %v6020_v9  ;;  %v6278_v32 = vunpack.c.l.bf16 %v5960_v47 }
 0x319   : > { %2689 = vadd.xlane.f32.xlu1 %v2654_v54  ;;  %2685 = vadd.xlane.f32.xlu0 %v2652_v15  ;;  %v2659_v55 = vmul.f32 %v6265_v62, %v6262_v4  ;;  %v6281_v33 = vunpack.c.l.bf16 %v6020_v9  ;;  %v6284_v56 = vunpack.c.h.bf16 %v5963_v0  ;;  %v6287_v13 = vunpack.c.h.bf16 %v6022_v48 }
 0x31a   : > { %v2662_v42 = vmul.f32 %v6275_v8, %v6270_v17  ;;  %v6294_v47 = vunpack.c.l.bf16 %v5963_v0  ;;  %v6297_v9 = vunpack.c.l.bf16 %v6022_v48  ;;  %v6302_v41 = vunpack.c.h.bf16 %v5968_v31 }
 0x31b   : > { %v2661_v28 = vmul.f32 %v6281_v33, %v6278_v32  ;;  %v2664_v10 = vmul.f32 %v6287_v13, %v6284_v56  ;;  %v6307_v22 = vunpack.c.h.bf16 %v6026_v45  ;;  %v6310_v0 = vunpack.c.l.bf16 %v5968_v31 }
 0x31c   : > { %v2663_v61 = vmul.f32 %v6297_v9, %v6294_v47  ;;  %v6313_v48 = vunpack.c.l.bf16 %v6026_v45  ;;  %v6316_v38 = vunpack.c.h.bf16 %v5971_v1  ;;  %v6319_v53 = vunpack.c.h.bf16 %v6028_v57 }
 0x31d   : > { %2693 = vadd.xlane.f32.xlu1 %v2656_v7  ;;  %2691 = vadd.xlane.f32.xlu0 %v2655_v40  ;;  %v2666_v18 = vmul.f32 %v6307_v22, %v6302_v41  ;;  %v6326_v31 = vunpack.c.l.bf16 %v5971_v1  ;;  %v6329_v45 = vunpack.c.l.bf16 %v6028_v57  ;;  %v6334_v29 = vunpack.c.h.bf16 %v5976_v44 }
 0x31e   : > { %v2665_v19 = vmul.f32 %v6313_v48, %v6310_v0  ;;  %v2668_v25 = vmul.f32 %v6319_v53, %v6316_v38  ;;  %v6339_v54 = vunpack.c.h.bf16 %v6032_v63  ;;  %v6342_v1 = vunpack.c.l.bf16 %v5976_v44 }
 0x31f   : > { %v2667_v52 = vmul.f32 %v6329_v45, %v6326_v31  ;;  %v6345_v57 = vunpack.c.l.bf16 %v6032_v63  ;;  %v6348_v15 = vunpack.c.h.bf16 %v5979_v50  ;;  %v6351_v7 = vunpack.c.h.bf16 %v6034_v49 }
 0x320   : > { %v2670_v40 = vmul.f32 %v6339_v54, %v6334_v29  ;;  %v6358_v44 = vunpack.c.l.bf16 %v5979_v50  ;;  %v6361_v63 = vunpack.c.l.bf16 %v6034_v49  ;;  %v6374_v50 = vunpack.c.l.bf16 %v5984_v16 }
 0x321   : > { %2697 = vadd.xlane.f32.xlu1 %v2658_v11  ;;  %2695 = vadd.xlane.f32.xlu0 %v2657_v3  ;;  %v2669_v11 = vmul.f32 %v6345_v57, %v6342_v1  ;;  %v2672_v3 = vmul.f32 %v6351_v7, %v6348_v15  ;;  %v6377_v49 = vunpack.c.l.bf16 %v6038_v26  ;;  %vm3762_vm1 = vcmask 7168  }
 0x322   : > { %7424 = vst [vmem:[#allocation39_spill] sm:$0xff] %v6361_v63  ;;  %vm3854_vm2 = vcmask 1040384  }
 0x323   : > { %7426 = vst [vmem:[#allocation41_spill] sm:$0xff] %v6377_v49 }
 0x325   : > { %2701 = vadd.xlane.f32.xlu1 %v2660_v43  ;;  %2699 = vadd.xlane.f32.xlu0 %v2659_v55  ;;  %v6366_v43 = vunpack.c.h.bf16 %v5984_v16  ;;  %v2671_v55 = vmul.f32 %v6361_v63, %v6358_v44  ;;  %v6390_v16 = vunpack.c.l.bf16 %v5987_v59 }
 0x329   : > { %2705 = vadd.xlane.f32.xlu1 %v2662_v42  ;;  %2703 = vadd.xlane.f32.xlu0 %v2661_v28  ;;  %v6371_v42 = vunpack.c.h.bf16 %v6038_v26  ;;  %v6380_v28 = vunpack.c.h.bf16 %v5987_v59  ;;  %v6393_v26 = vunpack.c.l.bf16 %v6040_v36 }
 0x32b   : > { %7425 = vst [vmem:[#allocation40_spill] sm:$0xff] %v6371_v42  ;;  %7428 = vst [vmem:[#allocation43_spill] sm:$0xff] %v6393_v26 }
 0x32d   : > { %2709 = vadd.xlane.f32.xlu1 %v2664_v10  ;;  %2707 = vadd.xlane.f32.xlu0 %v2663_v61  ;;  %v6383_v10 = vunpack.c.h.bf16 %v6040_v36  ;;  %v2674_v61 = vmul.f32 %v6371_v42, %v6366_v43  ;;  %v7435_v42 = vld [vmem:[#allocation35_spill] sm:$0xff] }
 0x32e   : > { %v6430_v63 = vunpack.c.h.bf16 %v7435_v42 }
 0x32f   : > { %7427 = vst [vmem:[#allocation42_spill] sm:$0xff] %v6383_v10 }
 0x331   : > { %2713 = vadd.xlane.f32.xlu1 %v2666_v18  ;;  %2711 = vadd.xlane.f32.xlu0 %v2665_v19  ;;  %v2673_v18 = vmul.f32 %v6377_v49, %v6374_v50  ;;  %v2676_v19 = vmul.f32 %v6383_v10, %v6380_v28  ;;  %v7433_v10 = vld [vmem:[#allocation37_spill] sm:$0xff] }
 0x332   : > { %v6415_v49 = vunpack.c.h.bf16 %v7433_v10 }
 0x334   : > { %7434 = vst [vmem:[#allocation45_spill] sm:$0xff] %v6415_v49 }
 0x335   : > { %2717 = vadd.xlane.f32.xlu1 %v2668_v25  ;;  %2715 = vadd.xlane.f32.xlu0 %v2667_v52  ;;  %v7429_v25 = vld [vmem:[#allocation33_spill] sm:$0xff] }
 0x336   : > { %v6398_v52 = vunpack.c.h.bf16 %v7429_v25  ;;  %v6406_v59 = vunpack.c.l.bf16 %v7429_v25 }
 0x339   : > { %2721 = vadd.xlane.f32.xlu1 %v2670_v40  ;;  %2719 = vadd.xlane.f32.xlu0 %v2669_v11  ;;  %v2675_v40 = vmul.f32 %v6393_v26, %v6390_v16  ;;  %v7430_v11 = vld [vmem:[#allocation36_spill] sm:$0xff] }
 0x33a   : > { %v6409_v36 = vunpack.c.l.bf16 %v7430_v11 }
 0x33d   : > { %2725 = vadd.xlane.f32.xlu1 %v2672_v3  ;;  %2723 = vadd.xlane.f32.xlu0 %v2671_v55  ;;  %v6403_v3 = vunpack.c.h.bf16 %v7430_v11  ;;  %v7432_v55 = vld [vmem:[#allocation34_spill] sm:$0xff]  ;;  %v6425_v11 = vunpack.c.l.bf16 %v7433_v10 }
 0x33e   : > { %v6412_v12 = vunpack.c.h.bf16 %v7432_v55  ;;  %v6422_v25 = vunpack.c.l.bf16 %v7432_v55  ;;  %v6438_v55 = vunpack.c.l.bf16 %v7435_v42  ;;  %v2747_v42 = vmul.f32 %v6198_v2, %v6198_v2 }
 0x33f   : > { %7431 = vst [vmem:[#allocation44_spill] sm:$0xff] %v6403_v3  ;;  %v2754_v2 = vmul.f32 %v6238_v30, %v6238_v30  ;;  %v2760_v30 = vmul.f32 %v6284_v56, %v6284_v56  ;;  %v2766_v56 = vmul.f32 %v6334_v29, %v6334_v29  ;;  %v2772_v29 = vmul.f32 %v6380_v28, %v6380_v28 }
 0x340   : > { %v2680_v26 = vmul.f32 %v6415_v49, %v6412_v12  ;;  %v2778_v28 = vmul.f32 %v6430_v63, %v6430_v63 }
 0x341   : > { %2729 = vadd.xlane.f32.xlu1 %v2674_v61  ;;  %2727 = vadd.xlane.f32.xlu0 %v2673_v18  ;;  %v2678_v61 = vmul.f32 %v6403_v3, %v6398_v52  ;;  %v2677_v18 = vmul.f32 %v6409_v36, %v6406_v59 }
 0x345   : > { %2733 = vadd.xlane.f32.xlu1 %v2676_v19  ;;  %2731 = vadd.xlane.f32.xlu0 %v2675_v40  ;;  %v2679_v19 = vmul.f32 %v6425_v11, %v6422_v25  ;;  %v7436_v40 = vld [vmem:[#allocation38_spill] sm:$0xff] }
 0x346   : > { %v6435_v3 = vunpack.c.h.bf16 %v7436_v40  ;;  %v6441_v10 = vunpack.c.l.bf16 %v7436_v40  ;;  %v2751_v40 = vmul.f32 %v6230_v34, %v6230_v34  ;;  %v2757_v34 = vmul.f32 %v6278_v32, %v6278_v32 }
 0x347   : > { %v2763_v32 = vmul.f32 %v6326_v31, %v6326_v31  ;;  %v2769_v31 = vmul.f32 %v6374_v50, %v6374_v50  ;;  %v2775_v50 = vmul.f32 %v6422_v25, %v6422_v25  ;;  %v2845_v25 = vmul.f32 %v6195_v20, %v6195_v20 }
 0x348   : > { %v2682_v49 = vmul.f32 %v6435_v3, %v6430_v63  ;;  %v2848_v63 = vmul.f32 %v6223_v51, %v6223_v51  ;;  %v2852_v20 = vmul.f32 %v6255_v37, %v6255_v37  ;;  %v2851_v51 = vmul.f32 %v6265_v62, %v6265_v62 }
 0x349   : > { %2737 = vadd.xlane.f32.xlu1 %v2678_v61  ;;  %2735 = vadd.xlane.f32.xlu0 %v2677_v18  ;;  %v2681_v61 = vmul.f32 %v6441_v10, %v6438_v55  ;;  %v2748_v18 = vmul.f32 %v6210_v35, %v6210_v35  ;;  %v2753_v35 = vmul.f32 %v6246_v21, %v6246_v21 }
 0x34a   : > { %v2759_v21 = vmul.f32 %v6294_v47, %v6294_v47  ;;  %v2765_v47 = vmul.f32 %v6342_v1, %v6342_v1  ;;  %v2771_v1 = vmul.f32 %v6390_v16, %v6390_v16  ;;  %v2777_v16 = vmul.f32 %v6438_v55, %v6438_v55 }
 0x34b   : > { %v2847_v55 = vmul.f32 %v6233_v24, %v6233_v24  ;;  %v2853_v37 = vmul.f32 %v6281_v33, %v6281_v33 }
 0x34d   : > { %2741 = vadd.xlane.f32.xlu1 %v2680_v26  ;;  %2739 = vadd.xlane.f32.xlu0 %v2679_v19  ;;  %v2750_v26 = vmul.f32 %v6204_v14, %v6204_v14  ;;  %v2749_v19 = vmul.f32 %v6192_v5, %v6192_v5  ;;  %v2756_v5 = vmul.f32 %v6252_v27, %v6252_v27 }
 0x34e   : > { %v2755_v14 = vmul.f32 %v6262_v4, %v6262_v4  ;;  %v2762_v27 = vmul.f32 %v6302_v41, %v6302_v41  ;;  %v2761_v4 = vmul.f32 %v6310_v0, %v6310_v0  ;;  %v2768_v41 = vmul.f32 %v6348_v15, %v6348_v15 }
 0x34f   : > { %v2767_v0 = vmul.f32 %v6358_v44, %v6358_v44  ;;  %v2774_v15 = vmul.f32 %v6398_v52, %v6398_v52  ;;  %v2773_v44 = vmul.f32 %v6406_v59, %v6406_v59  ;;  %v2844_v52 = vmul.f32 %v6213_v58, %v6213_v58 }
 0x350   : > { %v2843_v59 = vmul.f32 %v6201_v46, %v6201_v46  ;;  %v2850_v46 = vmul.f32 %v6243_v6, %v6243_v6  ;;  %v2849_v58 = vmul.f32 %v6249_v23, %v6249_v23 }
 0x351   : > { %2745 = vadd.xlane.f32.xlu1 %v2682_v49  ;;  %2743 = vadd.xlane.f32.xlu0 %v2681_v61  ;;  %v2752_v49 = vmul.f32 %v6220_v39, %v6220_v39  ;;  %v2758_v39 = vmul.f32 %v6270_v17, %v6270_v17  ;;  %v2764_v17 = vmul.f32 %v6316_v38, %v6316_v38 }
 0x352   : > { %v2770_v38 = vmul.f32 %v6366_v43, %v6366_v43  ;;  %v2776_v43 = vmul.f32 %v6412_v12, %v6412_v12  ;;  %v2846_v12 = vmul.f32 %v6207_v60, %v6207_v60 }
 0x355   : > { %2781 = vadd.xlane.f32.xlu1 %v2748_v18  ;;  %2779 = vadd.xlane.f32.xlu0 %v2747_v42 }
 0x359   : > { %2785 = vadd.xlane.f32.xlu1 %v2750_v26  ;;  %2783 = vadd.xlane.f32.xlu0 %v2749_v19 }
 0x35d   : > { %2789 = vadd.xlane.f32.xlu1 %v2752_v49  ;;  %2787 = vadd.xlane.f32.xlu0 %v2751_v40  ;;  %v2854_v49 = vmul.f32 %v6275_v8, %v6275_v8 }
 0x361   : > { %2793 = vadd.xlane.f32.xlu1 %v2754_v2  ;;  %2791 = vadd.xlane.f32.xlu0 %v2753_v35 }
 0x365   : > { %2797 = vadd.xlane.f32.xlu1 %v2756_v5  ;;  %2795 = vadd.xlane.f32.xlu0 %v2755_v14 }
 0x369   : > { %2801 = vadd.xlane.f32.xlu1 %v2758_v39  ;;  %2799 = vadd.xlane.f32.xlu0 %v2757_v34 }
 0x36d   : > { %2805 = vadd.xlane.f32.xlu1 %v2760_v30  ;;  %2803 = vadd.xlane.f32.xlu0 %v2759_v21  ;;  %v2856_v21 = vmul.f32 %v6287_v13, %v6287_v13 }
 0x371   : > { %2809 = vadd.xlane.f32.xlu1 %v2762_v27  ;;  %2807 = vadd.xlane.f32.xlu0 %v2761_v4  ;;  %v2855_v27 = vmul.f32 %v6297_v9, %v6297_v9 }
 0x375   : > { %2813 = vadd.xlane.f32.xlu1 %v2764_v17  ;;  %2811 = vadd.xlane.f32.xlu0 %v2763_v32 }
 0x379   : > { %2817 = vadd.xlane.f32.xlu1 %v2766_v56  ;;  %2815 = vadd.xlane.f32.xlu0 %v2765_v47 }
 0x37d   : > { %2821 = vadd.xlane.f32.xlu1 %v2768_v41  ;;  %2819 = vadd.xlane.f32.xlu0 %v2767_v0 }
 0x381   : > { %2825 = vadd.xlane.f32.xlu1 %v2770_v38  ;;  %2823 = vadd.xlane.f32.xlu0 %v2769_v31  ;;  %v2858_v31 = vmul.f32 %v6307_v22, %v6307_v22 }
 0x385   : > { %2829 = vadd.xlane.f32.xlu1 %v2772_v29  ;;  %2827 = vadd.xlane.f32.xlu0 %v2771_v1  ;;  %v2857_v29 = vmul.f32 %v6313_v48, %v6313_v48 }
 0x389   : > { %2833 = vadd.xlane.f32.xlu1 %v2774_v15  ;;  %2831 = vadd.xlane.f32.xlu0 %v2773_v44 }
 0x38d   : > { %2837 = vadd.xlane.f32.xlu1 %v2776_v43  ;;  %2835 = vadd.xlane.f32.xlu0 %v2775_v50 }
 0x391   : > { %2841 = vadd.xlane.f32.xlu1 %v2778_v28  ;;  %2839 = vadd.xlane.f32.xlu0 %v2777_v16 }
 0x395   : > { %2877 = vadd.xlane.f32.xlu1 %v2844_v52  ;;  %2875 = vadd.xlane.f32.xlu0 %v2843_v59 }
 0x399   : > { %2881 = vadd.xlane.f32.xlu1 %v2846_v12  ;;  %2879 = vadd.xlane.f32.xlu0 %v2845_v25  ;;  %v2860_v12 = vmul.f32 %v6319_v53, %v6319_v53  ;;  %v2859_v25 = vmul.f32 %v6329_v45, %v6329_v45  ;;  %v2862_v45 = vmul.f32 %v6339_v54, %v6339_v54 }
 0x39d   : > { %2885 = vadd.xlane.f32.xlu1 %v2848_v63  ;;  %2883 = vadd.xlane.f32.xlu0 %v2847_v55 }
 0x39e   : > { %v2688_v60 = vpop.xlane.xlu1 %2687  ;;  %v2684_v61 = vpop.xlane.xlu0 %2683 }
 0x39f   : > { %v6527_v18 = vadd.f32 -4.0, %v2684_v61  ;;  %v6533_v24 = vadd.f32 -4.0, %v2688_v60 }
 0x3a1   : > { %2889 = vadd.xlane.f32.xlu1 %v2850_v46  ;;  %2887 = vadd.xlane.f32.xlu0 %v2849_v58  ;;  %v7364_v42 = vmin.f32 %v6527_v18, 0.0  ;;  %v7361_v62 = vmin.f32 %v6533_v24, 0.0 }
 0x3a2   : > { %v2690_v6 = vpop.xlane.xlu1 %2689  ;;  %v2686_v26 = vpop.xlane.xlu0 %2685 }
 0x3a3   : > { %v6536_v19 = vadd.f32 -4.0, %v2690_v6  ;;  %v6538_v23 = vadd.f32 -4.0, %v2686_v26  ;;  %v3763_v40 = vsel %vm3762_vm1, %v7364_v42, 0.0  ;;  %v3766_v4 = vsel %vm3762_vm1, %v7361_v62, 0.0  ;;  %v3336_v62 = vld [vmem:[#allocation4 + $0xf0] sm:$0xff] }
 0x3a4   : > { %v2861_v6 = vmul.f32 %v6345_v57, %v6345_v57 }
 0x3a5   : > { %2893 = vadd.xlane.f32.xlu1 %v2852_v20  ;;  %2891 = vadd.xlane.f32.xlu0 %v2851_v51  ;;  %v7363_v2 = vmin.f32 %v6538_v23, 0.0  ;;  %v7359_v14 = vmin.f32 %v6536_v19, 0.0 }
 0x3a6   : > { %v2694_v35 = vpop.xlane.xlu1 %2693  ;;  %v2692_v5 = vpop.xlane.xlu0 %2691 }
 0x3a7   : > { %v6550_v39 = vadd.f32 -4.0, %v2692_v5  ;;  %v3764_v8 = vsel %vm3762_vm1, %v7363_v2, 0.0  ;;  %v6555_v34 = vadd.f32 -4.0, %v2694_v35  ;;  %v3768_v56 = vsel %vm3762_vm1, %v7359_v14, 0.0  ;;  %v3335_v14 = vld [vmem:[#allocation4 + $0x60] sm:$0xff]  ;;  %v3337_v2 = vld [vmem:[#allocation4 + $0x8] sm:$0xff] }
 0x3a8   : > { %v3765_v33 = vadd.f32 %v3764_v8, %v3763_v40 }
 0x3a9   : > { %v7357_v30 = vmin.f32 %v6550_v39, 0.0  ;;  %2897 = vadd.xlane.f32.xlu1 %v2854_v49  ;;  %2895 = vadd.xlane.f32.xlu0 %v2853_v37  ;;  %v7355_v41 = vmin.f32 %v6555_v34, 0.0 }
 0x3aa   : > { %v2698_v17 = vpop.xlane.xlu1 %2697  ;;  %v2696_v32 = vpop.xlane.xlu0 %2695  ;;  %v3767_v47 = vadd.f32 %v3766_v4, %v3765_v33  ;;  %v7437_v4 = vld [vmem:[#allocation39_spill] sm:$0xff] }
 0x3ab   : > { %v3770_v13 = vsel %vm3762_vm1, %v7357_v30, 0.0  ;;  %v6572_v0 = vadd.f32 -4.0, %v2698_v17  ;;  %v6574_v9 = vadd.f32 -4.0, %v2696_v32  ;;  %v3772_v16 = vsel %vm3762_vm1, %v7355_v41, 0.0  ;;  %v3333_v41 = vld [vmem:[#allocation4 + $0xe8] sm:$0xff]  ;;  %v3334_v30 = vld [vmem:[#allocation4 + $0xb8] sm:$0xff] }
 0x3ac   : > { %v3769_v38 = vadd.f32 %v3768_v56, %v3767_v47  ;;  %v2863_v17 = vmul.f32 %v7437_v4, %v7437_v4 }
 0x3ad   : > { %2901 = vadd.xlane.f32.xlu1 %v2856_v21  ;;  %2899 = vadd.xlane.f32.xlu0 %v2855_v27  ;;  %v7353_v1 = vmin.f32 %v6574_v9, 0.0  ;;  %v7351_v50 = vmin.f32 %v6572_v0, 0.0  ;;  %v2864_v27 = vmul.f32 %v6351_v7, %v6351_v7 }
 0x3ae   : > { %v2702_v15 = vpop.xlane.xlu1 %2701  ;;  %v2700_v44 = vpop.xlane.xlu0 %2699  ;;  %v3771_v43 = vadd.f32 %v3770_v13, %v3769_v38 }
 0x3af   : > { %v6582_v28 = vadd.f32 -4.0, %v2700_v44  ;;  %v3774_v22 = vsel %vm3762_vm1, %v7353_v1, 0.0  ;;  %v6590_v52 = vadd.f32 -4.0, %v2702_v15  ;;  %v3776_v46 = vsel %vm3762_vm1, %v7351_v50, 0.0  ;;  %v7438_v44 = vld [vmem:[#allocation40_spill] sm:$0xff]  ;;  %v3345_v50 = vld [vmem:[#allocation4 + $0x70] sm:$0xff] }
 0x3b0   : > { %v3773_v48 = vadd.f32 %v3772_v16, %v3771_v43  ;;  %v2866_v43 = vmul.f32 %v7438_v44, %v7438_v44  ;;  %v7439_v16 = vld [vmem:[#allocation41_spill] sm:$0xff]  ;;  %v2869_v44 = vmul.f32 %v6409_v36, %v6409_v36 }
 0x3b1   : > { %v7343_v59 = vmin.f32 %v6582_v28, 0.0  ;;  %2905 = vadd.xlane.f32.xlu1 %v2858_v31  ;;  %2903 = vadd.xlane.f32.xlu0 %v2857_v29  ;;  %v7348_v60 = vmin.f32 %v6590_v52, 0.0  ;;  %v3347_v1 = vld [vmem:[#allocation4 + $0xa8] sm:$0xff] }
 0x3b2   : > { %v2706_v63 = vpop.xlane.xlu1 %2705  ;;  %v2704_v55 = vpop.xlane.xlu0 %2703  ;;  %v3775_v58 = vadd.f32 %v3774_v22, %v3773_v48  ;;  %v2865_v22 = vmul.f32 %v7439_v16, %v7439_v16 }
 0x3b3   : > { %v3778_v61 = vsel %vm3762_vm1, %v7343_v59, 0.0  ;;  %v6604_v20 = vadd.f32 -4.0, %v2706_v63  ;;  %v6606_v51 = vadd.f32 -4.0, %v2704_v55  ;;  %v3780_v8 = vsel %vm3762_vm1, %v7348_v60, 0.0 }
 0x3b4   : > { %v3777_v53 = vadd.f32 %v3776_v46, %v3775_v58 }
 0x3b5   : > { %2909 = vadd.xlane.f32.xlu1 %v2860_v12  ;;  %2907 = vadd.xlane.f32.xlu0 %v2859_v25  ;;  %v7338_v26 = vmin.f32 %v6606_v51, 0.0  ;;  %v7341_v35 = vmin.f32 %v6604_v20, 0.0 }
 0x3b6   : > { %v2710_v49 = vpop.xlane.xlu1 %2709  ;;  %v2708_v37 = vpop.xlane.xlu0 %2707  ;;  %v3779_v40 = vadd.f32 %v3778_v61, %v3777_v53 }
 0x3b7   : > { %v6614_v5 = vadd.f32 -4.0, %v2708_v37  ;;  %v3782_v54 = vsel %vm3762_vm1, %v7338_v26, 0.0  ;;  %v6622_v33 = vadd.f32 -4.0, %v2710_v49  ;;  %v3784_v47 = vsel %vm3762_vm1, %v7341_v35, 0.0  ;;  %v7440_v49 = vld [vmem:[#allocation42_spill] sm:$0xff] }
 0x3b8   : > { %v3781_v57 = vadd.f32 %v3780_v8, %v3779_v40  ;;  %v2868_v37 = vmul.f32 %v7440_v49, %v7440_v49  ;;  %v7441_v40 = vld [vmem:[#allocation43_spill] sm:$0xff] }
 0x3b9   : > { %v7335_v21 = vmin.f32 %v6614_v5, 0.0  ;;  %2913 = vadd.xlane.f32.xlu1 %v2862_v45  ;;  %2911 = vadd.xlane.f32.xlu0 %v2861_v6  ;;  %v7336_v38 = vmin.f32 %v6622_v33, 0.0  ;;  %v2867_v8 = vmul.f32 %v7441_v40, %v7441_v40 }
 0x3ba   : > { %v2714_v32 = vpop.xlane.xlu1 %2713  ;;  %v2712_v56 = vpop.xlane.xlu0 %2711  ;;  %v3783_v13 = vadd.f32 %v3782_v54, %v3781_v57 }
 0x3bb   : > { %v3786_v31 = vsel %vm3762_vm1, %v7335_v21, 0.0  ;;  %v6636_v29 = vadd.f32 -4.0, %v2714_v32  ;;  %v6638_v15 = vadd.f32 -4.0, %v2712_v56  ;;  %v3788_v58 = vsel %vm3762_vm1, %v7336_v38, 0.0  ;;  %v3326_v38 = vld [vmem:[#allocation4 + $0x18] sm:$0xff] }
 0x3bc   : > { %v3785_v7 = vadd.f32 %v3784_v47, %v3783_v13 }
 0x3bd   : > { %2917 = vadd.xlane.f32.xlu1 %v2864_v27  ;;  %2915 = vadd.xlane.f32.xlu0 %v2863_v17  ;;  %v7333_v48 = vmin.f32 %v6638_v15, 0.0  ;;  %v7334_v55 = vmin.f32 %v6636_v29, 0.0 }
 0x3be   : > { %v2718_v12 = vpop.xlane.xlu1 %2717  ;;  %v2716_v25 = vpop.xlane.xlu0 %2715  ;;  %v3787_v63 = vadd.f32 %v3786_v31, %v3785_v7  ;;  %v7442_v31 = vld [vmem:[#allocation44_spill] sm:$0xff] }
 0x3bf   : > { %v6646_v46 = vadd.f32 -4.0, %v2716_v25  ;;  %v3790_v61 = vsel %vm3762_vm1, %v7333_v48, 0.0  ;;  %v6654_v53 = vadd.f32 -4.0, %v2718_v12  ;;  %v3792_v27 = vsel %vm3762_vm1, %v7334_v55, 0.0 }
 0x3c0   : > { %v3789_v45 = vadd.f32 %v3788_v58, %v3787_v63  ;;  %v2870_v7 = vmul.f32 %v7442_v31, %v7442_v31 }
 0x3c1   : > { %v7362_v6 = vmin.f32 %v6646_v46, 0.0  ;;  %2921 = vadd.xlane.f32.xlu1 %v2866_v43  ;;  %2919 = vadd.xlane.f32.xlu0 %v2865_v22  ;;  %v7360_v17 = vmin.f32 %v6654_v53, 0.0 }
 0x3c2   : > { %v2722_v54 = vpop.xlane.xlu1 %2721  ;;  %v2720_v57 = vpop.xlane.xlu0 %2719  ;;  %v3791_v4 = vadd.f32 %v3790_v61, %v3789_v45 }
 0x3c3   : > { %v3794_v32 = vsel %vm3762_vm1, %v7362_v6, 0.0  ;;  %v6668_v56 = vadd.f32 -4.0, %v2722_v54  ;;  %v6670_v47 = vadd.f32 -4.0, %v2720_v57  ;;  %v3796_v58 = vsel %vm3762_vm1, %v7360_v17, 0.0 }
 0x3c4   : > { %v3793_v13 = vadd.f32 %v3792_v27, %v3791_v4 }
 0x3c5   : > { %2925 = vadd.xlane.f32.xlu1 %v2868_v37  ;;  %2923 = vadd.xlane.f32.xlu0 %v2867_v8  ;;  %v7358_v43 = vmin.f32 %v6670_v47, 0.0  ;;  %v7356_v25 = vmin.f32 %v6668_v56, 0.0  ;;  %v7443_v37 = vld [vmem:[#allocation45_spill] sm:$0xff]  ;;  %v2871_v8 = vmul.f32 %v6425_v11, %v6425_v11  ;;  %v2874_v11 = vmul.f32 %v6435_v3, %v6435_v3 }
 0x3c6   : > { %v2726_v16 = vpop.xlane.xlu1 %2725  ;;  %v2724_v22 = vpop.xlane.xlu0 %2723  ;;  %v3795_v12 = vadd.f32 %v3794_v32, %v3793_v13  ;;  %v2872_v40 = vmul.f32 %v7443_v37, %v7443_v37 }
 0x3c7   : > { %v6678_v63 = vadd.f32 -4.0, %v2724_v22  ;;  %v3798_v61 = vsel %vm3762_vm1, %v7358_v43, 0.0  ;;  %v6686_v45 = vadd.f32 -4.0, %v2726_v16  ;;  %v3800_v27 = vsel %vm3762_vm1, %v7356_v25, 0.0 }
 0x3c8   : > { %v3797_v36 = vadd.f32 %v3796_v58, %v3795_v12  ;;  %v2873_v16 = vmul.f32 %v6441_v10, %v6441_v10 }
 0x3c9   : > { %v7354_v49 = vmin.f32 %v6678_v63, 0.0  ;;  %2929 = vadd.xlane.f32.xlu1 %v2870_v7  ;;  %2927 = vadd.xlane.f32.xlu0 %v2869_v44  ;;  %v7352_v32 = vmin.f32 %v6686_v45, 0.0 }
 0x3ca   : > { %v2730_v54 = vpop.xlane.xlu1 %2729  ;;  %v2728_v57 = vpop.xlane.xlu0 %2727  ;;  %v3799_v4 = vadd.f32 %v3798_v61, %v3797_v36 }
 0x3cb   : > { %v3802_v13 = vsel %vm3762_vm1, %v7354_v49, 0.0  ;;  %v6700_v31 = vadd.f32 -4.0, %v2730_v54  ;;  %v6702_v7 = vadd.f32 -4.0, %v2728_v57 }
 0x3cc   : > { %v3801_v44 = vadd.f32 %v3800_v27, %v3799_v4  ;;  %v3324_v4 = vld [vmem:[#allocation4] sm:$0xff] }
 0x3cd   : > { %2933 = vadd.xlane.f32.xlu1 %v2872_v40  ;;  %2931 = vadd.xlane.f32.xlu0 %v2871_v8  ;;  %v7346_v22 = vmin.f32 %v6702_v7, 0.0  ;;  %v7337_v36 = vmin.f32 %v6700_v31, 0.0  ;;  %v3804_v40 = vsel %vm3762_vm1, %v7352_v32, 0.0 }
 0x3ce   : > { %v2734_v12 = vpop.xlane.xlu1 %2733  ;;  %v2732_v58 = vpop.xlane.xlu0 %2731  ;;  %v3803_v61 = vadd.f32 %v3802_v13, %v3801_v44  ;;  %v3323_v13 = vld [vmem:[#allocation4 + $0xb0] sm:$0xff] }
 0x3cf   : > { %v6710_v37 = vadd.f32 -4.0, %v2732_v58  ;;  %v3806_v3 = vsel %vm3762_vm1, %v7346_v22, 0.0  ;;  %v6718_v8 = vadd.f32 -4.0, %v2734_v12  ;;  %v3808_v44 = vsel %vm3762_vm1, %v7337_v36, 0.0  ;;  %v3325_v36 = vld [vmem:[#allocation4 + $0xd8] sm:$0xff]  ;;  %v3331_v22 = vld [vmem:[#allocation4 + $0x80] sm:$0xff] }
 0x3d0   : > { %v3805_v10 = vadd.f32 %v3804_v40, %v3803_v61 }
 0x3d1   : > { %v7339_v54 = vmin.f32 %v6710_v37, 0.0  ;;  %2937 = vadd.xlane.f32.xlu1 %v2874_v11  ;;  %2935 = vadd.xlane.f32.xlu0 %v2873_v16  ;;  %v7340_v48 = vmin.f32 %v6718_v8, 0.0 }
 0x3d2   : > { %v2738_v57 = vpop.xlane.xlu1 %2737  ;;  %v2736_v27 = vpop.xlane.xlu0 %2735  ;;  %v3807_v58 = vadd.f32 %v3806_v3, %v3805_v10 }
 0x3d3   : > { %v3810_v12 = vsel %vm3762_vm1, %v7339_v54, 0.0  ;;  %v6728_v61 = vadd.f32 -4.0, %v2738_v57  ;;  %v6730_v40 = vadd.f32 -4.0, %v2736_v27  ;;  %v3812_v57 = vsel %vm3762_vm1, %v7340_v48, 0.0 }
 0x3d4   : > { %v3809_v11 = vadd.f32 %v3808_v44, %v3807_v58 }
 0x3d5   : > { %3357 = vadd.xlane.f32.xlu1 %v3324_v4  ;;  %3355 = vadd.xlane.f32.xlu0 %v3323_v13  ;;  %v7342_v16 = vmin.f32 %v6730_v40, 0.0  ;;  %v7344_v10 = vmin.f32 %v6728_v61, 0.0 }
 0x3d6   : > { %v2742_v55 = vpop.xlane.xlu1 %2741  ;;  %v2740_v21 = vpop.xlane.xlu0 %2739  ;;  %v3811_v3 = vadd.f32 %v3810_v12, %v3809_v11  ;;  %v3328_v11 = vld [vmem:[#allocation4 + $0x68] sm:$0xff] }
 0x3d7   : > { %v6734_v26 = vadd.f32 -4.0, %v2740_v21  ;;  %v3814_v27 = vsel %vm3762_vm1, %v7342_v16, 0.0  ;;  %v6742_v4 = vadd.f32 -4.0, %v2742_v55  ;;  %v3327_v21 = vld [vmem:[#allocation4 + $0x50] sm:$0xff]  ;;  %v3816_v54 = vsel %vm3762_vm1, %v7344_v10, 0.0 }
 0x3d8   : > { %v3813_v13 = vadd.f32 %v3812_v57, %v3811_v3 }
 0x3d9   : > { %v7345_v44 = vmin.f32 %v6734_v26, 0.0  ;;  %3361 = vadd.xlane.f32.xlu1 %v3326_v38  ;;  %3359 = vadd.xlane.f32.xlu0 %v3325_v36  ;;  %v7347_v35 = vmin.f32 %v6742_v4, 0.0 }
 0x3da   : > { %v2746_v58 = vpop.xlane.xlu1 %2745  ;;  %v2744_v12 = vpop.xlane.xlu0 %2743  ;;  %v3815_v48 = vadd.f32 %v3814_v27, %v3813_v13  ;;  %v3330_v27 = vld [vmem:[#allocation4 + $0x48] sm:$0xff]  ;;  %v3329_v13 = vld [vmem:[#allocation4 + $0x30] sm:$0xff] }
 0x3db   : > { %v3818_v55 = vsel %vm3762_vm1, %v7345_v44, 0.0  ;;  %v6752_v3 = vadd.f32 -4.0, %v2746_v58  ;;  %v6754_v57 = vadd.f32 -4.0, %v2744_v12  ;;  %v3820_v44 = vsel %vm3762_vm1, %v7347_v35, 0.0 }
 0x3dc   : > { %v3817_v38 = vadd.f32 %v3816_v54, %v3815_v48 }
 0x3dd   : > { %3365 = vadd.xlane.f32.xlu1 %v3328_v11  ;;  %3363 = vadd.xlane.f32.xlu0 %v3327_v21  ;;  %v7349_v36 = vmin.f32 %v6754_v57, 0.0  ;;  %v7350_v58 = vmin.f32 %v6752_v3, 0.0  ;;  %v3332_v21 = vld [vmem:[#allocation4 + $0x88] sm:$0xff] }
 0x3de   : > { %v6757_v16 = vpop.xlane.xlu1 %2781  ;;  %v6759_v59 = vpop.xlane.xlu0 %2779  ;;  %v3819_v10 = vadd.f32 %v3818_v55, %v3817_v38 }
 0x3df   : > { %7444 = vst [vmem:[#allocation39_spill] sm:$0xff] %v6757_v16  ;;  %7445 = vst [vmem:[#allocation40_spill] sm:$0xff] %v6759_v59  ;;  %v3822_v48 = vsel %vm3762_vm1, %v7349_v36, 0.0  ;;  %v3824_v38 = vsel %vm3762_vm1, %v7350_v58, 0.0 }
 0x3e0   : > { %v3821_v54 = vadd.f32 %v3820_v44, %v3819_v10  ;;  %v3340_v44 = vld [vmem:[#allocation4 + $0x58] sm:$0xff] }
 0x3e1   : > { %3369 = vadd.xlane.f32.xlu1 %v3330_v27  ;;  %3367 = vadd.xlane.f32.xlu0 %v3329_v13  ;;  %v3339_v27 = vld [vmem:[#allocation4 + $0x38] sm:$0xff] }
 0x3e2   : > { %v6768_v12 = vpop.xlane.xlu1 %2785  ;;  %v6770_v11 = vpop.xlane.xlu0 %2783  ;;  %v3823_v55 = vadd.f32 %v3822_v48, %v3821_v54  ;;  %v3342_v48 = vld [vmem:[#allocation4 + $0xc8] sm:$0xff]  ;;  %v3341_v54 = vld [vmem:[#allocation4 + $0x40] sm:$0xff] }
 0x3e3   : > { %7446 = vst [vmem:[#allocation41_spill] sm:$0xff] %v6768_v12  ;;  %7447 = vst [vmem:[#allocation42_spill] sm:$0xff] %v6770_v11 }
 0x3e4   : > { %v6775_v35 = vadd.f32 %v3824_v38, %v3823_v55  ;;  %v3344_v55 = vld [vmem:[#allocation4 + $0x90] sm:$0xff]  ;;  %v3343_v38 = vld [vmem:[#allocation4 + $0xe0] sm:$0xff] }
 0x3e5   : > { %3373 = vadd.xlane.f32.xlu1 %v3332_v21  ;;  %3371 = vadd.xlane.f32.xlu0 %v3331_v22 }
 0x3e6   : > { %7448 = vst [vmem:[#allocation43_spill] sm:$0xff] %v6775_v35  ;;  %v6777_v60 = vpop.xlane.xlu1 %2789  ;;  %v6779_v10 = vpop.xlane.xlu0 %2787  ;;  %v3338_v35 = vld [vmem:[#allocation4 + $0x78] sm:$0xff] }
 0x3e7   : > { %7449 = vst [vmem:[#allocation44_spill] sm:$0xff] %v6777_v60  ;;  %7450 = vst [vmem:[#allocation45_spill] sm:$0xff] %v6779_v10 }
 0x3e9   : > { %3389 = vadd.xlane.f32.xlu1 %v3340_v44  ;;  %3387 = vadd.xlane.f32.xlu0 %v3339_v27  ;;  %v3346_v27 = vld [vmem:[#allocation4 + $0xc0] sm:$0xff] }
 0x3ea   : > { %v6781_v13 = vpop.xlane.xlu1 %2793  ;;  %v6783_v36 = vpop.xlane.xlu0 %2791 }
 0x3ed   : > { %3393 = vadd.xlane.f32.xlu1 %v3342_v48  ;;  %3391 = vadd.xlane.f32.xlu0 %v3341_v54  ;;  %v3348_v54 = vld [vmem:[#allocation4 + $0xd0] sm:$0xff] }
 0x3ee   : > { %v6785_v21 = vpop.xlane.xlu1 %2797  ;;  %v6787_v22 = vpop.xlane.xlu0 %2795 }
 0x3f1   : > { %3397 = vadd.xlane.f32.xlu1 %v3344_v55  ;;  %3395 = vadd.xlane.f32.xlu0 %v3343_v38  ;;  %v3349_v38 = vld [vmem:[#allocation4 + $0x10] sm:$0xff] }
 0x3f2   : > { %v6789_v58 = vpop.xlane.xlu1 %2801  ;;  %v6791_v44 = vpop.xlane.xlu0 %2799 }
 0x3f5   : > { %3401 = vadd.xlane.f32.xlu1 %v3346_v27  ;;  %3399 = vadd.xlane.f32.xlu0 %v3345_v50  ;;  %v3350_v50 = vld [vmem:[#allocation4 + $0x28] sm:$0xff] }
 0x3f6   : > { %v6793_v32 = vpop.xlane.xlu1 %2805  ;;  %v6795_v48 = vpop.xlane.xlu0 %2803 }
 0x3f9   : > { %3405 = vadd.xlane.f32.xlu1 %v3348_v54  ;;  %3403 = vadd.xlane.f32.xlu0 %v3347_v1  ;;  %v3351_v1 = vld [vmem:[#allocation4 + $0xa0] sm:$0xff] }
 0x3fa   : > { %v6797_v49 = vpop.xlane.xlu1 %2809  ;;  %v6799_v55 = vpop.xlane.xlu0 %2807 }
 0x3fd   : > { %3407 = vadd.xlane.f32.xlu1 %v3349_v38  ;;  %3375 = vadd.xlane.f32.xlu0 %v3333_v41  ;;  %v3352_v41 = vld [vmem:[#allocation4 + $0xf8] sm:$0xff] }
 0x3fe   : > { %v6801_v25 = vpop.xlane.xlu1 %2813  ;;  %v6803_v27 = vpop.xlane.xlu0 %2811 }
 0x401   : > { %3409 = vadd.xlane.f32.xlu1 %v3350_v50  ;;  %3377 = vadd.xlane.f32.xlu0 %v3334_v30  ;;  %v3353_v30 = vld [vmem:[#allocation4 + $0x20] sm:$0xff] }
 0x402   : > { %v6805_v43 = vpop.xlane.xlu1 %2817  ;;  %v6807_v54 = vpop.xlane.xlu0 %2815 }
 0x405   : > { %3411 = vadd.xlane.f32.xlu1 %v3351_v1  ;;  %3379 = vadd.xlane.f32.xlu0 %v3335_v14  ;;  %v3354_v14 = vld [vmem:[#allocation4 + $0x98] sm:$0xff] }
 0x406   : > { %v6809_v17 = vpop.xlane.xlu1 %2821  ;;  %v6811_v38 = vpop.xlane.xlu0 %2819 }
 0x409   : > { %3413 = vadd.xlane.f32.xlu1 %v3352_v41  ;;  %3381 = vadd.xlane.f32.xlu0 %v3336_v62 }
 0x40a   : > { %v6813_v6 = vpop.xlane.xlu1 %2825  ;;  %v6815_v50 = vpop.xlane.xlu0 %2823 }
 0x40d   : > { %3415 = vadd.xlane.f32.xlu1 %v3353_v30  ;;  %3383 = vadd.xlane.f32.xlu0 %v3337_v2 }
 0x40e   : > { %v6817_v42 = vpop.xlane.xlu1 %2829  ;;  %v6819_v1 = vpop.xlane.xlu0 %2827 }
 0x40f   : > { %7451 = vst [vmem:[#allocation46_spill] sm:$0xff] %v6819_v1 }
 0x411   : > { %3417 = vadd.xlane.f32.xlu1 %v3354_v14  ;;  %3385 = vadd.xlane.f32.xlu0 %v3338_v35 }
 0x412   : > { %v6821_v60 = vpop.xlane.xlu1 %2833  ;;  %v6823_v41 = vpop.xlane.xlu0 %2831 }
 0x413   : > { %7452 = vst [vmem:[#allocation47_spill] sm:$0xff] %v6821_v60  ;;  %7453 = vst [vmem:[#allocation48_spill] sm:$0xff] %v6823_v41 }
 0x416   : > { %v6825_v62 = vpop.xlane.xlu1 %2837  ;;  %v6827_v10 = vpop.xlane.xlu0 %2835 }
 0x417   : > { %7454 = vst [vmem:[#allocation49_spill] sm:$0xff] %v6825_v62  ;;  %7455 = vst [vmem:[#allocation50_spill] sm:$0xff] %v6827_v10 }
 0x41a   : > { %v6829_v12 = vpop.xlane.xlu1 %2841  ;;  %v6831_v30 = vpop.xlane.xlu0 %2839 }
 0x41b   : > { %7456 = vst [vmem:[#allocation51_spill] sm:$0xff] %v6829_v12  ;;  %7457 = vst [vmem:[#allocation52_spill] sm:$0xff] %v6831_v30  ;;  %v7465_v12 = vmin.f32 %v6527_v18, 0.0  ;;  %v7471_v18 = vmin.f32 %v6654_v53, 0.0 }
 0x41d   : > { %v3003_v10 = vmul.f32 1.442695, %v7465_v12  ;;  %v3037_v12 = vmul.f32 1.442695, %v7471_v18  ;;  %v7481_v18 = vmin.f32 %v6555_v34, 0.0 }
 0x41e   : > { %v6833_v2 = vpop.xlane.xlu1 %2877  ;;  %v6835_v11 = vpop.xlane.xlu0 %2875 }
 0x41f   : > { %7458 = vst [vmem:[#allocation53_spill] sm:$0xff] %v6833_v2  ;;  %5150 = vpow2.f32 %v3003_v10 }
 0x422   : > { %v6837_v16 = vpop.xlane.xlu1 %2881  ;;  %v6839_v14 = vpop.xlane.xlu0 %2879 }
 0x423   : > { %7459 = vst [vmem:[#allocation54_spill] sm:$0xff] %v6837_v16  ;;  %7460 = vst [vmem:[#allocation55_spill] sm:$0xff] %v6839_v14  ;;  %v7467_v16 = vmin.f32 %v6538_v23, 0.0  ;;  %v7468_v14 = vmin.f32 %v6646_v46, 0.0  ;;  %v7474_v23 = vmin.f32 %v6536_v19, 0.0 }
 0x425   : > { %v3005_v1 = vmul.f32 1.442695, %v7467_v16  ;;  %v3009_v46 = vmul.f32 1.442695, %v7474_v23  ;;  %v7475_v16 = vmin.f32 %v6670_v47, 0.0 }
 0x426   : > { %v6841_v35 = vpop.xlane.xlu1 %2885  ;;  %v6843_v59 = vpop.xlane.xlu0 %2883 }
 0x427   : > { %7461 = vst [vmem:[#allocation56_spill] sm:$0xff] %v6841_v35  ;;  %7462 = vst [vmem:[#allocation57_spill] sm:$0xff] %v6843_v59  ;;  %v3035_v35 = vmul.f32 1.442695, %v7468_v14  ;;  %5152 = vpow2.f32 %v3005_v1  ;;  %v3039_v14 = vmul.f32 1.442695, %v7475_v16 }
 0x429   : > { %5154 = vpow2.f32 %v3035_v35  ;;  %v7480_v35 = vmin.f32 %v6668_v56, 0.0 }
 0x42a   : > { %v6845_v60 = vpop.xlane.xlu1 %2889  ;;  %v6847_v62 = vpop.xlane.xlu0 %2887 }
 0x42b   : > { %7463 = vst [vmem:[#allocation58_spill] sm:$0xff] %v6845_v60  ;;  %7464 = vst [vmem:[#allocation59_spill] sm:$0xff] %v6847_v62  ;;  %v7470_v60 = vmin.f32 %v6533_v24, 0.0 }
 0x42c   : > { %v6881_v1 = vpop.eup %5150 }
 0x42d   : > { %v3007_v62 = vmul.f32 1.442695, %v7470_v60  ;;  %v7478_v60 = vmin.f32 %v6550_v39, 0.0  ;;  %7479 = vst [vmem:[#allocation66_spill] sm:$0xff] %v6881_v1  ;;  %v7483_v39 = vmin.f32 %v6678_v63, 0.0 }
 0x42e   : > { %v6851_v30 = vpop.xlane.xlu1 %2893  ;;  %v6853_v41 = vpop.xlane.xlu0 %2891 }
 0x42f   : > { %7466 = vst [vmem:[#allocation60_spill] sm:$0xff] %v6851_v30  ;;  %5156 = vpow2.f32 %v3007_v62  ;;  %v3011_v53 = vmul.f32 1.442695, %v7478_v60  ;;  %v3041_v62 = vmul.f32 1.442695, %v7480_v35  ;;  %v7484_v60 = vmin.f32 %v6574_v9, 0.0 }
 0x430   : > { %5158 = vpow2.f32 %v3037_v12  ;;  %v3013_v12 = vmul.f32 1.442695, %v7481_v18  ;;  %v7486_v35 = vmin.f32 %v6686_v45, 0.0  ;;  %v7489_v45 = vmin.f32 %v6590_v52, 0.0 }
 0x431   : > { %5160 = vpow2.f32 %v3009_v46  ;;  %v3043_v46 = vmul.f32 1.442695, %v7483_v39  ;;  %v3015_v34 = vmul.f32 1.442695, %v7484_v60 }
 0x432   : > { %v6859_v2 = vpop.xlane.xlu1 %2897  ;;  %v6861_v59 = vpop.xlane.xlu0 %2895  ;;  %5162 = vpow2.f32 %v3039_v14  ;;  %v3045_v63 = vmul.f32 1.442695, %v7486_v35  ;;  %v3021_v35 = vmul.f32 1.442695, %v7489_v45 }
 0x433   : > { %7469 = vst [vmem:[#allocation61_spill] sm:$0xff] %v6859_v2  ;;  %5164 = vpow2.f32 %v3011_v53 }
 0x434   : > { %v6892_v23 = vpop.eup %5152  ;;  %5166 = vpow2.f32 %v3041_v62 }
 0x435   : > { %7482 = vst [vmem:[#allocation67_spill] sm:$0xff] %v6892_v23  ;;  %5168 = vpow2.f32 %v3013_v12  ;;  %v7487_v12 = vmin.f32 %v6572_v0, 0.0 }
 0x436   : > { %v6867_v30 = vpop.xlane.xlu1 %2901  ;;  %v6869_v10 = vpop.xlane.xlu0 %2899  ;;  %5170 = vpow2.f32 %v3043_v46  ;;  %v7490_v46 = vmin.f32 %v6702_v7, 0.0  ;;  %v7494_v7 = vmin.f32 %v6606_v51, 0.0  ;;  %v7497_v51 = vmin.f32 %v6614_v5, 0.0 }
 0x437   : > { %7472 = vst [vmem:[#allocation62_spill] sm:$0xff] %v6867_v30  ;;  %7473 = vst [vmem:[#allocation63_spill] sm:$0xff] %v6869_v10  ;;  %v6901_v14 = vpop.eup %5154  ;;  %v3017_v9 = vmul.f32 1.442695, %v7487_v12  ;;  %5172 = vpow2.f32 %v3015_v34  ;;  %v7491_v34 = vmin.f32 %v6582_v28, 0.0 }
 0x438   : > { %5174 = vpow2.f32 %v3045_v63  ;;  %v3023_v45 = vmul.f32 1.442695, %v7494_v7  ;;  %v7500_v7 = vmin.f32 %v6710_v37, 0.0  ;;  %v7503_v37 = vmin.f32 %v6718_v8, 0.0 }
 0x439   : > { %v3019_v12 = vmul.f32 1.442695, %v7491_v34  ;;  %5176 = vpow2.f32 %v3017_v9 }
 0x43a   : > { %v6875_v2 = vpop.xlane.xlu1 %2905  ;;  %v6877_v24 = vpop.xlane.xlu0 %2903  ;;  %5178 = vpow2.f32 %v3021_v35  ;;  %v3027_v35 = vmul.f32 1.442695, %v7497_v51  ;;  %v7504_v51 = vmin.f32 %v6728_v61, 0.0  ;;  %v7508_v61 = vmin.f32 %v6742_v4, 0.0 }
 0x43b   : > { %7476 = vst [vmem:[#allocation64_spill] sm:$0xff] %v6875_v2  ;;  %7477 = vst [vmem:[#allocation65_spill] sm:$0xff] %v6877_v24  ;;  %v7492_v2 = vmin.f32 %v6604_v20, 0.0  ;;  %v4226_v4 = vadd.f32 -4.0, %v6793_v32  ;;  %v4229_v32 = vadd.f32 -4.0, %v6803_v27 }
 0x43c   : > { %v6906_v53 = vpop.eup %5156 }
 0x43d   : > { %7485 = vst [vmem:[#allocation68_spill] sm:$0xff] %v6906_v53  ;;  %v6915_v39 = vpop.eup %5158  ;;  %v3025_v52 = vmul.f32 1.442695, %v7492_v2  ;;  %v7496_v2 = vmin.f32 %v6622_v33, 0.0 }
 0x43e   : > { %v6885_v19 = vpop.xlane.xlu1 %2909  ;;  %3515 = vxpose.xlu0.b32.start [1/16] (narrow) %v6881_v1, 8  ;;  %v6888_v47 = vpop.xlane.xlu0 %2907 }
 0x43f   : > { %v6920_v60 = vpop.eup %5160  ;;  %v3029_v9 = vmul.f32 1.442695, %v7496_v2 }
 0x440   : > { %7488 = vst [vmem:[#allocation69_spill] sm:$0xff] %v6920_v60  ;;  %v6931_v0 = vpop.eup %5162 }
 0x441   : > { %v6938_v63 = vpop.eup %5164 }
 0x442   : > { %v6896_v16 = vpop.xlane.xlu1 %2913  ;;  %3516 = vxpose.xlu0.b32.cont [2/16] (narrow) %v6892_v23, 8  ;;  %v6899_v56 = vpop.xlane.xlu0 %2911  ;;  %v3047_v23 = vmul.f32 1.442695, %v7490_v46  ;;  %7493 = vst [vmem:[#allocation70_spill] sm:$0xff] %v6938_v63  ;;  %v7495_v46 = vmin.f32 %v6700_v31, 0.0 }
 0x443   : > { %v6949_v20 = vpop.eup %5166 }
 0x444   : > { %3547 = vxpose.xlu1.b32.start [1/16] (narrow) %v6901_v14, 8  ;;  %5180 = vpow2.f32 %v3047_v23  ;;  %v6956_v31 = vpop.eup %5168  ;;  %v7499_v23 = vmin.f32 %v6636_v29, 0.0  ;;  %v4219_v29 = vadd.f32 -4.0, %v6783_v36  ;;  %v4221_v36 = vadd.f32 -4.0, %v6787_v22 }
 0x445   : > { %5182 = vpow2.f32 %v3019_v12  ;;  %7498 = vst [vmem:[#allocation71_spill] sm:$0xff] %v6956_v31  ;;  %v4220_v12 = vadd.f32 -4.0, %v6781_v13  ;;  %v4223_v22 = vadd.f32 -4.0, %v6791_v44 }
 0x446   : > { %v6910_v62 = vpop.xlane.xlu1 %2917  ;;  %3517 = vxpose.xlu0.b32.cont [3/16] (narrow) %v6906_v53, 8  ;;  %v6913_v18 = vpop.xlane.xlu0 %2915  ;;  %5184 = vpow2.f32 %v3025_v52  ;;  %v3033_v34 = vmul.f32 1.442695, %v7499_v23  ;;  %v3057_v23 = vmul.f32 1.442695, %v7504_v51 }
 0x447   : > { %5186 = vpow2.f32 %v3023_v45  ;;  %v6968_v52 = vpop.eup %5170  ;;  %v7502_v45 = vmin.f32 %v6638_v15, 0.0  ;;  %v7505_v15 = vmin.f32 %v6730_v40, 0.0  ;;  %v7509_v40 = vmin.f32 %v6734_v26, 0.0 }
 0x448   : > { %3548 = vxpose.xlu1.b32.cont [2/16] (narrow) %v6915_v39, 8  ;;  %v6976_v13 = vpop.eup %5172  ;;  %v4230_v26 = vadd.f32 -4.0, %v6801_v25  ;;  %v3109_v25 = vmin.f32 %v4223_v22, 0.0 }
 0x449   : > { %v3031_v2 = vmul.f32 1.442695, %v7502_v45  ;;  %v3106_v45 = vmin.f32 %v4220_v12, 0.0  ;;  %v3059_v12 = vmul.f32 1.442695, %v7509_v40 }
 0x44a   : > { %v6926_v53 = vpop.xlane.xlu1 %2921  ;;  %3518 = vxpose.xlu0.b32.cont [4/16] (narrow) %v6920_v60, 8  ;;  %v6929_v1 = vpop.xlane.xlu0 %2919  ;;  %v3049_v60 = vmul.f32 1.442695, %v7495_v46  ;;  %v3051_v46 = vmul.f32 1.442695, %v7500_v7  ;;  %v4222_v7 = vadd.f32 -4.0, %v6785_v21 }
 0x44b   : > { %v3105_v21 = vmin.f32 %v4219_v29, 0.0 }
 0x44c   : > { %3549 = vxpose.xlu1.b32.cont [3/16] (narrow) %v6931_v0, 8  ;;  %5188 = vpow2.f32 %v3049_v60  ;;  %v3053_v60 = vmul.f32 1.442695, %v7503_v37  ;;  %v6989_v37 = vpop.eup %5174 }
 0x44d   : > { %5190 = vpow2.f32 %v3029_v9  ;;  %v3055_v9 = vmul.f32 1.442695, %v7505_v15  ;;  %v6998_v51 = vpop.eup %5176  ;;  %v7510_v15 = vmin.f32 %v6752_v3, 0.0  ;;  %v3143_v3 = vmul.f32 1.442695, %v3105_v21 }
 0x44e   : > { %v6944_v24 = vpop.xlane.xlu1 %2925  ;;  %3519 = vxpose.xlu0.b32.cont [5/16] (narrow) %v6938_v63, 8  ;;  %v6947_v28 = vpop.xlane.xlu0 %2923  ;;  %5192 = vpow2.f32 %v3027_v35  ;;  %v3112_v63 = vmin.f32 %v4226_v4, 0.0 }
 0x44f   : > { %5194 = vpow2.f32 %v3033_v34  ;;  %v3061_v34 = vmul.f32 1.442695, %v7508_v61  ;;  %v7003_v29 = vpop.eup %5178 }
 0x450   : > { %3550 = vxpose.xlu1.b32.cont [4/16] (narrow) %v6949_v20, 8  ;;  %5196 = vpow2.f32 %v3051_v46  ;;  %v4224_v46 = vadd.f32 -4.0, %v6789_v58  ;;  %v3145_v58 = vmul.f32 1.442695, %v3106_v45 }
 0x451   : > { %5198 = vpow2.f32 %v3031_v2  ;;  %v3065_v2 = vmul.f32 1.442695, %v7510_v15 }
 0x452   : > { %v6963_v33 = vpop.xlane.xlu1 %2929  ;;  %3520 = vxpose.xlu0.b32.cont [6/16] (narrow) %v6956_v31, 8  ;;  %v6966_v5 = vpop.xlane.xlu0 %2927  ;;  %5200 = vpow2.f32 %v3053_v60  ;;  %v3108_v31 = vmin.f32 %v4222_v7, 0.0  ;;  %v3107_v60 = vmin.f32 %v4221_v36, 0.0  ;;  %v3110_v7 = vmin.f32 %v4224_v46, 0.0 }
 0x453   : > { %7501 = vst [vmem:[#allocation72_spill] sm:$0xff] %v6963_v33  ;;  %5202 = vpow2.f32 %v3057_v23  ;;  %v7011_v23 = vpop.eup %5180  ;;  %v3116_v46 = vmin.f32 %v4230_v26, 0.0  ;;  %v3157_v26 = vmul.f32 1.442695, %v3112_v63 }
 0x454   : > { %3551 = vxpose.xlu1.b32.cont [5/16] (narrow) %v6968_v52, 8  ;;  %5204 = vpow2.f32 %v3055_v9  ;;  %v7014_v40 = vpop.eup %5182  ;;  %v7513_v9 = vmin.f32 %v6754_v57, 0.0  ;;  %v3149_v15 = vmul.f32 1.442695, %v3108_v31  ;;  %v3147_v27 = vmul.f32 1.442695, %v3107_v60 }
 0x455   : > { %5206 = vpow2.f32 %v3061_v34  ;;  %v7019_v36 = vpop.eup %5184  ;;  %v4225_v34 = vadd.f32 -4.0, %v6795_v48  ;;  %v3153_v31 = vmul.f32 1.442695, %v3110_v7  ;;  %v4231_v48 = vadd.f32 -4.0, %v6807_v54 }
 0x456   : > { %v6984_v35 = vpop.xlane.xlu1 %2933  ;;  %3521 = vxpose.xlu0.b32.cont [7/16] (narrow) %v6976_v13, 8  ;;  %v6987_v8 = vpop.xlane.xlu0 %2931  ;;  %5208 = vpow2.f32 %v3059_v12  ;;  %v3063_v45 = vmul.f32 1.442695, %v7513_v9  ;;  %v4232_v12 = vadd.f32 -4.0, %v6805_v43  ;;  %v4234_v60 = vadd.f32 -4.0, %v6809_v17 }
 0x457   : > { %7506 = vst [vmem:[#allocation73_spill] sm:$0xff] %v6984_v35  ;;  %7507 = vst [vmem:[#allocation74_spill] sm:$0xff] %v6987_v8  ;;  %5210 = vpow2.f32 %v3065_v2  ;;  %v7022_v21 = vpop.eup %5186  ;;  %v3115_v2 = vmin.f32 %v4229_v32, 0.0  ;;  %v3111_v9 = vmin.f32 %v4225_v34, 0.0  ;;  %v3165_v7 = vmul.f32 1.442695, %v3116_v46 }
 0x458   : > { %3552 = vxpose.xlu1.b32.cont [6/16] (narrow) %v6989_v37, 8  ;;  %5212 = vpow2.f32 %v3145_v58  ;;  %v3151_v58 = vmul.f32 1.442695, %v3109_v25  ;;  %v3118_v54 = vmin.f32 %v4232_v12, 0.0  ;;  %v4236_v32 = vadd.f32 -4.0, %v6813_v6 }
 0x459   : > { %v7030_v22 = vpop.eup %5188  ;;  %5214 = vpow2.f32 %v3143_v3  ;;  %v3163_v63 = vmul.f32 1.442695, %v3115_v2  ;;  %v4245_v6 = vadd.f32 -4.0, %v6835_v11  ;;  %v3155_v12 = vmul.f32 1.442695, %v3111_v9 }
 0x45a   : > { %v7006_v61 = vpop.xlane.xlu1 %2937  ;;  %3522 = vxpose.xlu0.b32.cont [8/16] (narrow) %v6998_v51, 8  ;;  %v7009_v44 = vpop.xlane.xlu0 %2935  ;;  %5216 = vpow2.f32 %v3063_v45 }
 0x45b   : > { %7511 = vst [vmem:[#allocation75_spill] sm:$0xff] %v7006_v61  ;;  %7512 = vst [vmem:[#allocation76_spill] sm:$0xff] %v7009_v44  ;;  %v7033_v4 = vpop.eup %5190  ;;  %5218 = vpow2.f32 %v3149_v15  ;;  %v3117_v15 = vmin.f32 %v4231_v48, 0.0  ;;  %v3169_v48 = vmul.f32 1.442695, %v3118_v54  ;;  %v7520_v54 = vld [vmem:[#allocation53_spill] sm:$0xff] }
 0x45c   : > { %3553 = vxpose.xlu1.b32.cont [7/16] (narrow) %v7011_v23, 8  ;;  %v7037_v43 = vpop.eup %5192  ;;  %5220 = vpow2.f32 %v3147_v27  ;;  %v3120_v27 = vmin.f32 %v4234_v60, 0.0 }
 0x45d   : > { %v7040_v3 = vpop.eup %5194  ;;  %5222 = vpow2.f32 %v3153_v31 }
 0x45e   : > { %v7025_v61 = vpop.xlane.xlu1 %3357  ;;  %3523 = vxpose.xlu0.b32.cont [9/16] (narrow) %v7014_v40, 8  ;;  %v7028_v57 = vpop.xlane.xlu0 %3355  ;;  %5224 = vpow2.f32 %v3151_v58  ;;  %v3122_v58 = vmin.f32 %v4236_v32, 0.0  ;;  %v4246_v32 = vadd.f32 -4.0, %v7520_v54 }
 0x45f   : > { %7514 = vst [vmem:[#allocation77_spill] sm:$0xff] %v7025_v61  ;;  %7515 = vst [vmem:[#allocation78_spill] sm:$0xff] %v7028_v57  ;;  %v4233_v61 = vadd.f32 -4.0, %v6811_v38  ;;  %v7048_v25 = vpop.eup %5196  ;;  %v7053_v38 = vadd.f32 -4.0, %v6797_v49  ;;  %5226 = vpow2.f32 %v3157_v26  ;;  %v4235_v49 = vadd.f32 -4.0, %v6815_v50 }
 0x460   : > { %3554 = vxpose.xlu1.b32.cont [8/16] (narrow) %v7030_v22, 8  ;;  %v7050_v34 = vpop.eup %5198  ;;  %5228 = vpow2.f32 %v3165_v7  ;;  %v3167_v26 = vmul.f32 1.442695, %v3117_v15  ;;  %v3173_v7 = vmul.f32 1.442695, %v3120_v27  ;;  %v3227_v50 = vmin.f32 %v4245_v6, 0.0 }
 0x461   : > { %v7057_v46 = vpop.eup %5200  ;;  %v3119_v31 = vmin.f32 %v4233_v61, 0.0  ;;  %5230 = vpow2.f32 %v3163_v63  ;;  %v7521_v63 = vld [vmem:[#allocation46_spill] sm:$0xff]  ;;  %v3121_v35 = vmin.f32 %v4235_v49, 0.0  ;;  %v4261_v27 = vadd.f32 -4.0, %v6888_v47 }
 0x462   : > { %v7043_v45 = vpop.xlane.xlu1 %3361  ;;  %3524 = vxpose.xlu0.b32.cont [10/16] (narrow) %v7003_v29, 8  ;;  %v7046_v17 = vpop.xlane.xlu0 %3359  ;;  %5232 = vpow2.f32 %v3155_v12  ;;  %v4237_v15 = vadd.f32 -4.0, %v7521_v63  ;;  %v3228_v63 = vmin.f32 %v4246_v32, 0.0  ;;  %v3259_v30 = vmul.f32 1.442695, %v3227_v50 }
 0x463   : > { %7516 = vst [vmem:[#allocation79_spill] sm:$0xff] %v7043_v45  ;;  %7517 = vst [vmem:[#allocation80_spill] sm:$0xff] %v7046_v17  ;;  %v7060_v45 = vadd.f32 -4.0, %v6799_v55  ;;  %v7062_v2 = vpop.eup %5202  ;;  %v4238_v55 = vadd.f32 -4.0, %v6817_v42  ;;  %v3171_v57 = vmul.f32 1.442695, %v3119_v31  ;;  %5234 = vpow2.f32 %v3169_v48 }
 0x464   : > { %3555 = vxpose.xlu1.b32.cont [9/16] (narrow) %v7048_v25, 8  ;;  %v7070_v17 = vpop.eup %5204  ;;  %v3177_v42 = vmul.f32 1.442695, %v3122_v58  ;;  %5236 = vpow2.f32 %v3167_v26  ;;  %v7522_v48 = vld [vmem:[#allocation55_spill] sm:$0xff]  ;;  %v3123_v49 = vmin.f32 %v4237_v15, 0.0 }
 0x465   : > { %v7073_v61 = vpop.eup %5206  ;;  %v3124_v8 = vmin.f32 %v4238_v55, 0.0  ;;  %5238 = vpow2.f32 %v3173_v7  ;;  %v4247_v58 = vadd.f32 -4.0, %v7522_v48  ;;  %v7524_v48 = vld [vmem:[#allocation48_spill] sm:$0xff] }
 0x466   : > { %v7065_v60 = vpop.xlane.xlu1 %3365  ;;  %3525 = vxpose.xlu0.b32.cont [11/16] (narrow) %v7022_v21, 8  ;;  %v7068_v11 = vpop.xlane.xlu0 %3363  ;;  %v4239_v10 = vadd.f32 -4.0, %v7524_v48 }
 0x467   : > { %7518 = vst [vmem:[#allocation81_spill] sm:$0xff] %v7065_v60  ;;  %7519 = vst [vmem:[#allocation82_spill] sm:$0xff] %v7068_v11  ;;  %v7078_v60 = vpop.eup %5208  ;;  %5240 = vpow2.f32 %v3171_v57 }
 0x468   : > { %3556 = vxpose.xlu1.b32.cont [10/16] (narrow) %v7057_v46, 8  ;;  %v7082_v44 = vpop.eup %5210  ;;  %5242 = vpow2.f32 %v3177_v42 }
 0x469   : > { %v5213_v54 = vpop.eup %5212  ;;  %5244 = vpow2.f32 %v3259_v30  ;;  %v4263_v30 = vadd.f32 -4.0, %v6899_v56 }
 0x46a   : > { %v3370_v9 = vpop.xlane.xlu1 %3369  ;;  %3526 = vxpose.xlu0.b32.cont [12/16] (narrow) %v7019_v36, 8  ;;  %v3368_v6 = vpop.xlane.xlu0 %3367 }
 0x46b   : > { %v3426_v12 = vsub.f32 %v3370_v9, %v6998_v51  ;;  %v3425_v31 = vsub.f32 %v3368_v6, %v6976_v13  ;;  %v5215_v11 = vpop.eup %5214  ;;  %v3175_v51 = vmul.f32 1.442695, %v3121_v35  ;;  %v4262_v13 = vadd.f32 -4.0, %v6885_v19  ;;  %v7525_v35 = vld [vmem:[#allocation54_spill] sm:$0xff] }
 0x46c   : > { %3557 = vxpose.xlu1.b32.cont [11/16] (narrow) %v7070_v17, 8  ;;  %v7090_v47 = vpop.eup %5216  ;;  %v3243_v9 = vmin.f32 %v4261_v27, 0.0  ;;  %v3181_v6 = vmul.f32 1.442695, %v3124_v8  ;;  %v4248_v42 = vadd.f32 -4.0, %v7525_v35  ;;  %v3229_v19 = vmin.f32 %v4247_v58, 0.0 }
 0x46d   : > { %v7092_v33 = vsub.f32 %v3426_v12, %v5213_v54  ;;  %v7094_v26 = vsub.f32 %v3425_v31, %v5215_v11  ;;  %v5219_v55 = vpop.eup %5218  ;;  %v3261_v54 = vmul.f32 1.442695, %v3228_v63  ;;  %v3179_v12 = vmul.f32 1.442695, %v3123_v49  ;;  %v7526_v31 = vld [vmem:[#allocation47_spill] sm:$0xff] }
 0x46e   : > { %v3374_v7 = vpop.xlane.xlu1 %3373  ;;  %3527 = vxpose.xlu0.b32.cont [13/16] (narrow) %v7037_v43, 8  ;;  %v3372_v32 = vpop.xlane.xlu0 %3371  ;;  %v4240_v8 = vadd.f32 -4.0, %v7526_v31  ;;  %5246 = vpow2.f32 %v3175_v51  ;;  %v3291_v63 = vmul.f32 1.442695, %v3243_v9  ;;  %v3125_v49 = vmin.f32 %v4239_v10, 0.0  ;;  %v7529_v51 = vld [vmem:[#allocation57_spill] sm:$0xff] }
 0x46f   : > { %7523 = vst [vmem:[#allocation53_spill] sm:$0xff] %v7092_v33  ;;  %v5221_v50 = vpop.eup %5220  ;;  %v3428_v57 = vsub.f32 %v3374_v7, %v7003_v29  ;;  %v3427_v15 = vsub.f32 %v3372_v32, %v7014_v40  ;;  %v3244_v40 = vmin.f32 %v4262_v13, 0.0  ;;  %5248 = vpow2.f32 %v3181_v6 }
 0x470   : > { %v7101_v11 = vpop.eup %5222  ;;  %3558 = vxpose.xlu1.b32.cont [12/16] (narrow) %v7062_v2, 8  ;;  %5250 = vpow2.f32 %v3261_v54  ;;  %v4249_v13 = vadd.f32 -4.0, %v7529_v51  ;;  %v3126_v56 = vmin.f32 %v4240_v8, 0.0  ;;  %v7532_v51 = vld [vmem:[#allocation49_spill] sm:$0xff] }
 0x471   : > { %v7105_v27 = vpop.eup %5224  ;;  %v7108_v33 = vsub.f32 %v3428_v57, %v5219_v55  ;;  %v7110_v48 = vsub.f32 %v3427_v15, %v5221_v50  ;;  %v3230_v57 = vmin.f32 %v4248_v42, 0.0  ;;  %v3263_v15 = vmul.f32 1.442695, %v3229_v19 }
 0x472   : > { %v7112_v29 = vpop.eup %5226  ;;  %v3390_v7 = vpop.xlane.xlu1 %3389  ;;  %3528 = vxpose.xlu0.b32.cont [14/16] (narrow) %v7033_v4, 8  ;;  %5252 = vpow2.f32 %v3179_v12  ;;  %v3293_v10 = vmul.f32 1.442695, %v3244_v40  ;;  %v7531_v40 = vld [vmem:[#allocation56_spill] sm:$0xff] }
 0x473   : > { %7527 = vst [vmem:[#allocation46_spill] sm:$0xff] %v7108_v33  ;;  %7528 = vst [vmem:[#allocation55_spill] sm:$0xff] %v7110_v48  ;;  %v3388_v58 = vpop.xlane.xlu0 %3387  ;;  %v5229_v32 = vpop.eup %5228  ;;  %v3436_v35 = vsub.f32 %v3390_v7, %v6915_v39  ;;  %5254 = vpow2.f32 %v3291_v63  ;;  %v3245_v39 = vmin.f32 %v4263_v30, 0.0  ;;  %v3183_v7 = vmul.f32 1.442695, %v3125_v49 }
 0x474   : > { %v3435_v55 = vsub.f32 %v3388_v58, %v6901_v14  ;;  %v5231_v50 = vpop.eup %5230  ;;  %3559 = vxpose.xlu1.b32.cont [13/16] (narrow) %v7078_v60, 8  ;;  %v4264_v14 = vadd.f32 -4.0, %v6896_v16  ;;  %v7530_v58 = vld [vmem:[#allocation50_spill] sm:$0xff]  ;;  %5256 = vpow2.f32 %v3263_v15  ;;  %v4250_v63 = vadd.f32 -4.0, %v7531_v40 }
 0x475   : > { %v7120_v9 = vsub.f32 %v3436_v35, %v5229_v32  ;;  %v7124_v6 = vpop.eup %5232  ;;  %v4241_v12 = vadd.f32 -4.0, %v7530_v58  ;;  %v3185_v30 = vmul.f32 1.442695, %v3126_v56  ;;  %v4242_v33 = vadd.f32 -4.0, %v7532_v51  ;;  %v7534_v51 = vld [vmem:[#allocation52_spill] sm:$0xff] }
 0x476   : > { %v7122_v31 = vsub.f32 %v3435_v55, %v5231_v50  ;;  %v3394_v54 = vpop.xlane.xlu1 %3393  ;;  %3529 = vxpose.xlu0.b32.cont [15/16] (narrow) %v7050_v34, 8  ;;  %v5235_v19 = vpop.eup %5234  ;;  %v3265_v55 = vmul.f32 1.442695, %v3230_v57  ;;  %v3231_v50 = vmin.f32 %v4249_v13, 0.0  ;;  %5258 = vpow2.f32 %v3293_v10 }
 0x477   : > { %v3392_v42 = vpop.xlane.xlu0 %3391  ;;  %v3438_v8 = vsub.f32 %v3394_v54, %v6949_v20  ;;  %v5237_v35 = vpop.eup %5236  ;;  %v3246_v20 = vmin.f32 %v4264_v14, 0.0  ;;  %v4265_v57 = vadd.f32 -4.0, %v6913_v18  ;;  %5260 = vpow2.f32 %v3183_v7 }
 0x478   : > { %v3437_v32 = vsub.f32 %v3392_v42, %v6931_v0  ;;  %3560 = vxpose.xlu1.b32.cont [14/16] (narrow) %v7073_v61, 8  ;;  %v5239_v16 = vpop.eup %5238  ;;  %v3295_v0 = vmul.f32 1.442695, %v3245_v39  ;;  %v3127_v42 = vmin.f32 %v4241_v12, 0.0  ;;  %5262 = vpow2.f32 %v3265_v55 }
 0x479   : > { %v7134_v48 = vsub.f32 %v3438_v8, %v5235_v19  ;;  %v5241_v58 = vpop.eup %5240  ;;  %v3232_v8 = vmin.f32 %v4250_v63, 0.0  ;;  %5264 = vpow2.f32 %v3185_v30  ;;  %v3128_v18 = vmin.f32 %v4242_v33, 0.0 }
 0x47a   : > { %v7136_v49 = vsub.f32 %v3437_v32, %v5237_v35  ;;  %v3398_v15 = vpop.xlane.xlu1 %3397  ;;  %3530 = vxpose.xlu0.b32.end [16/16] (narrow) %v7040_v3, 8  ;;  %v5243_v54 = vpop.eup %5242  ;;  %v3267_v32 = vmul.f32 1.442695, %v3231_v50  ;;  %v7533_v35 = vld [vmem:[#allocation59_spill] sm:$0xff]  ;;  %v3297_v7 = vmul.f32 1.442695, %v3246_v20  ;;  %5266 = vpow2.f32 %v3295_v0 }
 0x47b   : > { %v3396_v13 = vpop.xlane.xlu0 %3395  ;;  %v3440_v56 = vsub.f32 %v3398_v15, %v6989_v37  ;;  %v4251_v10 = vadd.f32 -4.0, %v7533_v35  ;;  %v5245_v14 = vpop.eup %5244  ;;  %v4266_v37 = vadd.f32 -4.0, %v6910_v62  ;;  %v3247_v12 = vmin.f32 %v4265_v57, 0.0 }
 0x47c   : > { %v3439_v19 = vsub.f32 %v3396_v13, %v6968_v52  ;;  %3561 = vxpose.xlu1.b32.cont [15/16] (narrow) %v7090_v47, 8  ;;  %v5247_v63 = vpop.eup %5246  ;;  %v3187_v50 = vmul.f32 1.442695, %v3127_v42  ;;  %v4243_v15 = vadd.f32 -4.0, %v7534_v51  ;;  %v3269_v30 = vmul.f32 1.442695, %v3232_v8 }
 0x47d   : > { %v7144_v39 = vsub.f32 %v3440_v56, %v5239_v16  ;;  %v5249_v16 = vpop.eup %5248  ;;  %5268 = vpow2.f32 %v3267_v32  ;;  %v3233_v0 = vmin.f32 %v4251_v10, 0.0  ;;  %v3189_v57 = vmul.f32 1.442695, %v3128_v18  ;;  %v7536_v56 = vld [vmem:[#allocation51_spill] sm:$0xff] }
 0x47e   : > { %v7146_v40 = vsub.f32 %v3439_v19, %v5241_v58  ;;  %v3402_v52 = vpop.xlane.xlu1 %3401  ;;  %3599 = vxpose.xlu0.b32.start [1/16] (narrow) %v5245_v14, 8  ;;  %v7535_v58 = vld [vmem:[#allocation58_spill] sm:$0xff]  ;;  %v5251_v62 = vpop.eup %5250  ;;  %v4244_v19 = vadd.f32 -4.0, %v7536_v56  ;;  %5270 = vpow2.f32 %v3297_v7  ;;  %v4267_v8 = vadd.f32 -4.0, %v6929_v1 }
 0x47f   : > { %v3400_v55 = vpop.xlane.xlu0 %3399  ;;  %v3442_v13 = vsub.f32 %v3402_v52, %v7030_v22  ;;  %v4252_v20 = vadd.f32 -4.0, %v7535_v58  ;;  %v5253_v14 = vpop.eup %5252  ;;  %v3248_v22 = vmin.f32 %v4266_v37, 0.0  ;;  %5272 = vpow2.f32 %v3187_v50 }
 0x480   : > { %v3441_v33 = vsub.f32 %v3400_v55, %v7011_v23  ;;  %3562 = vxpose.xlu1.b32.end [16/16] (narrow) %v7082_v44, 8  ;;  %v3299_v23 = vmul.f32 1.442695, %v3247_v12  ;;  %v5255_v10 = vpop.eup %5254  ;;  %v3129_v55 = vmin.f32 %v4243_v15, 0.0  ;;  %5274 = vpow2.f32 %v3269_v30 }
 0x481   : > { %v7155_v35 = vsub.f32 %v3442_v13, %v5243_v54  ;;  %v3234_v54 = vmin.f32 %v4252_v20, 0.0  ;;  %v4253_v13 = vadd.f32 -4.0, %v6853_v41  ;;  %v5257_v7 = vpop.eup %5256  ;;  %v7537_v37 = vmin.f32 %v7060_v45, 0.0 }
 0x482   : > { %v7157_v42 = vsub.f32 %v3441_v33, %v5247_v63  ;;  %v3406_v32 = vpop.xlane.xlu1 %3405  ;;  %3600 = vxpose.xlu0.b32.cont [2/16] (narrow) %v5251_v62, 8  ;;  %v3271_v63 = vmul.f32 1.442695, %v3233_v0  ;;  %5276 = vpow2.f32 %v3189_v57  ;;  %v3301_v50 = vmul.f32 1.442695, %v3248_v22  ;;  %v7538_v57 = vld [vmem:[#allocation60_spill] sm:$0xff] }
 0x483   : > { %v3404_v52 = vpop.xlane.xlu0 %3403  ;;  %v3444_v18 = vsub.f32 %v3406_v32, %v7057_v46  ;;  %v3159_v1 = vmul.f32 1.442695, %v7537_v37  ;;  %5278 = vpow2.f32 %v3299_v23  ;;  %v4268_v46 = vadd.f32 -4.0, %v6926_v53  ;;  %v5259_v58 = vpop.eup %5258 }
 0x484   : > { %v3443_v51 = vsub.f32 %v3404_v52, %v7048_v25  ;;  %3631 = vxpose.xlu1.b32.start [1/16] (narrow) %v5255_v10, 8  ;;  %v3249_v25 = vmin.f32 %v4267_v8, 0.0  ;;  %v3130_v41 = vmin.f32 %v4244_v19, 0.0  ;;  %v3191_v20 = vmul.f32 1.442695, %v3129_v55  ;;  %v5261_v62 = vpop.eup %5260 }
 0x485   : > { %v7165_v12 = vsub.f32 %v3444_v18, %v5249_v16  ;;  %v3273_v16 = vmul.f32 1.442695, %v3234_v54  ;;  %5280 = vpow2.f32 %v3271_v63  ;;  %v4254_v56 = vadd.f32 -4.0, %v7538_v57  ;;  %v5263_v22 = vpop.eup %5262 }
 0x486   : > { %v7167_v33 = vsub.f32 %v3443_v51, %v5253_v14  ;;  %v3408_v15 = vpop.xlane.xlu1 %3407  ;;  %3601 = vxpose.xlu0.b32.cont [3/16] (narrow) %v5257_v7, 8  ;;  %v3235_v14 = vmin.f32 %v4253_v13, 0.0  ;;  %v7539_v53 = vmin.f32 %v7053_v38, 0.0  ;;  %5282 = vpow2.f32 %v3159_v1 }
 0x487   : > { %v3376_v30 = vpop.xlane.xlu0 %3375  ;;  %v3445_v0 = vsub.f32 %v3408_v15, %v7070_v17  ;;  %v5265_v17 = vpop.eup %5264  ;;  %5284 = vpow2.f32 %v3301_v50  ;;  %v3303_v32 = vmul.f32 1.442695, %v3249_v25  ;;  %v4269_v52 = vadd.f32 -4.0, %v6947_v28 }
 0x488   : > { %v3429_v45 = vsub.f32 %v3376_v30, %v7022_v21  ;;  %3632 = vxpose.xlu1.b32.cont [2/16] (narrow) %v5259_v58, 8  ;;  %v3161_v23 = vmul.f32 1.442695, %v7539_v53  ;;  %v3250_v21 = vmin.f32 %v4268_v46, 0.0  ;;  %v5267_v18 = vpop.eup %5266  ;;  %v3193_v51 = vmul.f32 1.442695, %v3130_v41 }
 0x489   : > { %v7175_v8 = vsub.f32 %v3445_v0, %v5261_v62  ;;  %5286 = vpow2.f32 %v3191_v20  ;;  %v3236_v63 = vmin.f32 %v4254_v56, 0.0  ;;  %v4255_v13 = vadd.f32 -4.0, %v6861_v59  ;;  %v7540_v41 = vld [vmem:[#allocation61_spill] sm:$0xff] }
 0x48a   : > { %v7178_v19 = vsub.f32 %v3429_v45, %v7105_v27  ;;  %v3410_v10 = vpop.xlane.xlu1 %3409  ;;  %3602 = vxpose.xlu0.b32.cont [4/16] (narrow) %v5263_v22, 8  ;;  %5288 = vpow2.f32 %v3273_v16  ;;  %v3275_v27 = vmul.f32 1.442695, %v3235_v14  ;;  %v5269_v7 = vpop.eup %5268  ;;  %v3305_v1 = vmul.f32 1.442695, %v3250_v21  ;;  %v7541_v21 = vld [vmem:[#allocation63_spill] sm:$0xff] }
 0x48b   : > { %v3378_v55 = vpop.xlane.xlu0 %3377  ;;  %v3446_v38 = vsub.f32 %v3410_v10, %v7062_v2  ;;  %5290 = vpow2.f32 %v3161_v23  ;;  %v4270_v50 = vadd.f32 -4.0, %v6944_v24  ;;  %v3251_v2 = vmin.f32 %v4269_v52, 0.0  ;;  %v5271_v25 = vpop.eup %5270 }
 0x48c   : > { %v3430_v54 = vsub.f32 %v3378_v55, %v7019_v36  ;;  %3633 = vxpose.xlu1.b32.cont [3/16] (narrow) %v5267_v18, 8  ;;  %5292 = vpow2.f32 %v3303_v32  ;;  %v5273_v30 = vpop.eup %5272  ;;  %v3277_v58 = vmul.f32 1.442695, %v3236_v63  ;;  %v3237_v20 = vmin.f32 %v4255_v13, 0.0  ;;  %v7542_v18 = vld [vmem:[#allocation72_spill] sm:$0xff] }
 0x48d   : > { %v7184_v37 = vsub.f32 %v3446_v38, %v5265_v17  ;;  %5294 = vpow2.f32 %v3193_v51  ;;  %v5275_v0 = vpop.eup %5274  ;;  %v3252_v16 = vmin.f32 %v4270_v50, 0.0  ;;  %v3307_v57 = vmul.f32 1.442695, %v3251_v2 }
 0x48e   : > { %v7187_v28 = vsub.f32 %v3430_v54, %v7101_v11  ;;  %v3412_v46 = vpop.xlane.xlu1 %3411  ;;  %3603 = vxpose.xlu0.b32.cont [5/16] (narrow) %v5269_v7, 8  ;;  %5296 = vpow2.f32 %v3275_v27  ;;  %v4256_v11 = vadd.f32 -4.0, %v7540_v41  ;;  %v3279_v17 = vmul.f32 1.442695, %v3237_v20 }
 0x48f   : > { %v3380_v36 = vpop.xlane.xlu0 %3379  ;;  %v3447_v59 = vsub.f32 %v3412_v46, %v7078_v60  ;;  %v5277_v62 = vpop.eup %5276  ;;  %5298 = vpow2.f32 %v3305_v1  ;;  %v4271_v60 = vadd.f32 -4.0, %v6966_v5  ;;  %v3309_v55 = vmul.f32 1.442695, %v3252_v16  ;;  %v7543_v1 = vld [vmem:[#allocation62_spill] sm:$0xff] }
 0x490   : > { %v3431_v15 = vsub.f32 %v3380_v36, %v7037_v43  ;;  %3634 = vxpose.xlu1.b32.cont [4/16] (narrow) %v5271_v25, 8  ;;  %v5279_v14 = vpop.eup %5278  ;;  %5300 = vpow2.f32 %v3277_v58  ;;  %v3238_v23 = vmin.f32 %v4256_v11, 0.0  ;;  %v4272_v51 = vadd.f32 -4.0, %v7542_v18 }
 0x491   : > { %v7193_v45 = vsub.f32 %v3447_v59, %v5273_v30  ;;  %5302 = vpow2.f32 %v3307_v57  ;;  %v7544_v30 = vld [vmem:[#allocation74_spill] sm:$0xff]  ;;  %v7545_v57 = vld [vmem:[#allocation65_spill] sm:$0xff] }
 0x492   : > { %v7196_v24 = vsub.f32 %v3431_v15, %v7124_v6  ;;  %v3414_v43 = vpop.xlane.xlu1 %3413  ;;  %3604 = vxpose.xlu0.b32.cont [6/16] (narrow) %v5275_v0, 8  ;;  %v4257_v6 = vadd.f32 -4.0, %v7541_v21  ;;  %v5281_v32 = vpop.eup %5280  ;;  %v3281_v7 = vmul.f32 1.442695, %v3238_v23  ;;  %5304 = vpow2.f32 %v3279_v17  ;;  %v7547_v17 = vld [vmem:[#allocation73_spill] sm:$0xff] }
 0x493   : > { %v3382_v56 = vpop.xlane.xlu0 %3381  ;;  %v3448_v22 = vsub.f32 %v3414_v43, %v7073_v61  ;;  %v5283_v5 = vpop.eup %5282  ;;  %v3253_v61 = vmin.f32 %v4271_v60, 0.0  ;;  %5306 = vpow2.f32 %v3309_v55  ;;  %v3254_v59 = vmin.f32 %v4272_v51, 0.0  ;;  %v7549_v51 = vld [vmem:[#allocation39_spill] sm:$0xff] }
 0x494   : > { %v3432_v53 = vsub.f32 %v3382_v56, %v7033_v4  ;;  %3635 = vxpose.xlu1.b32.cont [5/16] (narrow) %v5279_v14, 8  ;;  %v5285_v54 = vpop.eup %5284  ;;  %v3239_v50 = vmin.f32 %v4257_v6, 0.0  ;;  %5308 = vpow2.f32 %v3281_v7  ;;  %v4259_v60 = vadd.f32 -4.0, %v7545_v57  ;;  %v7546_v56 = vld [vmem:[#allocation40_spill] sm:$0xff] }
 0x495   : > { %v7202_v52 = vsub.f32 %v3448_v22, %v5277_v62  ;;  %v3311_v15 = vmul.f32 1.442695, %v3253_v61  ;;  %v4213_v14 = vadd.f32 -4.0, %v7546_v56  ;;  %v3313_v23 = vmul.f32 1.442695, %v3254_v59 }
 0x496   : > { %v7205_v10 = vsub.f32 %v3432_v53, %v7112_v29  ;;  %v3416_v38 = vpop.xlane.xlu1 %3415  ;;  %3605 = vxpose.xlu0.b32.cont [7/16] (narrow) %v5281_v32, 8  ;;  %v5287_v13 = vpop.eup %5286  ;;  %v4258_v29 = vadd.f32 -4.0, %v7543_v1  ;;  %v3283_v16 = vmul.f32 1.442695, %v3239_v50  ;;  %v7548_v32 = vld [vmem:[#allocation64_spill] sm:$0xff]  ;;  %v3241_v55 = vmin.f32 %v4259_v60, 0.0 }
 0x497   : > { %v3384_v4 = vpop.xlane.xlu0 %3383  ;;  %v3449_v63 = vsub.f32 %v3416_v38, %v7090_v47  ;;  %v5289_v2 = vpop.eup %5288  ;;  %v4273_v47 = vadd.f32 -4.0, %v7544_v30  ;;  %5310 = vpow2.f32 %v3311_v15  ;;  %v4214_v61 = vadd.f32 -4.0, %v7549_v51  ;;  %v7552_v30 = vld [vmem:[#allocation75_spill] sm:$0xff] }
 0x498   : > { %v3433_v27 = vsub.f32 %v3384_v4, %v7050_v34  ;;  %3636 = vxpose.xlu1.b32.cont [6/16] (narrow) %v5285_v54, 8  ;;  %v5291_v25 = vpop.eup %5290  ;;  %v3240_v62 = vmin.f32 %v4258_v29, 0.0  ;;  %5312 = vpow2.f32 %v3283_v16  ;;  %v3099_v38 = vmin.f32 %v4213_v14, 0.0 }
 0x499   : > { %v7211_v46 = vsub.f32 %v3449_v63, %v5287_v13  ;;  %v5293_v41 = vpop.eup %5292  ;;  %v3255_v21 = vmin.f32 %v4273_v47, 0.0  ;;  %5314 = vpow2.f32 %v3313_v23  ;;  %v7550_v63 = vld [vmem:[#allocation76_spill] sm:$0xff]  ;;  %v3287_v1 = vmul.f32 1.442695, %v3241_v55 }
 0x49a   : > { %v7213_v36 = vsub.f32 %v3433_v27, %v5283_v5  ;;  %v3418_v58 = vpop.xlane.xlu1 %3417  ;;  %3606 = vxpose.xlu0.b32.cont [8/16] (narrow) %v5289_v2, 8  ;;  %v5295_v0 = vpop.eup %5294  ;;  %v3285_v6 = vmul.f32 1.442695, %v3240_v62  ;;  %v4260_v5 = vadd.f32 -4.0, %v7548_v32  ;;  %v4275_v27 = vadd.f32 -4.0, %v7550_v63  ;;  %v7553_v62 = vld [vmem:[#allocation41_spill] sm:$0xff] }
 0x49b   : > { %v3386_v34 = vpop.xlane.xlu0 %3385  ;;  %v3450_v11 = vsub.f32 %v3418_v58, %v7082_v44  ;;  %v5297_v43 = vpop.eup %5296  ;;  %v4274_v44 = vadd.f32 -4.0, %v7547_v17  ;;  %v3315_v54 = vmul.f32 1.442695, %v3255_v21  ;;  %v3100_v50 = vmin.f32 %v4214_v61, 0.0  ;;  %v7554_v17 = vld [vmem:[#allocation45_spill] sm:$0xff]  ;;  %v7556_v61 = vld [vmem:[#allocation66_spill] sm:$0xff] }
 0x49c   : > { %v3434_v20 = vsub.f32 %v3386_v34, %v7040_v3  ;;  %3637 = vxpose.xlu1.b32.cont [7/16] (narrow) %v5293_v41, 8  ;;  %v5299_v3 = vpop.eup %5298  ;;  %5316 = vpow2.f32 %v3285_v6  ;;  %v3242_v7 = vmin.f32 %v4260_v5, 0.0  ;;  %v3131_v2 = vmul.f32 1.442695, %v3099_v38  ;;  %v7555_v5 = vld [vmem:[#allocation44_spill] sm:$0xff]  ;;  %v7557_v38 = vld [vmem:[#allocation78_spill] sm:$0xff] }
 0x49d   : > { %v7220_v22 = vsub.f32 %v3450_v11, %v5295_v0  ;;  %v5301_v18 = vpop.eup %5300  ;;  %v3256_v4 = vmin.f32 %v4274_v44, 0.0  ;;  %5318 = vpow2.f32 %v3315_v54  ;;  %v4276_v47 = vadd.f32 -4.0, %v7552_v30 }
 0x49e   : > { %v7222_v53 = vsub.f32 %v3434_v20, %v5291_v25  ;;  %3607 = vxpose.xlu0.b32.cont [9/16] (narrow) %v5297_v43, 8  ;;  %v5303_v13 = vpop.eup %5302  ;;  %v7551_v25 = vld [vmem:[#allocation42_spill] sm:$0xff]  ;;  %v3257_v58 = vmin.f32 %v4275_v27, 0.0  ;;  %v3289_v41 = vmul.f32 1.442695, %v3242_v7  ;;  %5320 = vpow2.f32 %v3287_v1  ;;  %v7558_v1 = vld [vmem:[#allocation67_spill] sm:$0xff] }
 0x49f   : > { %v5305_v29 = vpop.eup %5304  ;;  %v4215_v59 = vadd.f32 -4.0, %v7551_v25  ;;  %v3317_v15 = vmul.f32 1.442695, %v3256_v4  ;;  %v3133_v20 = vmul.f32 1.442695, %v3100_v50  ;;  %5322 = vpow2.f32 %v3131_v2 }
 0x4a0   : > { %3638 = vxpose.xlu1.b32.cont [8/16] (narrow) %v5299_v3, 8  ;;  %v5307_v34 = vpop.eup %5306  ;;  %v4216_v16 = vadd.f32 -4.0, %v7553_v62  ;;  %v3258_v57 = vmin.f32 %v4276_v47, 0.0  ;;  %v3319_v60 = vmul.f32 1.442695, %v3257_v58  ;;  %v4217_v44 = vadd.f32 -4.0, %v7554_v17 }
 0x4a1   : > { %v5309_v11 = vpop.eup %5308  ;;  %v3101_v0 = vmin.f32 %v4215_v59, 0.0  ;;  %5324 = vpow2.f32 %v3317_v15  ;;  %v4218_v55 = vadd.f32 -4.0, %v7555_v5  ;;  %v3419_v4 = vsub.f32 %v7557_v38, %v7556_v61 }
 0x4a2   : > { %3608 = vxpose.xlu0.b32.cont [10/16] (narrow) %v5301_v18, 8  ;;  %5326 = vpow2.f32 %v3289_v41  ;;  %v3102_v23 = vmin.f32 %v4216_v16, 0.0  ;;  %v3321_v21 = vmul.f32 1.442695, %v3258_v57  ;;  %v3103_v18 = vmin.f32 %v4217_v44, 0.0  ;;  %v7561_v41 = vld [vmem:[#allocation80_spill] sm:$0xff] }
 0x4a3   : > { %5328 = vpow2.f32 %v3133_v20  ;;  %v3135_v14 = vmul.f32 1.442695, %v3101_v0  ;;  %v3104_v27 = vmin.f32 %v4218_v55, 0.0  ;;  %v7562_v16 = vld [vmem:[#allocation69_spill] sm:$0xff]  ;;  %v7563_v57 = vld [vmem:[#allocation79_spill] sm:$0xff]  ;;  %v7564_v44 = vld [vmem:[#allocation70_spill] sm:$0xff] }
 0x4a4   : > { %3639 = vxpose.xlu1.b32.cont [9/16] (narrow) %v5303_v13, 8  ;;  %v5311_v43 = vpop.eup %5310  ;;  %5330 = vpow2.f32 %v3319_v60  ;;  %v3137_v32 = vmul.f32 1.442695, %v3102_v23  ;;  %v3139_v13 = vmul.f32 1.442695, %v3103_v18  ;;  %v3422_v60 = vsub.f32 %v7563_v57, %v7562_v16  ;;  %v7566_v55 = vld [vmem:[#allocation71_spill] sm:$0xff] }
 0x4a5   : > { %v5313_v56 = vpop.eup %5312  ;;  %5332 = vpow2.f32 %v3135_v14  ;;  %v3141_v15 = vmul.f32 1.442695, %v3104_v27  ;;  %v7567_v18 = vld [vmem:[#allocation81_spill] sm:$0xff]  ;;  %v7572_v16 = vld [vmem:[#allocation43_spill] sm:$0xff] }
 0x4a6   : > { %3609 = vxpose.xlu0.b32.cont [11/16] (narrow) %v5305_v29, 8  ;;  %v5315_v3 = vpop.eup %5314  ;;  %5334 = vpow2.f32 %v3321_v21  ;;  %v7559_v29 = vld [vmem:[#allocation77_spill] sm:$0xff]  ;;  %v7565_v21 = vld [vmem:[#allocation82_spill] sm:$0xff] }
 0x4a7   : > { %5336 = vpow2.f32 %v3137_v32  ;;  %v3420_v50 = vsub.f32 %v7559_v29, %v7558_v1  ;;  %v3505_v29 = vmax.f32 %v7157_v42, 0.0  ;;  %v3494_v42 = vmax.f32 %v7187_v28, 0.0 }
 0x4a8   : > { %3640 = vxpose.xlu1.b32.cont [10/16] (narrow) %v5307_v34, 8  ;;  %5338 = vpow2.f32 %v3139_v13  ;;  %v7560_v34 = vld [vmem:[#allocation68_spill] sm:$0xff]  ;;  %v3489_v13 = vmax.f32 %v7094_v26, 0.0  ;;  %v3507_v26 = vmax.f32 %v7167_v33, 0.0  ;;  %v3496_v33 = vmax.f32 %v7205_v10, 0.0 }
 0x4a9   : > { %v5317_v6 = vpop.eup %5316  ;;  %5340 = vpow2.f32 %v3141_v15  ;;  %v3509_v15 = vmax.f32 %v7175_v8, 0.0  ;;  %v3512_v28 = vmax.f32 %v7202_v52, 0.0  ;;  %v3498_v8 = vmax.f32 %v7222_v53, 0.0 }
 0x4aa   : > { %3610 = vxpose.xlu0.b32.cont [12/16] (narrow) %v5309_v11, 8  ;;  %v5319_v51 = vpop.eup %5318  ;;  %v3421_v11 = vsub.f32 %v7561_v41, %v7560_v34  ;;  %v5371_v10 = vmov 1966171168  }
 0x4ab   : > { %v5321_v54 = vpop.eup %5320 }
 0x4ac   : > { %3641 = vxpose.xlu1.b32.cont [11/16] (narrow) %v5311_v43, 8  ;;  %v5323_v63 = vpop.eup %5322 }
 0x4ad   : > { %v3451_v2 = vsub.f32 %v3419_v4, %v5323_v63  ;;  %v3502_v63 = vmax.f32 %v7134_v48, 0.0 }
 0x4ae   : > { %3611 = vxpose.xlu0.b32.cont [13/16] (narrow) %v5313_v56, 8  ;;  %v5325_v7 = vpop.eup %5324  ;;  %v3499_v56 = vmax.f32 %v7122_v31, 0.0  ;;  %v3501_v31 = vmax.f32 %v7136_v49, 0.0  ;;  %v7568_v49 = vld [vmem:[#allocation53_spill] sm:$0xff] }
 0x4af   : > { %v5327_v25 = vpop.eup %5326  ;;  %v3483_v58 = vmax.f32 %v3451_v2, 0.0  ;;  %v3490_v1 = vmax.f32 %v7568_v49, 0.0  ;;  %v3506_v2 = vmax.f32 %v7155_v35, 0.0  ;;  %v3495_v35 = vmax.f32 %v7196_v24, 0.0 }
 0x4b0   : > { %3642 = vxpose.xlu1.b32.cont [12/16] (narrow) %v5315_v3, 8  ;;  %v5329_v59 = vpop.eup %5328  ;;  %v3423_v3 = vsub.f32 %v7565_v21, %v7564_v44  ;;  %v3513_v24 = vmax.f32 %v7211_v46, 0.0  ;;  %v3760_v46 = vld [vmem:[%s7288_s1] sm:$0x3] }
 0x4b1   : > { %v5331_v30 = vpop.eup %5330  ;;  %v3452_v47 = vsub.f32 %v3420_v50, %v5329_v59  ;;  %v7569_v50 = vld [vmem:[#allocation55_spill] sm:$0xff]  ;;  %v3508_v59 = vmax.f32 %v7165_v12, 0.0  ;;  %v3497_v12 = vmax.f32 %v7213_v36, 0.0  ;;  %v7571_v36 = vlaneseq }
 0x4b2   : > { %3612 = vxpose.xlu0.b32.cont [14/16] (narrow) %v5317_v6, 8  ;;  %v5333_v20 = vpop.eup %5332  ;;  %v3500_v6 = vmax.f32 %v7120_v9, 0.0  ;;  %v3503_v9 = vmax.f32 %v7146_v40, 0.0  ;;  %v3491_v48 = vmax.f32 %v7569_v50, 0.0  ;;  %v7570_v40 = vld [vmem:[#allocation46_spill] sm:$0xff] }
 0x4b3   : > { %v5335_v0 = vpop.eup %5334  ;;  %v3484_v62 = vmax.f32 %v3452_v47, 0.0  ;;  %v3453_v43 = vsub.f32 %v3421_v11, %v5333_v20  ;;  %v3584_v47 = vunpack.c.l.s4 %v5371_v10  ;;  %v3587_v41 = vshrl.u32 %v7571_v36, 7 }
 0x4b4   : > { %3643 = vxpose.xlu1.b32.cont [13/16] (narrow) %v5319_v51, 8  ;;  %v5337_v14 = vpop.eup %5336  ;;  %v3424_v51 = vsub.f32 %v7567_v18, %v7566_v55  ;;  %vm3904_vm3 = vcmp.lt.s32.totalorder %v7571_v36, 256 }
 0x4b5   : > { %v3454_v23 = vsub.f32 %v3422_v60, %v5337_v14  ;;  %v3485_v17 = vmax.f32 %v3453_v43, 0.0  ;;  %v5339_v32 = vpop.eup %5338  ;;  %v3585_v34 = vunpack.c.0.s8 %v3584_v47  ;;  %v3579_v60 = vld [vmem:[#allocation5] sm:$0x3]  ;;  %v3750_v43 = vsub.s32 0, %v3587_v41 }
 0x4b6   : > { %3613 = vxpose.xlu0.b32.cont [15/16] (narrow) %v5321_v54, 8  ;;  %v3455_v61 = vsub.f32 %v3423_v3, %v5339_v32  ;;  %v5341_v38 = vpop.eup %5340 }
 0x4b7   : > { %v3486_v5 = vmax.f32 %v3454_v23, 0.0  ;;  %v3456_v4 = vsub.f32 %v3424_v51, %v5341_v38  ;;  %v3588_v11 = vsub.s32 %v3585_v34, %v3587_v41 }
 0x4b8   : > { %3644 = vxpose.xlu1.b32.cont [14/16] (narrow) %v5325_v7, 8  ;;  %v3487_v54 = vmax.f32 %v3455_v61, 0.0  ;;  %v3504_v7 = vmax.f32 %v7144_v39, 0.0  ;;  %v3493_v39 = vmax.f32 %v7178_v19, 0.0  ;;  %v3511_v19 = vmax.f32 %v7193_v45, 0.0 }
 0x4b9   : > { %v3488_v27 = vmax.f32 %v3456_v4, 0.0 }
 0x4ba   : > { %3614 = vxpose.xlu0.b32.end [16/16] (narrow) %v5327_v25, 8  ;;  %v3492_v25 = vmax.f32 %v7570_v40, 0.0 }
 0x4bc   : > { %3645 = vxpose.xlu1.b32.cont [15/16] (narrow) %v5331_v30, 8  ;;  %v3510_v30 = vmax.f32 %v7184_v37, 0.0  ;;  %v3514_v37 = vmax.f32 %v7220_v22, 0.0 }
 0x4be   : > { %3683 = vxpose.xlu0.b32.start [1/16] (narrow) %v3483_v58, 8  ;;  %v3531_v58 = vpop.trf.xlu0 }
 0x4c0   : > { %3646 = vxpose.xlu1.b32.end [16/16] (narrow) %v5335_v0, 8  ;;  %v3563_v45 = vpop.trf.xlu1 }
 0x4c1   : > { %v3582_v52 = vcombine.low %v3531_v58, %v3563_v45 }
 0x4c2   : > { %3684 = vxpose.xlu0.b32.cont [2/16] (narrow) %v3484_v62, 8 }
 0x4c3   : > { %v3589_v53 = vrot.slane %v3582_v52, %v3588_v11 }
 0x4c4   : > { %3715 = vxpose.xlu1.b32.start [1/16] (narrow) %v3499_v56, 8  ;;  %v3761_v56 = vmul.f32 0.0004863739, %v3760_v46 }
 0x4c5   : > { %v3596_v22 = vrot.slane %v3589_v53, %v3588_v11 }
 0x4c6   : > { %3685 = vxpose.xlu0.b32.cont [3/16] (narrow) %v3485_v17, 8  ;;  %v3754_v17 = vsub.s32 1, %v3587_v41  ;;  %v3843_v44 = vrot.slane %v3761_v56, %v3750_v43 }
 0x4c7   : > { %v3598_v23 = vsub.f32 %v3579_v60, %v3596_v22 }
 0x4c8   : > { %3716 = vxpose.xlu1.b32.cont [2/16] (narrow) %v3500_v6, 8  ;;  %v3847_v3 = vrot.slane %v3761_v56, %v3754_v17  ;;  %5342 = vrcp.f32 %v3843_v44 }
 0x4ca   : > { %3686 = vxpose.xlu0.b32.cont [4/16] (narrow) %v3486_v5, 8  ;;  %5344 = vrcp.f32 %v3847_v3 }
 0x4cc   : > { %3717 = vxpose.xlu1.b32.cont [3/16] (narrow) %v3501_v31, 8 }
 0x4ce   : > { %3687 = vxpose.xlu0.b32.cont [5/16] (narrow) %v3487_v54, 8 }
 0x4d0   : > { %3718 = vxpose.xlu1.b32.cont [4/16] (narrow) %v3502_v63, 8 }
 0x4d2   : > { %3688 = vxpose.xlu0.b32.cont [6/16] (narrow) %v3488_v27, 8  ;;  %v3873_v27 = vmul.f32 0.5, %v3531_v58 }
 0x4d4   : > { %3719 = vxpose.xlu1.b32.cont [5/16] (narrow) %v3503_v9, 8 }
 0x4d5   : > { %v5343_v51 = vpop.eup %5342 }
 0x4d6   : > { %3689 = vxpose.xlu0.b32.cont [7/16] (narrow) %v3489_v13, 8 }
 0x4d7   : > { %v5345_v31 = vpop.eup %5344 }
 0x4d8   : > { %3720 = vxpose.xlu1.b32.cont [6/16] (narrow) %v3504_v7, 8  ;;  %v3874_v7 = vmul.f32 0.5, %v3563_v45 }
 0x4da   : > { %3690 = vxpose.xlu0.b32.cont [8/16] (narrow) %v3490_v1, 8 }
 0x4dc   : > { %3721 = vxpose.xlu1.b32.cont [7/16] (narrow) %v3505_v29, 8 }
 0x4de   : > { %3691 = vxpose.xlu0.b32.cont [9/16] (narrow) %v3491_v48, 8 }
 0x4e0   : > { %3722 = vxpose.xlu1.b32.cont [8/16] (narrow) %v3506_v2, 8 }
 0x4e2   : > { %3692 = vxpose.xlu0.b32.cont [10/16] (narrow) %v3492_v25, 8 }
 0x4e4   : > { %3723 = vxpose.xlu1.b32.cont [9/16] (narrow) %v3507_v26, 8 }
 0x4e6   : > { %3693 = vxpose.xlu0.b32.cont [11/16] (narrow) %v3493_v39, 8  ;;  %v3882_v39 = vmul.f32 0.99, %v3760_v46 }
 0x4e8   : > { %3724 = vxpose.xlu1.b32.cont [10/16] (narrow) %v3508_v59, 8 }
 0x4ea   : > { %3694 = vxpose.xlu0.b32.cont [12/16] (narrow) %v3494_v42, 8 }
 0x4ec   : > { %3725 = vxpose.xlu1.b32.cont [11/16] (narrow) %v3509_v15, 8 }
 0x4ee   : > { %3695 = vxpose.xlu0.b32.cont [13/16] (narrow) %v3495_v35, 8 }
 0x4f0   : > { %3726 = vxpose.xlu1.b32.cont [12/16] (narrow) %v3510_v30, 8 }
 0x4f2   : > { %3696 = vxpose.xlu0.b32.cont [14/16] (narrow) %v3496_v33, 8 }
 0x4f4   : > { %3727 = vxpose.xlu1.b32.cont [13/16] (narrow) %v3511_v19, 8 }
 0x4f6   : > { %3697 = vxpose.xlu0.b32.cont [15/16] (narrow) %v3497_v12, 8 }
 0x4f8   : > { %3728 = vxpose.xlu1.b32.cont [14/16] (narrow) %v3512_v28, 8 }
 0x4fa   : > { %3698 = vxpose.xlu0.b32.end [16/16] (narrow) %v3498_v8, 8  ;;  %v3615_v0 = vpop.trf.xlu0 }
 0x4fc   : > { %3729 = vxpose.xlu1.b32.cont [15/16] (narrow) %v3513_v24, 8 }
 0x500   : > { %3730 = vxpose.xlu1.b32.end [16/16] (narrow) %v3514_v37, 8  ;;  %v3647_v20 = vpop.trf.xlu1 }
 0x501   : > { %v3665_v62 = vcombine.low %v3615_v0, %v3647_v20 }
 0x503   : > { %v3672_v57 = vrot.slane %v3665_v62, %v3588_v11 }
 0x505   : > { %v3679_v14 = vrot.slane %v3672_v57, %v3588_v11 }
 0x507   : > { %v3681_v21 = vsub.f32 %v3598_v23, %v3679_v14 }
 0x509   : > { %v3682_v6 = vmax.f32 %v3681_v21, 0.0 }
 0x50b   : > { %v3751_v32 = vrot.slane %v3682_v6, %v3750_v43  ;;  %v3755_v61 = vrot.slane %v3682_v6, %v3754_v17 }
 0x527   : > { %3826 = vadd.xlane.f32.xlu0 %v7572_v16 }
 0x53a   : > { %v3699_v5 = vpop.trf.xlu0 }
 0x53b   : > { %v3758_v55 = vadd.f32 %v3751_v32, %v3699_v5 }
 0x53d   : > { %v3875_v18 = vmul.f32 0.5, %v3758_v55  ;;  %v3851_v4 = vmul.f32 %v5343_v51, %v3758_v55 }
 0x53f   : > { %v3878_v54 = vmul.f32 0.0009803922, %v3875_v18  ;;  %v3855_v49 = vsel %vm3854_vm2, %v3851_v4, 0.0 }
 0x540   : > { %v3731_v38 = vpop.trf.xlu1 }
 0x541   : > { %v3759_v63 = vadd.f32 %v3755_v61, %v3731_v38  ;;  %v3880_v1 = vadd.f32 %v3878_v54, %v3873_v27 }
 0x543   : > { %v3853_v9 = vmul.f32 %v5345_v31, %v3759_v63  ;;  %v3876_v13 = vmul.f32 0.5, %v3759_v63  ;;  %v3883_v40 = vmul.f32 10485.76, %v3880_v1 }
 0x545   : > { %v3856_v29 = vsel %vm3854_vm2, %v3853_v9, 0.0  ;;  %v3879_v50 = vmul.f32 0.0009803922, %v3876_v13 }
 0x546   : > { %v3857_v48 = vadd.f32 %v3856_v29, %v3855_v49 }
 0x547   : > { %v3881_v2 = vadd.f32 %v3879_v50, %v3874_v7 }
 0x548   : > { %3858 = vadd.xlane.f32.xlu1 %v3857_v48 }
 0x549   : > { %v3884_v25 = vmul.f32 10485.76, %v3881_v2 }
 0x54b   : > { %v3887_v26 = vcombine.low %v3883_v40, %v3884_v25 }
 0x54d   : > { %v3894_v59 = vrot.slane %v3887_v26, %v3588_v11 }
 0x54f   : > { %v3901_v42 = vrot.slane %v3894_v59, %v3588_v11 }
 0x551   : > { %v3903_v15 = vadd.f32 %v3901_v42, %v3882_v39 }
 0x553   : > { %3906 = vst.msk [vmem:[%s7290_s3] sm:$0x3] %vm3904_vm3, %v3903_v15 }
 0x5b0   : > { %v3827_v35 = vpop.xlane.xlu0 %3826 }
 0x5b1   : > { %v3828_v30 = vrot.slane %v3827_v35, 4 }
 0x5b3   : > { %v3829_v33 = vadd.f32 %v3828_v30, %v3827_v35 }
 0x5b5   : > { %v3830_v19 = vrot.slane %v3829_v33, 2 }
 0x5b7   : > { %v3831_v12 = vadd.f32 %v3830_v19, %v3829_v33 }
 0x5b9   : > { %v3832_v28 = vrot.slane %v3831_v12, 1 }
 0x5bb   : > { %v3833_v8 = vadd.f32 %v3832_v28, %v3831_v12 }
 0x5bd   : > { %4729 = vpush %v3833_v8 }
 0x5d1   : > { %v3859_v24 = vpop.xlane.xlu1 %3858 }
 0x5d2   : > { %v3860_v37 = vrot.slane %v3859_v24, 4 }
 0x5d4   : > { %v3861_v10 = vadd.f32 %v3860_v37, %v3859_v24 }
 0x5d6   : > { %v3862_v47 = vrot.slane %v3861_v10, 2 }
 0x5d8   : > { %v3863_v45 = vadd.f32 %v3862_v47, %v3861_v10 }
 0x5da   : > { %v3864_v58 = vrot.slane %v3863_v45, 1 }
 0x5dc   : > { %v3865_v34 = vadd.f32 %v3864_v58, %v3863_v45 }
 0x5de   : > { %4731 = vpush %v3865_v34 }
 0x5ee   : > { %s4730_s4 = spop %4729 }
 0x5ef   : > { %s3835_s5 = ssub.f32 0.0, %s4730_s4 }
 0x5f1   : > { %s3838_s6 = smul.f32 0.00390625, %s3835_s5 }
 0x60f   : > { %s4732_s7 = spop %4731 }
 0x610   : > { %s3869_s8 = smul.f32 0.001953125, %s4732_s7 }
 0x612   : > { %s3870_s9 = sadd.f32 %s3869_s8, %s3838_s6 }
 0x614   : > { %3872 = sst [smem:[#allocation7]] %s3870_s9 }
 0x615 PF: > { %p4737_p5 = scmp.eq.s32.totalorder %s5399_s13, 1  ;;  %s5372_s10 = smov [#allocation7]  }
 0x617   : > { %4734 = dma.smem_to_hbm (%p4737_p5), %s5372_s10, 16, %s7289_s2, [#allocation8]  }
 0x618   : > { %5363 = dma.done.wait (%p4737_p5), [#allocation8], 16  }
 0x619   : > { %5365 = vsyncadd (%p4737_p5), [#allocation8], 4294967280 }
 0x61a   : > { %3926 = sfence }
 0x61b PF: > { %s15_s12 = sadd.s32 1, %s5368_s12  }
 0x61c   : > { %p12_p6 = scmp.ge.s32.totalorder %s15_s12, 4  }
 0x61e   :  { %14 = sbr.rel (!%p12_p6) target bundleno = 1 (0x1), region = 110 }
 0x623   :  { %3932 = vsyncpa [#allocation8], 1 }
 0x624   :  { %3934 = vsyncpa [#allocation8 + $0x1], 1 }
 0x625   :  { %3935 = vsyncmov [#allocation6] }
 0x628   :  { %s3936_s15 = vpop.sfrf %3935 }
 0x629   :  { %p4281_p7 = scmp.ne.s32.totalorder %s3936_s15, 0 }
 0x62b   :  { %3940 = shalt.err (%p4281_p7)  }

</bundles_post_ra>
